<compile_context>
chip_gen: v7x
topology: tpu7x:2x2x1
jax: 0.10.0
libtpu: 0.0.40
codegen_flags: <defaults>
</compile_context>

<pallas_src>
import functools

import jax
import jax.numpy as jnp
from jax import lax
from jax.experimental import pallas as pl
from jax.experimental.pallas import tpu as pltpu


def _base_model_kernel(x_ref, wc_ref, maskv_ref, wcls_ref, bcls_ref,
                       watt_ref, batt_ref, logits_ref, att_ref,
                       *, tb, wp, hwp):
    """One grid step = `tb` batch samples.

    x_ref    : (tb, PF, Cin)   bf16  flat zero-padded image per sample
                                     (row-major over (H+2, W+2), channel-minor,
                                     tail-padded to PF rows)
    wc_ref   : (9, Cin, Cout)  bf16  conv weights, tap-major (dh*3+dw)
    maskv_ref: (1, HWp)        f32   1/(H*W) on valid pixels, 0 on pad columns
    wcls_ref : (Cout, DP)      f32   classifier weights, lane-padded D->DP
    bcls_ref : (1, DP)         f32
    watt_ref : (DP, DP)        f32   folded attention weights (Wv @ Wo), padded
    batt_ref : (1, DP)         f32   folded attention bias (bv @ Wo + bo), padded
    logits_ref, att_ref : (1, tb, DP) f32   (full-128-lane stores)
    """
    cout = wc_ref.shape[2]

    # ---- Backbone: 3x3 conv via 9 shifted-slab matmuls, ReLU, masked pool ----
    pooled_rows = []
    for b in range(tb):                                    # tb is small & static
        acc = jnp.zeros((hwp, cout), jnp.float32)
        for t in range(9):
            off = (t // 3) * wp + (t % 3)                  # static shift
            tap = x_ref[b, off:off + hwp, :]               # (HWp, Cin) bf16
            acc = acc + jnp.dot(tap, wc_ref[t],
                                preferred_element_type=jnp.float32)
        feat = jnp.maximum(acc, 0.0)                       # ReLU, (HWp, Cout)
        # Global average pool as an MXU contraction with the masked 1/(H*W) row:
        pooled_rows.append(jnp.dot(maskv_ref[...], feat,
                                   preferred_element_type=jnp.float32))
    pooled = jnp.concatenate(pooled_rows, axis=0)          # (tb, Cout) f32

    # ---- Classifier head (lane-padded to DP for an unmasked store) ----
    logits = jnp.dot(pooled, wcls_ref[...],
                     preferred_element_type=jnp.float32) + bcls_ref[...]
    logits_ref[0] = logits.astype(logits_ref.dtype)

    # ---- Length-1 self-attention == one affine map (softmax of 1 score == 1) ----
    att = jnp.dot(logits, watt_ref[...],
                  preferred_element_type=jnp.float32) + batt_ref[...]
    att_ref[0] = att.astype(att_ref.dtype)


def _pick_tb(batch, per_sample_bytes, vmem_budget_bytes=12 << 20, cap=8):
    """Largest per-step batch tile under a conservative VMEM budget.

    The 12 MiB budget stays inside the default scoped-VMEM limit on every
    generation (16 MiB v5e, 32 MiB v6e / v7x), so no vmem_limit override is
    needed.  `cap` bounds kernel unrolling (the sample loop is static).  The
    remaining batch goes on the "parallel" grid axis; if batch is not a
    multiple of tb the wrapper zero-pads the last tile.
    """
    by_budget = max(1, vmem_budget_bytes // max(int(per_sample_bytes), 1))
    return int(max(1, min(batch, cap, by_budget)))


def base_model_forward(x_nchw, params, num_heads):
    """NCHW input -> (logits, attended_features), both (B, num_classes)."""
    w_conv = params["w_conv"]                       # (3, 3, Cin, Cout) HWIO
    cout = w_conv.shape[3]                          # backbone_out_dim
    d = params["w_cls"].shape[1]                    # num_classes
    assert d == cout, "attention embed_dim requires num_classes == backbone_out_dim"
    assert d % num_heads == 0, "embed_dim must be divisible by num_heads"

    b, cin, h, w = x_nchw.shape
    hp, wp = h + 2, w + 2
    hwp = h * wp                                    # conv computed on (H, W+2) grid
    pf = -(-(hp * wp + 2) // 8) * 8                 # flat length (covers max tap shift)
    dp = -(-d // 128) * 128                         # lane-pad head width to >=128
    f32 = jnp.float32

    # --- bf16 FIRST, then NCHW->NHWC, zero-pad, flatten spatial (channel-minor) ---
    x_b16 = x_nchw.astype(jnp.bfloat16)
    x_nhwc = jnp.transpose(x_b16, (0, 2, 3, 1))                 # (B, H, W, Cin)
    x_pad = jnp.pad(x_nhwc, ((0, 0), (1, 1), (1, 1), (0, 0)))   # (B, Hp, Wp, Cin)
    x_flat = x_pad.reshape(b, hp * wp, cin)
    x_flat = jnp.pad(x_flat, ((0, 0), (0, pf - hp * wp), (0, 0)))  # (B, PF, Cin)

    # --- VMEM-aware batch tiling; zero-pad batch to a multiple of tb ---
    per_sample = 2 * (pf * cin * 2) + 2 * (hwp * cout * 4)     # dbl-buf input + feat
    tb = _pick_tb(b, per_sample)
    g = pl.cdiv(b, tb)
    bp = g * tb
    if bp != b:
        x_flat = jnp.pad(x_flat, ((0, bp - b), (0, 0), (0, 0)))

    # --- Weights: conv taps in bf16; fold pool mask, attention, lane padding ---
    wc = w_conv.astype(jnp.bfloat16).reshape(9, cin, cout)      # tap-major
    col = jnp.arange(hwp) % wp
    maskv = jnp.where(col < w, 1.0 / (h * w), 0.0).astype(f32).reshape(1, hwp)

    w_cls_p = jnp.zeros((cout, dp), f32).at[:, :d].set(params["w_cls"].astype(f32))
    b_cls_p = jnp.zeros((1, dp), f32).at[:, :d].set(params["b_cls"].astype(f32))
    # Exact length-1 attention fold (softmax over a single score == 1):
    w_att = params["w_v"].astype(f32) @ params["w_o"].astype(f32)
    b_att = params["b_v"].astype(f32) @ params["w_o"].astype(f32) \
        + params["b_o"].astype(f32)
    w_att_p = jnp.zeros((dp, dp), f32).at[:d, :d].set(w_att)
    b_att_p = jnp.zeros((1, dp), f32).at[:, :d].set(b_att)

    def const_spec(arr):
        zeros = (0,) * arr.ndim
        return pl.BlockSpec(arr.shape, lambda gi: zeros)

    kernel = functools.partial(_base_model_kernel, tb=tb, wp=wp, hwp=hwp)
    logits_p, att_p = pl.pallas_call(
        kernel,
        out_shape=(jax.ShapeDtypeStruct((g, tb, dp), f32),
                   jax.ShapeDtypeStruct((g, tb, dp), f32)),
        grid_spec=pltpu.PrefetchScalarGridSpec(
            num_scalar_prefetch=0,
            grid=(g,),
            in_specs=[
                pl.BlockSpec((tb, pf, cin), lambda gi: (gi, 0, 0)),
                const_spec(wc),
                const_spec(maskv),
                const_spec(w_cls_p), const_spec(b_cls_p),
                const_spec(w_att_p), const_spec(b_att_p),
            ],
            out_specs=[
                pl.BlockSpec((1, tb, dp), lambda gi: (gi, 0, 0)),
                pl.BlockSpec((1, tb, dp), lambda gi: (gi, 0, 0)),
            ],
        ),
        compiler_params=pltpu.CompilerParams(
            dimension_semantics=("parallel",)),   # batch tiles are independent
    )(x_flat, wc, maskv, w_cls_p, b_cls_p, w_att_p, b_att_p)

    logits = logits_p.reshape(bp, dp)[:b, :d]
    attended = att_p.reshape(bp, dp)[:b, :d]
    return logits, attended


def _reference_forward(x_nchw, params):
    """Pure-JAX reference (same bf16 conv operands) for a correctness check."""
    x = jnp.transpose(x_nchw, (0, 2, 3, 1)).astype(jnp.bfloat16)
    w = params["w_conv"].astype(jnp.bfloat16)
    feat = lax.conv_general_dilated(
        x, w, window_strides=(1, 1), padding=((1, 1), (1, 1)),
        dimension_numbers=("NHWC", "HWIO", "NHWC"),
        preferred_element_type=jnp.float32)
    feat = jnp.maximum(feat, 0.0)
    pooled = jnp.mean(feat, axis=(1, 2))
    logits = pooled @ params["w_cls"] + params["b_cls"]
    # length-1 sequence: softmax == 1 -> attention output is exactly Wo(V)
    v = logits @ params["w_v"] + params["b_v"]
    att = v @ params["w_o"] + params["b_o"]
    return logits, att


def init_params(key, c_in, backbone_out_dim, num_classes, dtype=jnp.float32):
    # Deterministic synthetic init (module's __init__ defines only the shapes).
    # w_q/b_q/w_k/b_k are kept for parameter parity with MultiHeadAttention but
    # cannot affect the output for a length-1 token sequence (softmax == 1).
    d = backbone_out_dim
    ks = jax.random.split(key, 12)
    s_conv = 1.0 / (3 * 3 * c_in) ** 0.5
    s_lin = 1.0 / d ** 0.5
    return {
        "w_conv": (s_conv * jax.random.normal(ks[0], (3, 3, c_in, d))).astype(dtype),
        "w_cls": (s_lin * jax.random.normal(ks[1], (d, num_classes))).astype(dtype),
        "b_cls": (0.01 * jax.random.normal(ks[2], (1, num_classes))).astype(dtype),
        "w_q": (s_lin * jax.random.normal(ks[3], (d, d))).astype(dtype),
        "b_q": (0.01 * jax.random.normal(ks[4], (1, d))).astype(dtype),
        "w_k": (s_lin * jax.random.normal(ks[5], (d, d))).astype(dtype),
        "b_k": (0.01 * jax.random.normal(ks[6], (1, d))).astype(dtype),
        "w_v": (s_lin * jax.random.normal(ks[7], (d, d))).astype(dtype),
        "b_v": (0.01 * jax.random.normal(ks[8], (1, d))).astype(dtype),
        "w_o": (s_lin * jax.random.normal(ks[9], (d, d))).astype(dtype),
        "b_o": (0.01 * jax.random.normal(ks[10], (1, d))).astype(dtype),
    }


if __name__ == "__main__":
    B, C_IN, HW = 2, 4, 16
    BACKBONE_OUT_DIM = 32
    NUM_CLASSES = 32          # must equal backbone_out_dim (asserted in forward)
    NUM_HEADS = 8

    key = jax.random.PRNGKey(0)
    k_x, k_p = jax.random.split(key)
    x = jax.random.normal(k_x, (B, C_IN, HW, HW), dtype=jnp.float32)   # NCHW like PyTorch
    params = init_params(k_p, C_IN, BACKBONE_OUT_DIM, NUM_CLASSES)

    fwd = jax.jit(functools.partial(base_model_forward, num_heads=NUM_HEADS))
    logits, attended = fwd(x, params)
    jax.block_until_ready((logits, attended))

    assert logits.shape == (B, NUM_CLASSES)
    assert attended.shape == (B, BACKBONE_OUT_DIM)

    ref_logits, ref_att = _reference_forward(x, params)
    assert jnp.allclose(logits, ref_logits, rtol=2e-2, atol=2e-2), "logits mismatch"
    assert jnp.allclose(attended, ref_att, rtol=2e-2, atol=2e-2), "attended mismatch"

    print("KERNEL_OK")
</pallas_src>

<mosaic_0001>
module attributes {stable_mosaic.version = 11 : i64} {
  func.func @_base_model_kernel(%arg0: i32, %arg1: memref<2x328x4xbf16, #tpu.memory_space<vmem>>, %arg2: memref<9x4x32xbf16, #tpu.memory_space<vmem>>, %arg3: memref<1x288xf32, #tpu.memory_space<vmem>>, %arg4: memref<32x128xf32, #tpu.memory_space<vmem>>, %arg5: memref<1x128xf32, #tpu.memory_space<vmem>>, %arg6: memref<128x128xf32, #tpu.memory_space<vmem>>, %arg7: memref<1x128xf32, #tpu.memory_space<vmem>>, %arg8: memref<1x2x128xf32, #tpu.memory_space<vmem>>, %arg9: memref<1x2x128xf32, #tpu.memory_space<vmem>>) attributes {dimension_semantics = [#tpu.dimension_semantics<parallel>], iteration_bounds = array<i64: 1>, scalar_prefetch = 0 : i64, scratch_operands = 0 : i64, tpu.core_type = #tpu.core_type<tc>, window_params = [{transform_indices = @transform_0, window_bounds = array<i64: 2, 328, 4>}, {pipeline_mode = #tpu.pipeline_mode<synchronous>, transform_indices = @transform_1, window_bounds = array<i64: 9, 4, 32>}, {pipeline_mode = #tpu.pipeline_mode<synchronous>, transform_indices = @transform_2, window_bounds = array<i64: 1, 288>}, {pipeline_mode = #tpu.pipeline_mode<synchronous>, transform_indices = @transform_3, window_bounds = array<i64: 32, 128>}, {pipeline_mode = #tpu.pipeline_mode<synchronous>, transform_indices = @transform_4, window_bounds = array<i64: 1, 128>}, {pipeline_mode = #tpu.pipeline_mode<synchronous>, transform_indices = @transform_5, window_bounds = array<i64: 128, 128>}, {pipeline_mode = #tpu.pipeline_mode<synchronous>, transform_indices = @transform_6, window_bounds = array<i64: 1, 128>}, {transform_indices = @transform_7, window_bounds = array<i64: 1, 2, 128>}, {transform_indices = @transform_8, window_bounds = array<i64: 1, 2, 128>}]} {
    %cst = arith.constant 0.000000e+00 : f32
    %0 = vector.broadcast %cst : f32 to vector<288x32xf32>
    %c0 = arith.constant 0 : index
    %c0_0 = arith.constant 0 : index
    %c0_1 = arith.constant 0 : index
    %1 = vector.load %arg1[%c0, %c0_0, %c0_1] : memref<2x328x4xbf16, #tpu.memory_space<vmem>>, vector<1x288x4xbf16>
    %2 = vector.shape_cast %1 : vector<1x288x4xbf16> to vector<288x4xbf16>
    %c0_2 = arith.constant 0 : index
    %c0_3 = arith.constant 0 : index
    %c0_4 = arith.constant 0 : index
    %3 = vector.load %arg2[%c0_2, %c0_3, %c0_4] : memref<9x4x32xbf16, #tpu.memory_space<vmem>>, vector<1x4x32xbf16>
    %4 = vector.shape_cast %3 : vector<1x4x32xbf16> to vector<4x32xbf16>
    %cst_5 = arith.constant dense<0.000000e+00> : vector<288x32xf32>
    %5 = tpu.matmul %2, %4, %cst_5 {dimension_numbers = #tpu.dot_dimension_numbers<[1], [0], [0], [1], [0, 0, 1, 1], [], []>} : vector<288x4xbf16>, vector<4x32xbf16>, vector<288x32xf32> -> vector<288x32xf32>
    %6 = arith.addf %0, %5 : vector<288x32xf32>
    %c0_6 = arith.constant 0 : index
    %c1 = arith.constant 1 : index
    %c0_7 = arith.constant 0 : index
    %7 = vector.load %arg1[%c0_6, %c1, %c0_7] : memref<2x328x4xbf16, #tpu.memory_space<vmem>>, vector<1x288x4xbf16>
    %8 = vector.shape_cast %7 : vector<1x288x4xbf16> to vector<288x4xbf16>
    %c1_8 = arith.constant 1 : index
    %c0_9 = arith.constant 0 : index
    %c0_10 = arith.constant 0 : index
    %9 = vector.load %arg2[%c1_8, %c0_9, %c0_10] : memref<9x4x32xbf16, #tpu.memory_space<vmem>>, vector<1x4x32xbf16>
    %10 = vector.shape_cast %9 : vector<1x4x32xbf16> to vector<4x32xbf16>
    %cst_11 = arith.constant dense<0.000000e+00> : vector<288x32xf32>
    %11 = tpu.matmul %8, %10, %cst_11 {dimension_numbers = #tpu.dot_dimension_numbers<[1], [0], [0], [1], [0, 0, 1, 1], [], []>} : vector<288x4xbf16>, vector<4x32xbf16>, vector<288x32xf32> -> vector<288x32xf32>
    %12 = arith.addf %6, %11 : vector<288x32xf32>
    %c0_12 = arith.constant 0 : index
    %c2 = arith.constant 2 : index
    %c0_13 = arith.constant 0 : index
    %13 = vector.load %arg1[%c0_12, %c2, %c0_13] : memref<2x328x4xbf16, #tpu.memory_space<vmem>>, vector<1x288x4xbf16>
    %14 = vector.shape_cast %13 : vector<1x288x4xbf16> to vector<288x4xbf16>
    %c2_14 = arith.constant 2 : index
    %c0_15 = arith.constant 0 : index
    %c0_16 = arith.constant 0 : index
    %15 = vector.load %arg2[%c2_14, %c0_15, %c0_16] : memref<9x4x32xbf16, #tpu.memory_space<vmem>>, vector<1x4x32xbf16>
    %16 = vector.shape_cast %15 : vector<1x4x32xbf16> to vector<4x32xbf16>
    %cst_17 = arith.constant dense<0.000000e+00> : vector<288x32xf32>
    %17 = tpu.matmul %14, %16, %cst_17 {dimension_numbers = #tpu.dot_dimension_numbers<[1], [0], [0], [1], [0, 0, 1, 1], [], []>} : vector<288x4xbf16>, vector<4x32xbf16>, vector<288x32xf32> -> vector<288x32xf32>
    %18 = arith.addf %12, %17 : vector<288x32xf32>
    %c0_18 = arith.constant 0 : index
    %c18 = arith.constant 18 : index
    %c0_19 = arith.constant 0 : index
    %19 = vector.load %arg1[%c0_18, %c18, %c0_19] : memref<2x328x4xbf16, #tpu.memory_space<vmem>>, vector<1x288x4xbf16>
    %20 = vector.shape_cast %19 : vector<1x288x4xbf16> to vector<288x4xbf16>
    %c3 = arith.constant 3 : index
    %c0_20 = arith.constant 0 : index
    %c0_21 = arith.constant 0 : index
    %21 = vector.load %arg2[%c3, %c0_20, %c0_21] : memref<9x4x32xbf16, #tpu.memory_space<vmem>>, vector<1x4x32xbf16>
    %22 = vector.shape_cast %21 : vector<1x4x32xbf16> to vector<4x32xbf16>
    %cst_22 = arith.constant dense<0.000000e+00> : vector<288x32xf32>
    %23 = tpu.matmul %20, %22, %cst_22 {dimension_numbers = #tpu.dot_dimension_numbers<[1], [0], [0], [1], [0, 0, 1, 1], [], []>} : vector<288x4xbf16>, vector<4x32xbf16>, vector<288x32xf32> -> vector<288x32xf32>
    %24 = arith.addf %18, %23 : vector<288x32xf32>
    %c0_23 = arith.constant 0 : index
    %c19 = arith.constant 19 : index
    %c0_24 = arith.constant 0 : index
    %25 = vector.load %arg1[%c0_23, %c19, %c0_24] : memref<2x328x4xbf16, #tpu.memory_space<vmem>>, vector<1x288x4xbf16>
    %26 = vector.shape_cast %25 : vector<1x288x4xbf16> to vector<288x4xbf16>
    %c4 = arith.constant 4 : index
    %c0_25 = arith.constant 0 : index
    %c0_26 = arith.constant 0 : index
    %27 = vector.load %arg2[%c4, %c0_25, %c0_26] : memref<9x4x32xbf16, #tpu.memory_space<vmem>>, vector<1x4x32xbf16>
    %28 = vector.shape_cast %27 : vector<1x4x32xbf16> to vector<4x32xbf16>
    %cst_27 = arith.constant dense<0.000000e+00> : vector<288x32xf32>
    %29 = tpu.matmul %26, %28, %cst_27 {dimension_numbers = #tpu.dot_dimension_numbers<[1], [0], [0], [1], [0, 0, 1, 1], [], []>} : vector<288x4xbf16>, vector<4x32xbf16>, vector<288x32xf32> -> vector<288x32xf32>
    %30 = arith.addf %24, %29 : vector<288x32xf32>
    %c0_28 = arith.constant 0 : index
    %c20 = arith.constant 20 : index
    %c0_29 = arith.constant 0 : index
    %31 = vector.load %arg1[%c0_28, %c20, %c0_29] : memref<2x328x4xbf16, #tpu.memory_space<vmem>>, vector<1x288x4xbf16>
    %32 = vector.shape_cast %31 : vector<1x288x4xbf16> to vector<288x4xbf16>
    %c5 = arith.constant 5 : index
    %c0_30 = arith.constant 0 : index
    %c0_31 = arith.constant 0 : index
    %33 = vector.load %arg2[%c5, %c0_30, %c0_31] : memref<9x4x32xbf16, #tpu.memory_space<vmem>>, vector<1x4x32xbf16>
    %34 = vector.shape_cast %33 : vector<1x4x32xbf16> to vector<4x32xbf16>
    %cst_32 = arith.constant dense<0.000000e+00> : vector<288x32xf32>
    %35 = tpu.matmul %32, %34, %cst_32 {dimension_numbers = #tpu.dot_dimension_numbers<[1], [0], [0], [1], [0, 0, 1, 1], [], []>} : vector<288x4xbf16>, vector<4x32xbf16>, vector<288x32xf32> -> vector<288x32xf32>
    %36 = arith.addf %30, %35 : vector<288x32xf32>
    %c0_33 = arith.constant 0 : index
    %c36 = arith.constant 36 : index
    %c0_34 = arith.constant 0 : index
    %37 = vector.load %arg1[%c0_33, %c36, %c0_34] : memref<2x328x4xbf16, #tpu.memory_space<vmem>>, vector<1x288x4xbf16>
    %38 = vector.shape_cast %37 : vector<1x288x4xbf16> to vector<288x4xbf16>
    %c6 = arith.constant 6 : index
    %c0_35 = arith.constant 0 : index
    %c0_36 = arith.constant 0 : index
    %39 = vector.load %arg2[%c6, %c0_35, %c0_36] : memref<9x4x32xbf16, #tpu.memory_space<vmem>>, vector<1x4x32xbf16>
    %40 = vector.shape_cast %39 : vector<1x4x32xbf16> to vector<4x32xbf16>
    %cst_37 = arith.constant dense<0.000000e+00> : vector<288x32xf32>
    %41 = tpu.matmul %38, %40, %cst_37 {dimension_numbers = #tpu.dot_dimension_numbers<[1], [0], [0], [1], [0, 0, 1, 1], [], []>} : vector<288x4xbf16>, vector<4x32xbf16>, vector<288x32xf32> -> vector<288x32xf32>
    %42 = arith.addf %36, %41 : vector<288x32xf32>
    %c0_38 = arith.constant 0 : index
    %c37 = arith.constant 37 : index
    %c0_39 = arith.constant 0 : index
    %43 = vector.load %arg1[%c0_38, %c37, %c0_39] : memref<2x328x4xbf16, #tpu.memory_space<vmem>>, vector<1x288x4xbf16>
    %44 = vector.shape_cast %43 : vector<1x288x4xbf16> to vector<288x4xbf16>
    %c7 = arith.constant 7 : index
    %c0_40 = arith.constant 0 : index
    %c0_41 = arith.constant 0 : index
    %45 = vector.load %arg2[%c7, %c0_40, %c0_41] : memref<9x4x32xbf16, #tpu.memory_space<vmem>>, vector<1x4x32xbf16>
    %46 = vector.shape_cast %45 : vector<1x4x32xbf16> to vector<4x32xbf16>
    %cst_42 = arith.constant dense<0.000000e+00> : vector<288x32xf32>
    %47 = tpu.matmul %44, %46, %cst_42 {dimension_numbers = #tpu.dot_dimension_numbers<[1], [0], [0], [1], [0, 0, 1, 1], [], []>} : vector<288x4xbf16>, vector<4x32xbf16>, vector<288x32xf32> -> vector<288x32xf32>
    %48 = arith.addf %42, %47 : vector<288x32xf32>
    %c0_43 = arith.constant 0 : index
    %c38 = arith.constant 38 : index
    %c0_44 = arith.constant 0 : index
    %49 = vector.load %arg1[%c0_43, %c38, %c0_44] : memref<2x328x4xbf16, #tpu.memory_space<vmem>>, vector<1x288x4xbf16>
    %50 = vector.shape_cast %49 : vector<1x288x4xbf16> to vector<288x4xbf16>
    %c8 = arith.constant 8 : index
    %c0_45 = arith.constant 0 : index
    %c0_46 = arith.constant 0 : index
    %51 = vector.load %arg2[%c8, %c0_45, %c0_46] : memref<9x4x32xbf16, #tpu.memory_space<vmem>>, vector<1x4x32xbf16>
    %52 = vector.shape_cast %51 : vector<1x4x32xbf16> to vector<4x32xbf16>
    %cst_47 = arith.constant dense<0.000000e+00> : vector<288x32xf32>
    %53 = tpu.matmul %50, %52, %cst_47 {dimension_numbers = #tpu.dot_dimension_numbers<[1], [0], [0], [1], [0, 0, 1, 1], [], []>} : vector<288x4xbf16>, vector<4x32xbf16>, vector<288x32xf32> -> vector<288x32xf32>
    %54 = arith.addf %48, %53 : vector<288x32xf32>
    %cst_48 = arith.constant 0.000000e+00 : f32
    %55 = vector.broadcast %cst_48 : f32 to vector<288x32xf32>
    %56 = arith.maximumf %54, %55 : vector<288x32xf32>
    %c0_49 = arith.constant 0 : index
    %c0_50 = arith.constant 0 : index
    %57 = vector.load %arg3[%c0_49, %c0_50] : memref<1x288xf32, #tpu.memory_space<vmem>>, vector<1x288xf32>
    %cst_51 = arith.constant dense<0.000000e+00> : vector<1x32xf32>
    %58 = tpu.matmul %57, %56, %cst_51 {dimension_numbers = #tpu.dot_dimension_numbers<[1], [0], [0], [1], [0, 0, 1, 1], [], []>} : vector<1x288xf32>, vector<288x32xf32>, vector<1x32xf32> -> vector<1x32xf32>
    %cst_52 = arith.constant 0.000000e+00 : f32
    %59 = vector.broadcast %cst_52 : f32 to vector<288x32xf32>
    %c1_53 = arith.constant 1 : index
    %c0_54 = arith.constant 0 : index
    %c0_55 = arith.constant 0 : index
    %60 = vector.load %arg1[%c1_53, %c0_54, %c0_55] : memref<2x328x4xbf16, #tpu.memory_space<vmem>>, vector<1x288x4xbf16>
    %61 = vector.shape_cast %60 : vector<1x288x4xbf16> to vector<288x4xbf16>
    %c0_56 = arith.constant 0 : index
    %c0_57 = arith.constant 0 : index
    %c0_58 = arith.constant 0 : index
    %62 = vector.load %arg2[%c0_56, %c0_57, %c0_58] : memref<9x4x32xbf16, #tpu.memory_space<vmem>>, vector<1x4x32xbf16>
    %63 = vector.shape_cast %62 : vector<1x4x32xbf16> to vector<4x32xbf16>
    %cst_59 = arith.constant dense<0.000000e+00> : vector<288x32xf32>
    %64 = tpu.matmul %61, %63, %cst_59 {dimension_numbers = #tpu.dot_dimension_numbers<[1], [0], [0], [1], [0, 0, 1, 1], [], []>} : vector<288x4xbf16>, vector<4x32xbf16>, vector<288x32xf32> -> vector<288x32xf32>
    %65 = arith.addf %59, %64 : vector<288x32xf32>
    %c1_60 = arith.constant 1 : index
    %c1_61 = arith.constant 1 : index
    %c0_62 = arith.constant 0 : index
    %66 = vector.load %arg1[%c1_60, %c1_61, %c0_62] : memref<2x328x4xbf16, #tpu.memory_space<vmem>>, vector<1x288x4xbf16>
    %67 = vector.shape_cast %66 : vector<1x288x4xbf16> to vector<288x4xbf16>
    %c1_63 = arith.constant 1 : index
    %c0_64 = arith.constant 0 : index
    %c0_65 = arith.constant 0 : index
    %68 = vector.load %arg2[%c1_63, %c0_64, %c0_65] : memref<9x4x32xbf16, #tpu.memory_space<vmem>>, vector<1x4x32xbf16>
    %69 = vector.shape_cast %68 : vector<1x4x32xbf16> to vector<4x32xbf16>
    %cst_66 = arith.constant dense<0.000000e+00> : vector<288x32xf32>
    %70 = tpu.matmul %67, %69, %cst_66 {dimension_numbers = #tpu.dot_dimension_numbers<[1], [0], [0], [1], [0, 0, 1, 1], [], []>} : vector<288x4xbf16>, vector<4x32xbf16>, vector<288x32xf32> -> vector<288x32xf32>
    %71 = arith.addf %65, %70 : vector<288x32xf32>
    %c1_67 = arith.constant 1 : index
    %c2_68 = arith.constant 2 : index
    %c0_69 = arith.constant 0 : index
    %72 = vector.load %arg1[%c1_67, %c2_68, %c0_69] : memref<2x328x4xbf16, #tpu.memory_space<vmem>>, vector<1x288x4xbf16>
    %73 = vector.shape_cast %72 : vector<1x288x4xbf16> to vector<288x4xbf16>
    %c2_70 = arith.constant 2 : index
    %c0_71 = arith.constant 0 : index
    %c0_72 = arith.constant 0 : index
    %74 = vector.load %arg2[%c2_70, %c0_71, %c0_72] : memref<9x4x32xbf16, #tpu.memory_space<vmem>>, vector<1x4x32xbf16>
    %75 = vector.shape_cast %74 : vector<1x4x32xbf16> to vector<4x32xbf16>
    %cst_73 = arith.constant dense<0.000000e+00> : vector<288x32xf32>
    %76 = tpu.matmul %73, %75, %cst_73 {dimension_numbers = #tpu.dot_dimension_numbers<[1], [0], [0], [1], [0, 0, 1, 1], [], []>} : vector<288x4xbf16>, vector<4x32xbf16>, vector<288x32xf32> -> vector<288x32xf32>
    %77 = arith.addf %71, %76 : vector<288x32xf32>
    %c1_74 = arith.constant 1 : index
    %c18_75 = arith.constant 18 : index
    %c0_76 = arith.constant 0 : index
    %78 = vector.load %arg1[%c1_74, %c18_75, %c0_76] : memref<2x328x4xbf16, #tpu.memory_space<vmem>>, vector<1x288x4xbf16>
    %79 = vector.shape_cast %78 : vector<1x288x4xbf16> to vector<288x4xbf16>
    %c3_77 = arith.constant 3 : index
    %c0_78 = arith.constant 0 : index
    %c0_79 = arith.constant 0 : index
    %80 = vector.load %arg2[%c3_77, %c0_78, %c0_79] : memref<9x4x32xbf16, #tpu.memory_space<vmem>>, vector<1x4x32xbf16>
    %81 = vector.shape_cast %80 : vector<1x4x32xbf16> to vector<4x32xbf16>
    %cst_80 = arith.constant dense<0.000000e+00> : vector<288x32xf32>
    %82 = tpu.matmul %79, %81, %cst_80 {dimension_numbers = #tpu.dot_dimension_numbers<[1], [0], [0], [1], [0, 0, 1, 1], [], []>} : vector<288x4xbf16>, vector<4x32xbf16>, vector<288x32xf32> -> vector<288x32xf32>
    %83 = arith.addf %77, %82 : vector<288x32xf32>
    %c1_81 = arith.constant 1 : index
    %c19_82 = arith.constant 19 : index
    %c0_83 = arith.constant 0 : index
    %84 = vector.load %arg1[%c1_81, %c19_82, %c0_83] : memref<2x328x4xbf16, #tpu.memory_space<vmem>>, vector<1x288x4xbf16>
    %85 = vector.shape_cast %84 : vector<1x288x4xbf16> to vector<288x4xbf16>
    %c4_84 = arith.constant 4 : index
    %c0_85 = arith.constant 0 : index
    %c0_86 = arith.constant 0 : index
    %86 = vector.load %arg2[%c4_84, %c0_85, %c0_86] : memref<9x4x32xbf16, #tpu.memory_space<vmem>>, vector<1x4x32xbf16>
    %87 = vector.shape_cast %86 : vector<1x4x32xbf16> to vector<4x32xbf16>
    %cst_87 = arith.constant dense<0.000000e+00> : vector<288x32xf32>
    %88 = tpu.matmul %85, %87, %cst_87 {dimension_numbers = #tpu.dot_dimension_numbers<[1], [0], [0], [1], [0, 0, 1, 1], [], []>} : vector<288x4xbf16>, vector<4x32xbf16>, vector<288x32xf32> -> vector<288x32xf32>
    %89 = arith.addf %83, %88 : vector<288x32xf32>
    %c1_88 = arith.constant 1 : index
    %c20_89 = arith.constant 20 : index
    %c0_90 = arith.constant 0 : index
    %90 = vector.load %arg1[%c1_88, %c20_89, %c0_90] : memref<2x328x4xbf16, #tpu.memory_space<vmem>>, vector<1x288x4xbf16>
    %91 = vector.shape_cast %90 : vector<1x288x4xbf16> to vector<288x4xbf16>
    %c5_91 = arith.constant 5 : index
    %c0_92 = arith.constant 0 : index
    %c0_93 = arith.constant 0 : index
    %92 = vector.load %arg2[%c5_91, %c0_92, %c0_93] : memref<9x4x32xbf16, #tpu.memory_space<vmem>>, vector<1x4x32xbf16>
    %93 = vector.shape_cast %92 : vector<1x4x32xbf16> to vector<4x32xbf16>
    %cst_94 = arith.constant dense<0.000000e+00> : vector<288x32xf32>
    %94 = tpu.matmul %91, %93, %cst_94 {dimension_numbers = #tpu.dot_dimension_numbers<[1], [0], [0], [1], [0, 0, 1, 1], [], []>} : vector<288x4xbf16>, vector<4x32xbf16>, vector<288x32xf32> -> vector<288x32xf32>
    %95 = arith.addf %89, %94 : vector<288x32xf32>
    %c1_95 = arith.constant 1 : index
    %c36_96 = arith.constant 36 : index
    %c0_97 = arith.constant 0 : index
    %96 = vector.load %arg1[%c1_95, %c36_96, %c0_97] : memref<2x328x4xbf16, #tpu.memory_space<vmem>>, vector<1x288x4xbf16>
    %97 = vector.shape_cast %96 : vector<1x288x4xbf16> to vector<288x4xbf16>
    %c6_98 = arith.constant 6 : index
    %c0_99 = arith.constant 0 : index
    %c0_100 = arith.constant 0 : index
    %98 = vector.load %arg2[%c6_98, %c0_99, %c0_100] : memref<9x4x32xbf16, #tpu.memory_space<vmem>>, vector<1x4x32xbf16>
    %99 = vector.shape_cast %98 : vector<1x4x32xbf16> to vector<4x32xbf16>
    %cst_101 = arith.constant dense<0.000000e+00> : vector<288x32xf32>
    %100 = tpu.matmul %97, %99, %cst_101 {dimension_numbers = #tpu.dot_dimension_numbers<[1], [0], [0], [1], [0, 0, 1, 1], [], []>} : vector<288x4xbf16>, vector<4x32xbf16>, vector<288x32xf32> -> vector<288x32xf32>
    %101 = arith.addf %95, %100 : vector<288x32xf32>
    %c1_102 = arith.constant 1 : index
    %c37_103 = arith.constant 37 : index
    %c0_104 = arith.constant 0 : index
    %102 = vector.load %arg1[%c1_102, %c37_103, %c0_104] : memref<2x328x4xbf16, #tpu.memory_space<vmem>>, vector<1x288x4xbf16>
    %103 = vector.shape_cast %102 : vector<1x288x4xbf16> to vector<288x4xbf16>
    %c7_105 = arith.constant 7 : index
    %c0_106 = arith.constant 0 : index
    %c0_107 = arith.constant 0 : index
    %104 = vector.load %arg2[%c7_105, %c0_106, %c0_107] : memref<9x4x32xbf16, #tpu.memory_space<vmem>>, vector<1x4x32xbf16>
    %105 = vector.shape_cast %104 : vector<1x4x32xbf16> to vector<4x32xbf16>
    %cst_108 = arith.constant dense<0.000000e+00> : vector<288x32xf32>
    %106 = tpu.matmul %103, %105, %cst_108 {dimension_numbers = #tpu.dot_dimension_numbers<[1], [0], [0], [1], [0, 0, 1, 1], [], []>} : vector<288x4xbf16>, vector<4x32xbf16>, vector<288x32xf32> -> vector<288x32xf32>
    %107 = arith.addf %101, %106 : vector<288x32xf32>
    %c1_109 = arith.constant 1 : index
    %c38_110 = arith.constant 38 : index
    %c0_111 = arith.constant 0 : index
    %108 = vector.load %arg1[%c1_109, %c38_110, %c0_111] : memref<2x328x4xbf16, #tpu.memory_space<vmem>>, vector<1x288x4xbf16>
    %109 = vector.shape_cast %108 : vector<1x288x4xbf16> to vector<288x4xbf16>
    %c8_112 = arith.constant 8 : index
    %c0_113 = arith.constant 0 : index
    %c0_114 = arith.constant 0 : index
    %110 = vector.load %arg2[%c8_112, %c0_113, %c0_114] : memref<9x4x32xbf16, #tpu.memory_space<vmem>>, vector<1x4x32xbf16>
    %111 = vector.shape_cast %110 : vector<1x4x32xbf16> to vector<4x32xbf16>
    %cst_115 = arith.constant dense<0.000000e+00> : vector<288x32xf32>
    %112 = tpu.matmul %109, %111, %cst_115 {dimension_numbers = #tpu.dot_dimension_numbers<[1], [0], [0], [1], [0, 0, 1, 1], [], []>} : vector<288x4xbf16>, vector<4x32xbf16>, vector<288x32xf32> -> vector<288x32xf32>
    %113 = arith.addf %107, %112 : vector<288x32xf32>
    %cst_116 = arith.constant 0.000000e+00 : f32
    %114 = vector.broadcast %cst_116 : f32 to vector<288x32xf32>
    %115 = arith.maximumf %113, %114 : vector<288x32xf32>
    %c0_117 = arith.constant 0 : index
    %c0_118 = arith.constant 0 : index
    %116 = vector.load %arg3[%c0_117, %c0_118] : memref<1x288xf32, #tpu.memory_space<vmem>>, vector<1x288xf32>
    %cst_119 = arith.constant dense<0.000000e+00> : vector<1x32xf32>
    %117 = tpu.matmul %116, %115, %cst_119 {dimension_numbers = #tpu.dot_dimension_numbers<[1], [0], [0], [1], [0, 0, 1, 1], [], []>} : vector<1x288xf32>, vector<288x32xf32>, vector<1x32xf32> -> vector<1x32xf32>
    %118 = tpu.concatenate %58, %117 in 0 : vector<1x32xf32>, vector<1x32xf32> -> vector<2x32xf32>
    %c0_120 = arith.constant 0 : index
    %c0_121 = arith.constant 0 : index
    %119 = vector.load %arg4[%c0_120, %c0_121] : memref<32x128xf32, #tpu.memory_space<vmem>>, vector<32x128xf32>
    %cst_122 = arith.constant dense<0.000000e+00> : vector<2x128xf32>
    %120 = tpu.matmul %118, %119, %cst_122 {dimension_numbers = #tpu.dot_dimension_numbers<[1], [0], [0], [1], [0, 0, 1, 1], [], []>} : vector<2x32xf32>, vector<32x128xf32>, vector<2x128xf32> -> vector<2x128xf32>
    %c0_123 = arith.constant 0 : index
    %c0_124 = arith.constant 0 : index
    %121 = vector.load %arg5[%c0_123, %c0_124] : memref<1x128xf32, #tpu.memory_space<vmem>>, vector<1x128xf32>
    %122 = vector.broadcast %121 : vector<1x128xf32> to vector<2x128xf32>
    %123 = arith.addf %120, %122 : vector<2x128xf32>
    %c0_125 = arith.constant 0 : index
    %c0_126 = arith.constant 0 : index
    %c0_127 = arith.constant 0 : index
    %124 = vector.load %arg8[%c0_125, %c0_126, %c0_127] : memref<1x2x128xf32, #tpu.memory_space<vmem>>, vector<1x2x128xf32>
    %125 = vector.shape_cast %124 : vector<1x2x128xf32> to vector<2x128xf32>
    %126 = vector.shape_cast %123 : vector<2x128xf32> to vector<1x2x128xf32>
    tpu.vector_store %arg8[%c0_125, %c0_126, %c0_127], %126 {strides = array<i32>} : memref<1x2x128xf32, #tpu.memory_space<vmem>>, vector<1x2x128xf32>,
    %c0_128 = arith.constant 0 : index
    %c0_129 = arith.constant 0 : index
    %127 = vector.load %arg6[%c0_128, %c0_129] : memref<128x128xf32, #tpu.memory_space<vmem>>, vector<128x128xf32>
    %cst_130 = arith.constant dense<0.000000e+00> : vector<2x128xf32>
    %128 = tpu.matmul %123, %127, %cst_130 {dimension_numbers = #tpu.dot_dimension_numbers<[1], [0], [0], [1], [0, 0, 1, 1], [], []>} : vector<2x128xf32>, vector<128x128xf32>, vector<2x128xf32> -> vector<2x128xf32>
    %c0_131 = arith.constant 0 : index
    %c0_132 = arith.constant 0 : index
    %129 = vector.load %arg7[%c0_131, %c0_132] : memref<1x128xf32, #tpu.memory_space<vmem>>, vector<1x128xf32>
    %130 = vector.broadcast %129 : vector<1x128xf32> to vector<2x128xf32>
    %131 = arith.addf %128, %130 : vector<2x128xf32>
    %c0_133 = arith.constant 0 : index
    %c0_134 = arith.constant 0 : index
    %c0_135 = arith.constant 0 : index
    %132 = vector.load %arg9[%c0_133, %c0_134, %c0_135] : memref<1x2x128xf32, #tpu.memory_space<vmem>>, vector<1x2x128xf32>
    %133 = vector.shape_cast %132 : vector<1x2x128xf32> to vector<2x128xf32>
    %134 = vector.shape_cast %131 : vector<2x128xf32> to vector<1x2x128xf32>
    tpu.vector_store %arg9[%c0_133, %c0_134, %c0_135], %134 {strides = array<i32>} : memref<1x2x128xf32, #tpu.memory_space<vmem>>, vector<1x2x128xf32>,
    return
  }
  func.func @transform_0(%arg0: i32) -> (i32, i32, i32) {
    %c0_i32 = arith.constant 0 : i32
    %c0_i32_0 = arith.constant 0 : i32
    %c0_i32_1 = arith.constant 0 : i32
    return %arg0, %c0_i32, %c0_i32_0 : i32, i32, i32
  }
  func.func @transform_1(%arg0: i32) -> (i32, i32, i32) {
    %c0_i32 = arith.constant 0 : i32
    %c0_i32_0 = arith.constant 0 : i32
    %c0_i32_1 = arith.constant 0 : i32
    %c0_i32_2 = arith.constant 0 : i32
    return %c0_i32, %c0_i32_0, %c0_i32_1 : i32, i32, i32
  }
  func.func @transform_2(%arg0: i32) -> (i32, i32) {
    %c0_i32 = arith.constant 0 : i32
    %c0_i32_0 = arith.constant 0 : i32
    %c0_i32_1 = arith.constant 0 : i32
    return %c0_i32, %c0_i32_0 : i32, i32
  }
  func.func @transform_3(%arg0: i32) -> (i32, i32) {
    %c0_i32 = arith.constant 0 : i32
    %c0_i32_0 = arith.constant 0 : i32
    %c0_i32_1 = arith.constant 0 : i32
    return %c0_i32, %c0_i32_0 : i32, i32
  }
  func.func @transform_4(%arg0: i32) -> (i32, i32) {
    %c0_i32 = arith.constant 0 : i32
    %c0_i32_0 = arith.constant 0 : i32
    %c0_i32_1 = arith.constant 0 : i32
    return %c0_i32, %c0_i32_0 : i32, i32
  }
  func.func @transform_5(%arg0: i32) -> (i32, i32) {
    %c0_i32 = arith.constant 0 : i32
    %c0_i32_0 = arith.constant 0 : i32
    %c0_i32_1 = arith.constant 0 : i32
    return %c0_i32, %c0_i32_0 : i32, i32
  }
  func.func @transform_6(%arg0: i32) -> (i32, i32) {
    %c0_i32 = arith.constant 0 : i32
    %c0_i32_0 = arith.constant 0 : i32
    %c0_i32_1 = arith.constant 0 : i32
    return %c0_i32, %c0_i32_0 : i32, i32
  }
  func.func @transform_7(%arg0: i32) -> (i32, i32, i32) {
    %c0_i32 = arith.constant 0 : i32
    %c0_i32_0 = arith.constant 0 : i32
    %c0_i32_1 = arith.constant 0 : i32
    return %arg0, %c0_i32, %c0_i32_0 : i32, i32, i32
  }
  func.func @transform_8(%arg0: i32) -> (i32, i32, i32) {
    %c0_i32 = arith.constant 0 : i32
    %c0_i32_0 = arith.constant 0 : i32
    %c0_i32_1 = arith.constant 0 : i32
    return %arg0, %c0_i32, %c0_i32_0 : i32, i32, i32
  }
}

</mosaic_0001>

<bundles_post_ra>
// kernel: base_model_forward.1
= control target key start
LH: loop header
LB: loop body
LE: loop exit
PB: predicated region body
PF: predicated region fallthrough
CT: control target
= control target key end

     0   :  { %14 = vsyncpa [#allocation3], 0  ;;  %vm368_vm0 = vcmask 1041408   ;;  %vm164_vm1 = vsmask.f32 7424  ;;  %vm313_vm2 = vcmask 31744   ;;  %s12143_s0 = inlined_call_operand.vmem [shape: bf16[2,328,4], index: 0, kind: input, shape index: {}]   ;;  %s12144_s1 = inlined_call_operand.vmem [shape: bf16[9,4,32], index: 1, kind: input, shape index: {}]   ;;  %s12145_s2 = inlined_call_operand.vmem [shape: f32[1,288], index: 2, kind: input, shape index: {}]   ;;  %s12146_s3 = inlined_call_operand.vmem [shape: f32[32,128], index: 3, kind: input, shape index: {}]   ;;  %s12147_s4 = inlined_call_operand.vmem [shape: f32[1,128], index: 4, kind: input, shape index: {}]   ;;  %s12148_s5 = inlined_call_operand.vmem [shape: f32[128,128], index: 5, kind: input, shape index: {}]   ;;  %s12149_s6 = inlined_call_operand.vmem [shape: f32[1,128], index: 6, kind: input, shape index: {}]   ;;  %s12150_s7 = inlined_call_operand.hbm [shape: f32[1,2,128], index: 7, kind: output, shape index: {0}]   ;;  %s12151_s8 = inlined_call_operand.hbm [shape: f32[1,2,128], index: 8, kind: output, shape index: {1}]  }
   0x1   :  { %v7459_v0 = vld [vmem:[%s12144_s1 + $0x2] sm:$0x3]  ;;  %v10177_v2 = vld [vmem:[%s12143_s0 + $0x8] sm:$0xff]   ;;  %v10186_v4 = vld [vmem:[%s12143_s0 + $0x4] sm:$0xf] }
   0x2   :  { %v31_v1 = vld [vmem:[%s12143_s0] sm:$0xf]  ;;  %9914 = vmatprep.subr.msk.bf16.mxu0 %vm368_vm0, %v7459_v0  ;;  %v10181_v3 = vsel %vm368_vm0, %v7459_v0, 0  ;;  %v173_v6 = vshll.u32 %v10177_v2, 16  ;;  %v177_v7 = vshrl.u32 %v10177_v2, 16  ;;  %v10197_v8 = vld [vmem:[%s12143_s0 + $0x10] sm:$0xff]  }
   0x3   :  { %8481 = vmatpush3.bf16.msra.mxu0 %v10181_v3  ;;  %v10190_v5 = vcombine.low %v31_v1, %v10186_v4  ;;  %v10204_v12 = vld [vmem:[%s12143_s0 + $0x18] sm:$0xff]   ;;  %v181_v13 = vshll.u32 %v10197_v8, 16  ;;  %v185_v14 = vshrl.u32 %v10197_v8, 16  ;;  %v10212_v18 = vld [vmem:[%s12143_s0 + $0x20] sm:$0xff]   ;;  %v10217_v20 = vld [vmem:[%s12143_s0 + $0x28] sm:$0xff]  }
   0x4   :  { %v175_v11 = vrot.slane %v173_v6, 1  ;;  %v189_v17 = vshll.u32 %v10204_v12, 16  ;;  %v197_v23 = vshll.u32 %v10212_v18, 16  ;;  %v193_v26 = vshrl.u32 %v10204_v12, 16  ;;  %v10231_v32 = vld [vmem:[%s12143_s0 + $0x30] sm:$0xff]   ;;  %v10237_v36 = vld [vmem:[%s12143_s0 + $0x38] sm:$0xff]  }
   0x5   :  { %v166_v9 = vshrl.u32 %v10190_v5, 16  ;;  %v168_v10 = vshll.u32 %v10190_v5, 16  ;;  %v183_v19 = vrot.slane %v181_v13, 1  ;;  %v201_v28 = vshrl.u32 %v10212_v18, 16  ;;  %v67_v38 = vld [vmem:[%s12144_s1] sm:$0x3] }
   0x6   :  { %v179_v16 = vor.u32 %v177_v7, %v175_v11  ;;  %v191_v22 = vrot.slane %v189_v17, 1  ;;  %v205_v29 = vshll.u32 %v10217_v20, 16  ;;  %v199_v31 = vrot.slane %v197_v23, 1  ;;  %9915 = vmatprep.subr.msk.bf16.mxu0 %vm368_vm0, %v67_v38  ;;  %v10255_v45 = vld [vmem:[%s12143_s0 + $0x40] sm:$0xff]   ;;  %v10262_v47 = vld [vmem:[%s12143_s0 + $0x48] sm:$0xff]   ;;  %v10268_v49 = vld [vmem:[%s12143_s0 + $0x50] sm:$0xff]  }
   0x7   :  { %v170_v15 = vrot.slane %v168_v10, 1  ;;  %v187_v25 = vor.u32 %v185_v14, %v183_v19  ;;  %v213_v37 = vshll.u32 %v10231_v32, 16  ;;  %v209_v40 = vshrl.u32 %v10217_v20, 16  ;;  %v10273_v52 = vld [vmem:[%s12143_s0 + $0x58] sm:$0xff]   ;;  %v10278_v53 = vld [vmem:[%s12143_s0 + $0x60] sm:$0xff]  }
   0x8   :  { %v184_v24 = vsel %vm164_vm1, %v179_v16, %v183_v19  ;;  %v195_v33 = vor.u32 %v193_v26, %v191_v22  ;;  %v203_v34 = vor.u32 %v201_v28, %v199_v31  ;;  %v207_v35 = vrot.slane %v205_v29, 1  ;;  %v10291_v62 = vld [vmem:[%s12144_s1 + $0x4] sm:$0x3]  ;;  %v10310_v19 = vld [vmem:[%s12143_s0 + $0x70] sm:$0xff]   ;;  %v10323_v29 = vld [vmem:[%s12143_s0 + $0x78] sm:$0xff]  }
   0x9   :  { %v171_v21 = vor.u32 %v170_v15, %v166_v9  ;;  %v192_v30 = vsel %vm164_vm1, %v187_v25, %v191_v22  ;;  %v217_v41 = vshrl.u32 %v10231_v32, 16  ;;  %v221_v43 = vshll.u32 %v10237_v36, 16  ;;  %v10304_v15 = vld [vmem:[%s12143_s0 + $0x68] sm:$0xff]  }
   0xa   :  { %v200_v39 = vsel %vm164_vm1, %v195_v33, %v199_v31  ;;  %v208_v42 = vsel %vm164_vm1, %v203_v34, %v207_v35  ;;  %v10250_v44 = vsel %vm368_vm0, %v67_v38, 0  ;;  %v215_v46 = vrot.slane %v213_v37, 1 }
   0xb   :  { %v176_v27 = vsel %vm164_vm1, %v171_v21, %v175_v11  ;;  %v211_v48 = vor.u32 %v209_v40, %v207_v35  ;;  %v223_v51 = vrot.slane %v221_v43, 1  ;;  %v225_v54 = vshrl.u32 %v10237_v36, 16  ;;  %v10334_v40 = vld [vmem:[%s12143_s0 + $0x80] sm:$0xff]  }
   0xc   :  { %8482 = vmatprep.mubr.msk.bf16.mxu0 %vm313_vm2, %v176_v27  ;;  %v219_v50 = vor.u32 %v217_v41, %v215_v46  ;;  %v229_v55 = vshll.u32 %v10255_v45, 16  ;;  %v237_v57 = vshll.u32 %v10262_v47, 16  ;;  %v245_v58 = vshll.u32 %v10268_v49, 16  ;;  %v10339_v41 = vld [vmem:[%s12143_s0 + $0x88] sm:$0xff]  }
   0xd   :  { %8483 = vmatmul.mubr.msk.bf16.vlgmr.msra.gmra.mrb[0].mxu0 %vm313_vm2, %v184_v24  ;;  %v216_v56 = vsel %vm164_vm1, %v211_v48, %v215_v46  ;;  %v233_v60 = vshrl.u32 %v10255_v45, 16  ;;  %v253_v61 = vshll.u32 %v10273_v52, 16  ;;  %v261_v63 = vshll.u32 %v10278_v53, 16 }
   0xe   :  { %8486 = vmatprep.mubr.msk.bf16.mxu0 %vm313_vm2, %v192_v30  ;;  %8519 = vmatpush3.bf16.msra.mxu0 %v10250_v44  ;;  %v224_v59 = vsel %vm164_vm1, %v219_v50, %v223_v51  ;;  %v227_v0 = vor.u32 %v225_v54, %v223_v51  ;;  %v231_v1 = vrot.slane %v229_v55, 1  ;;  %v241_v6 = vshrl.u32 %v10262_v47, 16 }
   0xf   :  { %9916 = vmatprep.subr.msk.bf16.mxu0 %vm368_vm0, %v10291_v62  ;;  %v239_v7 = vrot.slane %v237_v57, 1  ;;  %v247_v9 = vrot.slane %v245_v58, 1  ;;  %v249_v10 = vshrl.u32 %v10268_v49, 16  ;;  %v257_v11 = vshrl.u32 %v10273_v52, 16 }
  0x10   :  { %v235_v13 = vor.u32 %v233_v60, %v231_v1  ;;  %v255_v14 = vrot.slane %v253_v61, 1  ;;  %v263_v16 = vrot.slane %v261_v63, 1  ;;  %v265_v17 = vshrl.u32 %v10278_v53, 16 }
  0x11   :  { %v232_v21 = vsel %vm164_vm1, %v227_v0, %v231_v1  ;;  %v269_v23 = vshll.u32 %v10304_v15, 16  ;;  %v273_v24 = vshrl.u32 %v10304_v15, 16  ;;  %v243_v25 = vor.u32 %v241_v6, %v239_v7 }
  0x12   :  { %v240_v22 = vsel %vm164_vm1, %v235_v13, %v239_v7  ;;  %v277_v26 = vshll.u32 %v10310_v19, 16  ;;  %v281_v27 = vshrl.u32 %v10310_v19, 16  ;;  %v251_v28 = vor.u32 %v249_v10, %v247_v9 }
  0x13   :  { %v248_v30 = vsel %vm164_vm1, %v243_v25, %v247_v9  ;;  %v271_v33 = vrot.slane %v269_v23, 1  ;;  %v285_v34 = vshll.u32 %v10323_v29, 16  ;;  %v259_v35 = vor.u32 %v257_v11, %v255_v14 }
  0x14   :  { %v256_v31 = vsel %vm164_vm1, %v251_v28, %v255_v14  ;;  %v279_v37 = vrot.slane %v277_v26, 1  ;;  %v289_v38 = vshrl.u32 %v10323_v29, 16  ;;  %v293_v46 = vshll.u32 %v10334_v40, 16  ;;  %v7535_v14 = vld [vmem:[%s12144_s1 + $0x6] sm:$0x3] }
  0x15   :  { %8487 = vmatmul.mubr.msk.bf16.gmra.mrb[4].mxu0 %vm313_vm2, %v200_v39  ;;  %v267_v39 = vor.u32 %v265_v17, %v263_v16  ;;  %v297_v48 = vshrl.u32 %v10334_v40, 16  ;;  %v275_v50 = vor.u32 %v273_v24, %v271_v33  ;;  %v287_v51 = vrot.slane %v285_v34, 1 }
  0x16   :  { %8490 = vmatprep.mubr.msk.bf16.mxu0 %vm313_vm2, %v208_v42  ;;  %v264_v42 = vsel %vm164_vm1, %v259_v35, %v263_v16  ;;  %v301_v54 = vshll.u32 %v10339_v41, 16  ;;  %v283_v55 = vor.u32 %v281_v27, %v279_v37  ;;  %v305_v63 = vshrl.u32 %v10339_v41, 16 }
  0x17   :  { %v272_v43 = vsel %vm164_vm1, %v267_v39, %v271_v33  ;;  %v280_v57 = vsel %vm164_vm1, %v275_v50, %v279_v37  ;;  %v291_v60 = vor.u32 %v289_v38, %v287_v51  ;;  %v10369_v13 = vsel %vm368_vm0, %v10291_v62, 0 }
  0x18   :  { %v288_v58 = vsel %vm164_vm1, %v283_v55, %v287_v51  ;;  %v303_v61 = vrot.slane %v301_v54, 1 }
  0x1a   :  { %v307_v9 = vor.u32 %v305_v63, %v303_v61 }
  0x1d   :  { %8491 = vmatmul.mubr.msk.bf16.gmra.mrb[8].mxu0 %vm313_vm2, %v216_v56  ;;  %v10351_v56 = vld [vmem:[%s12143_s0 + $0x90] ss:$0 sps:$4 sm:$0x11]  }
  0x1e   :  { %8494 = vmatprep.mubr.msk.bf16.mxu0 %vm313_vm2, %v224_v59  ;;  %v295_v59 = vrot.slane %v293_v46, 1  ;;  %v309_v0 = vshll.u32 %v10351_v56, 16 }
  0x20   :  { %v299_v1 = vor.u32 %v297_v48, %v295_v59  ;;  %v296_v6 = vsel %vm164_vm1, %v291_v60, %v295_v59  ;;  %v311_v10 = vrot.slane %v309_v0, 1 }
  0x22   :  { %v304_v7 = vsel %vm164_vm1, %v299_v1, %v303_v61  ;;  %v312_v11 = vsel %vm164_vm1, %v307_v9, %v311_v10 }
  0x25   :  { %8495 = vmatmul.mubr.msk.bf16.gmra.mrb[12].mxu0 %vm313_vm2, %v232_v21 }
  0x26   :  { %8498 = vmatprep.mubr.msk.bf16.mxu0 %vm313_vm2, %v240_v22 }
  0x2d   :  { %8499 = vmatmul.mubr.msk.bf16.gmra.mrb[16].mxu0 %vm313_vm2, %v248_v30 }
  0x2e   :  { %8502 = vmatprep.mubr.msk.bf16.mxu0 %vm313_vm2, %v256_v31 }
  0x35   :  { %8503 = vmatmul.mubr.msk.bf16.gmra.mrb[20].mxu0 %vm313_vm2, %v264_v42 }
  0x36   :  { %8506 = vmatprep.mubr.msk.bf16.mxu0 %vm313_vm2, %v272_v43 }
  0x3d   :  { %8507 = vmatmul.mubr.msk.bf16.gmra.mrb[24].mxu0 %vm313_vm2, %v280_v57 }
  0x3e   :  { %8510 = vmatprep.mubr.msk.bf16.mxu0 %vm313_vm2, %v288_v58 }
  0x45   :  { %8511 = vmatmul.mubr.msk.bf16.gmra.mrb[28].mxu0 %vm313_vm2, %v296_v6 }
  0x46   :  { %8514 = vmatprep.mubr.msk.bf16.mxu0 %vm313_vm2, %v304_v7 }
  0x4d   :  { %8515 = vmatmul.mubr.msk.bf16.gmra.mrb[32].mxu0 %vm313_vm2, %v312_v11 }
  0x4e   :  { %8520 = vmatprep.mubr.msk.bf16.mxu0 %vm313_vm2, %v10190_v5 }
  0x55   :  { %8521 = vmatmul.mubr.msk.bf16.vlgmr.msra.gmra.mrb[0].mxu0 %vm313_vm2, %v10177_v2 }
  0x56   :  { %8524 = vmatprep.mubr.msk.bf16.mxu0 %vm313_vm2, %v10197_v8  ;;  %8557 = vmatpush3.bf16.msra.mxu0 %v10369_v13 }
  0x57   :  { %9917 = vmatprep.subr.msk.bf16.mxu0 %vm368_vm0, %v7535_v14 }
  0x5d   :  { %8525 = vmatmul.mubr.msk.bf16.gmra.mrb[4].mxu0 %vm313_vm2, %v10204_v12 }
  0x5e   :  { %8528 = vmatprep.mubr.msk.bf16.mxu0 %vm313_vm2, %v10212_v18 }
  0x5f   :  { %15 = vsyncpa [#allocation5], 0  ;;  %v765_v5 = vld [vmem:[%s12143_s0] sm:$0xe]  ;;  %v773_v17 = vrot.slane %v10177_v2, 1  ;;  %vm771_vm3 = vcmask 1046528  }
  0x60   :  { %v7516_v62 = vcombine.low %v765_v5, %v10186_v4  ;;  %v775_v22 = vrot.slane %v10197_v8, 1  ;;  %v777_v4 = vrot.slane %v10204_v12, 1  ;;  %v10422_v25 = vsel %vm368_vm0, %v7535_v14, 0  ;;  %v10427_v2 = vld [vmem:[%s12144_s1 + $0x8] sm:$0x3]  ;;  %v10499_v58 = vld [vmem:[%s12143_s0 + $0x18] sm:$0xff]  }
  0x61   :  { %v779_v8 = vrot.slane %v10212_v18, 1  ;;  %v781_v12 = vrot.slane %v10217_v20, 1  ;;  %v783_v28 = vrot.slane %v10231_v32, 1  ;;  %v785_v30 = vrot.slane %v10237_v36, 1  ;;  %v1079_v48 = vld [vmem:[%s12143_s0 + $0x8] sm:$0xe] }
  0x62   :  { %v772_v16 = vrot.slane %v7516_v62, 1  ;;  %v776_v23 = vsel %vm771_vm3, %v773_v17, %v775_v22  ;;  %v778_v24 = vsel %vm771_vm3, %v775_v22, %v777_v4  ;;  %v789_v33 = vrot.slane %v10262_v47, 1  ;;  %v10505_v60 = vld [vmem:[%s12143_s0 + $0x20] sm:$0xff]   ;;  %v10515_v0 = vld [vmem:[%s12143_s0 + $0x28] sm:$0xff]   ;;  %v10521_v6 = vld [vmem:[%s12143_s0 + $0x30] sm:$0xff]  }
  0x63   :  { %v780_v26 = vsel %vm771_vm3, %v777_v4, %v779_v8  ;;  %v782_v27 = vsel %vm771_vm3, %v779_v8, %v781_v12  ;;  %v784_v18 = vsel %vm771_vm3, %v781_v12, %v783_v28  ;;  %v786_v31 = vsel %vm771_vm3, %v783_v28, %v785_v30  ;;  %v10530_v9 = vld [vmem:[%s12144_s1 + $0xa] sm:$0x3]  ;;  %v10543_v5 = vld [vmem:[%s12143_s0 + $0x38] sm:$0xff]   ;;  %v10581_v28 = vld [vmem:[%s12143_s0 + $0x60] sm:$0xff]  }
  0x64   :  { %v774_v21 = vsel %vm771_vm3, %v772_v16, %v773_v17  ;;  %v1216_v61 = vrot.slane %v10505_v60, 1  ;;  %v10525_v7 = vsel %vm368_vm0, %v10427_v2, 0  ;;  %v1218_v10 = vrot.slane %v10515_v0, 1  ;;  %v10549_v16 = vld [vmem:[%s12143_s0 + $0x40] sm:$0xff]   ;;  %v10559_v4 = vld [vmem:[%s12143_s0 + $0x48] sm:$0xff]  }
  0x65   :  { %8529 = vmatmul.mubr.msk.bf16.gmra.mrb[8].mxu0 %vm313_vm2, %v10217_v20  ;;  %v787_v20 = vrot.slane %v10255_v45, 1  ;;  %v1220_v11 = vrot.slane %v10521_v6, 1  ;;  %v1222_v17 = vrot.slane %v10543_v5, 1  ;;  %vm1524_vm4 = vsmask.f32 6400 }
  0x66   :  { %8532 = vmatprep.mubr.msk.bf16.mxu0 %vm313_vm2, %v10231_v32  ;;  %v791_v32 = vrot.slane %v10268_v49, 1  ;;  %v1219_v14 = vsel %vm771_vm3, %v1216_v61, %v1218_v10  ;;  %vm1971_vm5 = vcmask 1045504   ;;  %vm2724_vm6 = vsmask.f32 5376 }
  0x67   :  { %v788_v34 = vsel %vm771_vm3, %v785_v30, %v787_v20  ;;  %v790_v35 = vsel %vm771_vm3, %v787_v20, %v789_v33  ;;  %v1221_v62 = vsel %vm771_vm3, %v1218_v10, %v1220_v11  ;;  %v1223_v22 = vsel %vm771_vm3, %v1220_v11, %v1222_v17  ;;  %v10591_v20 = vld [vmem:[%s12143_s0 + $0x68] sm:$0xff]  }
  0x68   :  { %v792_v37 = vsel %vm771_vm3, %v789_v33, %v791_v32  ;;  %vm3171_vm7 = vcmask 1044480   ;;  %vm10119_vm8 = vmmov 0   ;;  %vm3531_vm9 = vcmask 261120  }
  0x69   :  { %vm7250_vm10 = vcmask 1040384  }
  0x6d   :  { %8533 = vmatmul.mubr.msk.bf16.gmra.mrb[12].mxu0 %vm313_vm2, %v10237_v36  ;;  %v793_v36 = vrot.slane %v10273_v52, 1 }
  0x6e   :  { %8536 = vmatprep.mubr.msk.bf16.mxu0 %vm313_vm2, %v10255_v45  ;;  %v795_v45 = vrot.slane %v10278_v53, 1 }
  0x6f   :  { %v794_v38 = vsel %vm771_vm3, %v791_v32, %v793_v36 }
  0x70   :  { %v796_v39 = vsel %vm771_vm3, %v793_v36, %v795_v45 }
  0x75   :  { %8537 = vmatmul.mubr.msk.bf16.gmra.mrb[16].mxu0 %vm313_vm2, %v10262_v47  ;;  %v797_v47 = vrot.slane %v10304_v15, 1 }
  0x76   :  { %8540 = vmatprep.mubr.msk.bf16.mxu0 %vm313_vm2, %v10268_v49  ;;  %v799_v49 = vrot.slane %v10310_v19, 1 }
  0x77   :  { %v798_v42 = vsel %vm771_vm3, %v795_v45, %v797_v47  ;;  %v10613_v45 = vld [vmem:[%s12143_s0 + $0x80] sm:$0xff]  }
  0x78   :  { %v800_v43 = vsel %vm771_vm3, %v797_v47, %v799_v49 }
  0x7d   :  { %8541 = vmatmul.mubr.msk.bf16.gmra.mrb[20].mxu0 %vm313_vm2, %v10273_v52  ;;  %v801_v52 = vrot.slane %v10323_v29, 1 }
  0x7e   :  { %8544 = vmatprep.mubr.msk.bf16.mxu0 %vm313_vm2, %v10278_v53  ;;  %v803_v53 = vrot.slane %v10334_v40, 1 }
  0x7f   :  { %v802_v46 = vsel %vm771_vm3, %v799_v49, %v801_v52  ;;  %v10623_v49 = vld [vmem:[%s12143_s0 + $0x88] sm:$0xff]  }
  0x85   :  { %8545 = vmatmul.mubr.msk.bf16.gmra.mrb[24].mxu0 %vm313_vm2, %v10304_v15  ;;  %v805_v15 = vrot.slane %v10339_v41, 1 }
  0x86   :  { %8548 = vmatprep.mubr.msk.bf16.mxu0 %vm313_vm2, %v10310_v19  ;;  %v10478_v19 = vld [vmem:[%s12143_s0 + $0xc] sm:$0xf] }
  0x87   :  { %v806_v50 = vsel %vm771_vm3, %v803_v53, %v805_v15  ;;  %v10483_v51 = vcombine.low %v1079_v48, %v10478_v19 }
  0x89   :  { %v1211_v54 = vrot.slane %v10483_v51, 1  ;;  %v1529_v48 = vshll.u32 %v10483_v51, 16 }
  0x8d   :  { %8549 = vmatmul.mubr.msk.bf16.gmra.mrb[28].mxu0 %vm313_vm2, %v10323_v29  ;;  %v804_v29 = vsel %vm771_vm3, %v801_v52, %v803_v53  ;;  %v10628_v52 = vld [vmem:[%s12143_s0 + $0x90] sm:$0xff]  }
  0x8e   :  { %8552 = vmatprep.mubr.msk.bf16.mxu0 %vm313_vm2, %v10334_v40  ;;  %v10488_v40 = vld [vmem:[%s12143_s0 + $0x10] sm:$0xff]   ;;  %v1244_v53 = vrot.slane %v10628_v52, 1 }
  0x8f   :  { %v1212_v55 = vrot.slane %v10488_v40, 1 }
  0x91   :  { %v1213_v59 = vsel %vm771_vm3, %v1211_v54, %v1212_v55 }
  0x95   :  { %8553 = vmatmul.mubr.msk.bf16.gmra.mrb[32].mxu0 %vm313_vm2, %v10339_v41  ;;  %v807_v41 = vrot.slane %v10351_v56, 1  ;;  %v1214_v56 = vrot.slane %v10499_v58, 1 }
  0x96   :  { %8558 = vmatprep.mubr.msk.bf16.mxu0 %vm313_vm2, %v774_v21  ;;  %v1224_v21 = vrot.slane %v10549_v16, 1 }
  0x97   :  { %v808_v57 = vsel %vm771_vm3, %v805_v15, %v807_v41  ;;  %v1215_v63 = vsel %vm771_vm3, %v1212_v55, %v1214_v56  ;;  %v1217_v1 = vsel %vm771_vm3, %v1214_v56, %v1216_v61  ;;  %v1526_v15 = vshrl.u32 %v10483_v51, 16  ;;  %v9975_v55 = vld [vmem:[%s12143_s0 + $0x98] ss:$0 sps:$4 sm:$0x11]  }
  0x98   :  { %v1246_v51 = vrot.slane %v9975_v55, 1 }
  0x9d   :  { %8559 = vmatmul.mubr.msk.bf16.vlgmr.msra.gmra.mrb[0].mxu0 %vm313_vm2, %v776_v23  ;;  %v1225_v23 = vsel %vm771_vm3, %v1222_v17, %v1224_v21  ;;  %v1247_v17 = vsel %vm771_vm3, %v1244_v53, %v1246_v51  ;;  %v1600_v51 = vshll.u32 %v10559_v4, 16 }
  0x9e   :  { %8562 = vmatprep.mubr.msk.bf16.mxu0 %vm313_vm2, %v778_v24  ;;  %8595 = vmatpush3.bf16.msra.mxu0 %v10422_v25  ;;  %v10565_v24 = vld [vmem:[%s12143_s0 + $0x50] sm:$0xff]  }
  0x9f   :  { %9918 = vmatprep.subr.msk.bf16.mxu0 %vm368_vm0, %v10427_v2  ;;  %v1226_v2 = vrot.slane %v10559_v4, 1  ;;  %v1228_v8 = vrot.slane %v10565_v24, 1 }
  0xa1   :  { %v1227_v12 = vsel %vm771_vm3, %v1224_v21, %v1226_v2 }
  0xa5   :  { %8563 = vmatmul.mubr.msk.bf16.gmra.mrb[4].mxu0 %vm313_vm2, %v780_v26  ;;  %v10575_v26 = vld [vmem:[%s12143_s0 + $0x58] sm:$0xff]  }
  0xa6   :  { %8566 = vmatprep.mubr.msk.bf16.mxu0 %vm313_vm2, %v782_v27  ;;  %v1229_v27 = vsel %vm771_vm3, %v1226_v2, %v1228_v8  ;;  %v1230_v30 = vrot.slane %v10575_v26, 1 }
  0xad   :  { %8567 = vmatmul.mubr.msk.bf16.gmra.mrb[8].mxu0 %vm313_vm2, %v784_v18  ;;  %v1232_v18 = vrot.slane %v10581_v28, 1 }
  0xae   :  { %8570 = vmatprep.mubr.msk.bf16.mxu0 %vm313_vm2, %v786_v31  ;;  %v1231_v31 = vsel %vm771_vm3, %v1228_v8, %v1230_v30 }
  0xaf   :  { %v1233_v33 = vsel %vm771_vm3, %v1230_v30, %v1232_v18  ;;  %v1564_v30 = vshll.u32 %v10515_v0, 16 }
  0xb5   :  { %8571 = vmatmul.mubr.msk.bf16.gmra.mrb[12].mxu0 %vm313_vm2, %v788_v34  ;;  %v10597_v34 = vld [vmem:[%s12143_s0 + $0x70] sm:$0xff]  }
  0xb6   :  { %8574 = vmatprep.mubr.msk.bf16.mxu0 %vm313_vm2, %v790_v35  ;;  %v1234_v35 = vrot.slane %v10591_v20, 1  ;;  %v1236_v32 = vrot.slane %v10597_v34, 1 }
  0xb8   :  { %v1235_v36 = vsel %vm771_vm3, %v1232_v18, %v1234_v35 }
  0xbd   :  { %8575 = vmatmul.mubr.msk.bf16.gmra.mrb[16].mxu0 %vm313_vm2, %v792_v37  ;;  %v10607_v37 = vld [vmem:[%s12143_s0 + $0x78] sm:$0xff]  }
  0xbe   :  { %8578 = vmatprep.mubr.msk.bf16.mxu0 %vm313_vm2, %v794_v38  ;;  %v1237_v38 = vsel %vm771_vm3, %v1234_v35, %v1236_v32  ;;  %v1238_v47 = vrot.slane %v10607_v37, 1 }
  0xc5   :  { %8579 = vmatmul.mubr.msk.bf16.gmra.mrb[20].mxu0 %vm313_vm2, %v796_v39  ;;  %v1240_v39 = vrot.slane %v10613_v45, 1 }
  0xc6   :  { %8582 = vmatprep.mubr.msk.bf16.mxu0 %vm313_vm2, %v798_v42  ;;  %v1239_v42 = vsel %vm771_vm3, %v1236_v32, %v1238_v47 }
  0xcd   :  { %8583 = vmatmul.mubr.msk.bf16.gmra.mrb[24].mxu0 %vm313_vm2, %v800_v43  ;;  %v1241_v43 = vsel %vm771_vm3, %v1238_v47, %v1240_v39 }
  0xce   :  { %8586 = vmatprep.mubr.msk.bf16.mxu0 %vm313_vm2, %v802_v46  ;;  %v1242_v46 = vrot.slane %v10623_v49, 1 }
  0xd0   :  { %v1243_v41 = vsel %vm771_vm3, %v1240_v39, %v1242_v46  ;;  %v1245_v54 = vsel %vm771_vm3, %v1242_v46, %v1244_v53  ;;  %v1579_v53 = vshrl.u32 %v10543_v5, 16 }
  0xd5   :  { %8587 = vmatmul.mubr.msk.bf16.gmra.mrb[28].mxu0 %vm313_vm2, %v804_v29  ;;  %v1534_v29 = vshrl.u32 %v10488_v40, 16 }
  0xd6   :  { %8590 = vmatprep.mubr.msk.bf16.mxu0 %vm313_vm2, %v806_v50  ;;  %v1537_v50 = vshll.u32 %v10488_v40, 16 }
  0xd7   :  { %v1536_v56 = vrot.slane %v1534_v29, 1  ;;  %v1591_v29 = vshll.u32 %v10549_v16, 16 }
  0xd8   :  { %v1539_v61 = vrot.slane %v1537_v50, 2 }
  0xda   :  { %v1540_v11 = vor.u32 %v1539_v61, %v1536_v56  ;;  %v1597_v61 = vshrl.u32 %v10559_v4, 16 }
  0xdd   :  { %8591 = vmatmul.mubr.msk.bf16.gmra.mrb[32].mxu0 %vm313_vm2, %v808_v57  ;;  %v1528_v57 = vrot.slane %v1526_v15, 1  ;;  %v1582_v15 = vshll.u32 %v10543_v5, 16 }
  0xde   :  { %8596 = vmatprep.mubr.msk.bf16.mxu0 %vm313_vm2, %v1213_v59  ;;  %v1531_v59 = vrot.slane %v1529_v48, 2 }
  0xe0   :  { %v1532_v10 = vor.u32 %v1531_v59, %v1528_v57  ;;  %v1593_v59 = vrot.slane %v1591_v29, 2 }
  0xe5   :  { %8597 = vmatmul.mubr.msk.bf16.vlgmr.msra.gmra.mrb[0].mxu0 %vm313_vm2, %v1215_v63  ;;  %v1543_v63 = vshrl.u32 %v10499_v58, 16 }
  0xe6   :  { %8600 = vmatprep.mubr.msk.bf16.mxu0 %vm313_vm2, %v1217_v1  ;;  %8633 = vmatpush3.bf16.msra.mxu0 %v10525_v7  ;;  %v1546_v1 = vshll.u32 %v10499_v58, 16 }
  0xe7   :  { %9919 = vmatprep.subr.msk.bf16.mxu0 %vm368_vm0, %v10530_v9  ;;  %v1545_v21 = vrot.slane %v1543_v63, 1 }
  0xed   :  { %8601 = vmatmul.mubr.msk.bf16.gmra.mrb[4].mxu0 %vm313_vm2, %v1219_v14  ;;  %v1552_v14 = vshrl.u32 %v10505_v60, 16 }
  0xee   :  { %8604 = vmatprep.mubr.msk.bf16.mxu0 %vm313_vm2, %v1221_v62  ;;  %v1555_v62 = vshll.u32 %v10505_v60, 16 }
  0xef   :  { %v1554_v2 = vrot.slane %v1552_v14, 1  ;;  %v1599_v14 = vrot.slane %v1597_v61, 1  ;;  %v1660_v61 = vshrl.u32 %v10613_v45, 16 }
  0xf0   :  { %v1557_v8 = vrot.slane %v1555_v62, 2  ;;  %v1602_v62 = vrot.slane %v1600_v51, 2  ;;  %v1663_v51 = vshll.u32 %v10613_v45, 16 }
  0xf2   :  { %v1558_v18 = vor.u32 %v1557_v8, %v1554_v2  ;;  %v1615_v2 = vshrl.u32 %v10575_v26, 16  ;;  %v1618_v8 = vshll.u32 %v10575_v26, 16 }
  0xf5   :  { %8605 = vmatmul.mubr.msk.bf16.gmra.mrb[8].mxu0 %vm313_vm2, %v1223_v22  ;;  %v1548_v22 = vrot.slane %v1546_v1, 2  ;;  %v1606_v1 = vshrl.u32 %v10565_v24, 16 }
  0xf6   :  { %8608 = vmatprep.mubr.msk.bf16.mxu0 %vm313_vm2, %v1225_v23  ;;  %v1541_v23 = vsel %vm1524_vm4, %v1532_v10, %v1540_v11  ;;  %v1609_v10 = vshll.u32 %v10565_v24, 16 }
  0xfd   :  { %8609 = vmatmul.mubr.msk.bf16.gmra.mrb[12].mxu0 %vm313_vm2, %v1227_v12  ;;  %v1549_v12 = vor.u32 %v1548_v22, %v1545_v21  ;;  %v1608_v21 = vrot.slane %v1606_v1, 1  ;;  %v1611_v22 = vrot.slane %v1609_v10, 2 }
  0xfe   :  { %8612 = vmatprep.mubr.msk.bf16.mxu0 %vm313_vm2, %v1229_v27  ;;  %v1561_v27 = vshrl.u32 %v10515_v0, 16 }
  0xff   :  { %v1550_v35 = vsel %vm1524_vm4, %v1540_v11, %v1549_v12 }
 0x100   :  { %v1563_v32 = vrot.slane %v1561_v27, 1  ;;  %v1624_v27 = vshrl.u32 %v10581_v28, 16 }
 0x105   :  { %8613 = vmatmul.mubr.msk.bf16.gmra.mrb[16].mxu0 %vm313_vm2, %v1231_v31  ;;  %v1570_v31 = vshrl.u32 %v10521_v6, 16 }
 0x106   :  { %8616 = vmatprep.mubr.msk.bf16.mxu0 %vm313_vm2, %v1233_v33  ;;  %v1573_v33 = vshll.u32 %v10521_v6, 16 }
 0x107   :  { %v1572_v47 = vrot.slane %v1570_v31, 1  ;;  %v1617_v31 = vrot.slane %v1615_v2, 1  ;;  %v1678_v2 = vshrl.u32 %v10628_v52, 16 }
 0x108   :  { %v1575_v39 = vrot.slane %v1573_v33, 2  ;;  %v1620_v33 = vrot.slane %v1618_v8, 2  ;;  %v1681_v8 = vshll.u32 %v10628_v52, 16 }
 0x10a   :  { %v1576_v48 = vor.u32 %v1575_v39, %v1572_v47  ;;  %v1633_v47 = vshrl.u32 %v10591_v20, 16  ;;  %v1636_v39 = vshll.u32 %v10591_v20, 16 }
 0x10c   :  { %v1638_v29 = vrot.slane %v1636_v39, 2  ;;  %v1965_v39 = vld [vmem:[%s12143_s0 + $0x8] sm:$0xc] }
 0x10d   :  { %8617 = vmatmul.mubr.msk.bf16.gmra.mrb[20].mxu0 %vm313_vm2, %v1235_v36  ;;  %v1566_v36 = vrot.slane %v1564_v30, 2  ;;  %v1627_v30 = vshll.u32 %v10581_v28, 16 }
 0x10e   :  { %8620 = vmatprep.mubr.msk.bf16.mxu0 %vm313_vm2, %v1237_v38  ;;  %v1559_v38 = vsel %vm1524_vm4, %v1549_v12, %v1558_v18  ;;  %v1612_v12 = vor.u32 %v1611_v22, %v1608_v21  ;;  %v1669_v21 = vshrl.u32 %v10623_v49, 16  ;;  %v1672_v22 = vshll.u32 %v10623_v49, 16 }
 0x10f   :  { %v1567_v46 = vor.u32 %v1566_v36, %v1563_v32  ;;  %v1626_v32 = vrot.slane %v1624_v27, 1  ;;  %v1629_v36 = vrot.slane %v1627_v30, 2 }
 0x110   :  { %v1671_v27 = vrot.slane %v1669_v21, 1  ;;  %v1674_v30 = vrot.slane %v1672_v22, 2 }
 0x111   :  { %v1568_v50 = vsel %vm1524_vm4, %v1558_v18, %v1567_v46  ;;  %v1577_v55 = vsel %vm1524_vm4, %v1567_v46, %v1576_v48  ;;  %v1630_v46 = vor.u32 %v1629_v36, %v1626_v32 }
 0x112   :  { %v1675_v32 = vor.u32 %v1674_v30, %v1671_v27 }
 0x115   :  { %8621 = vmatmul.mubr.msk.bf16.gmra.mrb[24].mxu0 %vm313_vm2, %v1239_v42  ;;  %v10662_v42 = vsel %vm368_vm0, %v10530_v9, 0  ;;  %v1588_v9 = vshrl.u32 %v10549_v16, 16 }
 0x116   :  { %8624 = vmatprep.mubr.msk.bf16.mxu0 %vm313_vm2, %v1241_v43  ;;  %v10667_v43 = vld [vmem:[%s12144_s1 + $0xc] sm:$0x3] }
 0x117   :  { %v1590_v57 = vrot.slane %v1588_v9, 1  ;;  %v1635_v9 = vrot.slane %v1633_v47, 1 }
 0x119   :  { %v1594_v63 = vor.u32 %v1593_v59, %v1590_v57  ;;  %v1651_v57 = vshrl.u32 %v10607_v37, 16  ;;  %v1654_v59 = vshll.u32 %v10607_v37, 16 }
 0x11b   :  { %v1653_v1 = vrot.slane %v1651_v57, 1  ;;  %v1656_v10 = vrot.slane %v1654_v59, 2  ;;  %v1975_v57 = vrot.slane %v10499_v58, 2  ;;  %v1979_v58 = vrot.slane %v10515_v0, 2 }
 0x11d   :  { %8625 = vmatmul.mubr.msk.bf16.gmra.mrb[28].mxu0 %vm313_vm2, %v1243_v41  ;;  %v1581_v41 = vrot.slane %v1579_v53, 1  ;;  %v1642_v53 = vshrl.u32 %v10597_v34, 16 }
 0x11e   :  { %8628 = vmatprep.mubr.msk.bf16.mxu0 %vm313_vm2, %v1245_v54  ;;  %v1584_v54 = vrot.slane %v1582_v15, 2  ;;  %v1645_v15 = vshll.u32 %v10597_v34, 16 }
 0x120   :  { %v1585_v56 = vor.u32 %v1584_v54, %v1581_v41  ;;  %v1644_v41 = vrot.slane %v1642_v53, 1  ;;  %v1647_v54 = vrot.slane %v1645_v15, 2 }
 0x122   :  { %v1586_v11 = vsel %vm1524_vm4, %v1576_v48, %v1585_v56 }
 0x125   :  { %8629 = vmatmul.mubr.msk.bf16.gmra.mrb[32].mxu0 %vm313_vm2, %v1247_v17  ;;  %v1595_v17 = vsel %vm1524_vm4, %v1585_v56, %v1594_v63  ;;  %v1648_v56 = vor.u32 %v1647_v54, %v1644_v41  ;;  %v1973_v41 = vrot.slane %v10488_v40, 2  ;;  %v10748_v40 = vsel %vm368_vm0, %v10667_v43, 0 }
 0x126   :  { %8634 = vmatprep.mubr.msk.bf16.mxu0 %vm313_vm2, %v1541_v23  ;;  %v1603_v23 = vor.u32 %v1602_v62, %v1599_v14  ;;  %v1662_v14 = vrot.slane %v1660_v61, 1  ;;  %v1665_v62 = vrot.slane %v1663_v51, 2  ;;  %v10753_v61 = vld [vmem:[%s12144_s1 + $0xe] sm:$0x3] }
 0x127   :  { %v1976_v59 = vsel %vm1971_vm5, %v1973_v41, %v1975_v57 }
 0x128   :  { %v1604_v18 = vsel %vm1524_vm4, %v1594_v63, %v1603_v23 }
 0x12d   :  { %8635 = vmatmul.mubr.msk.bf16.vlgmr.msra.gmra.mrb[0].mxu0 %vm313_vm2, %v1550_v35  ;;  %v1613_v35 = vsel %vm1524_vm4, %v1603_v23, %v1612_v12  ;;  %v1666_v23 = vor.u32 %v1665_v62, %v1662_v14 }
 0x12e   :  { %8638 = vmatprep.mubr.msk.bf16.mxu0 %vm313_vm2, %v1559_v38  ;;  %8671 = vmatpush3.bf16.msra.mxu0 %v10662_v42  ;;  %v1621_v38 = vor.u32 %v1620_v33, %v1617_v31  ;;  %v1680_v33 = vrot.slane %v1678_v2, 1 }
 0x12f   :  { %9920 = vmatprep.subr.msk.bf16.mxu0 %vm368_vm0, %v10667_v43 }
 0x130   :  { %v1622_v48 = vsel %vm1524_vm4, %v1612_v12, %v1621_v38 }
 0x135   :  { %8639 = vmatmul.mubr.msk.bf16.gmra.mrb[4].mxu0 %vm313_vm2, %v1568_v50  ;;  %v1631_v50 = vsel %vm1524_vm4, %v1621_v38, %v1630_v46 }
 0x136   :  { %8642 = vmatprep.mubr.msk.bf16.mxu0 %vm313_vm2, %v1577_v55  ;;  %v1639_v55 = vor.u32 %v1638_v29, %v1635_v9  ;;  %v7594_v9 = vcombine.low %v1965_v39, %v10478_v19  ;;  %v1977_v19 = vrot.slane %v10505_v60, 2  ;;  %v1981_v60 = vrot.slane %v10521_v6, 2 }
 0x137   :  { %v1987_v6 = vrot.slane %v10559_v4, 2  ;;  %v1995_v4 = vrot.slane %v10591_v20, 2  ;;  %v2003_v20 = vrot.slane %v10623_v49, 2  ;;  %v10814_v49 = vld [vmem:[%s12143_s0 + $0x18] sm:$0xff]  }
 0x138   :  { %v1640_v63 = vsel %vm1524_vm4, %v1630_v46, %v1639_v55  ;;  %v1676_v46 = vsel %vm1524_vm4, %v1666_v23, %v1675_v32  ;;  %v1980_v43 = vsel %vm1971_vm5, %v1977_v19, %v1979_v58  ;;  %v1982_v51 = vsel %vm1971_vm5, %v1979_v58, %v1981_v60 }
 0x13d   :  { %8643 = vmatmul.mubr.msk.bf16.gmra.mrb[8].mxu0 %vm313_vm2, %v1586_v11  ;;  %v1649_v11 = vsel %vm1524_vm4, %v1639_v55, %v1648_v56 }
 0x13e   :  { %8646 = vmatprep.mubr.msk.bf16.mxu0 %vm313_vm2, %v1595_v17  ;;  %v1657_v17 = vor.u32 %v1656_v10, %v1653_v1  ;;  %v1985_v1 = vrot.slane %v10549_v16, 2  ;;  %v1993_v16 = vrot.slane %v10581_v28, 2  ;;  %v2001_v28 = vrot.slane %v10613_v45, 2 }
 0x140   :  { %v1658_v12 = vsel %vm1524_vm4, %v1648_v56, %v1657_v17  ;;  %v1667_v31 = vsel %vm1524_vm4, %v1657_v17, %v1666_v23  ;;  %v1978_v56 = vsel %vm1971_vm5, %v1975_v57, %v1977_v19  ;;  %v1988_v14 = vsel %vm1971_vm5, %v1985_v1, %v1987_v6  ;;  %v10875_v57 = vld [vmem:[%s12143_s0 + $0x48] sm:$0xff]  }
 0x141   :  { %v1996_v22 = vsel %vm1971_vm5, %v1993_v16, %v1995_v4  ;;  %v2004_v45 = vsel %vm1971_vm5, %v2001_v28, %v2003_v20 }
 0x145   :  { %8647 = vmatmul.mubr.msk.bf16.gmra.mrb[12].mxu0 %vm313_vm2, %v1604_v18  ;;  %v10722_v18 = vld [vmem:[%s12143_s0 + $0x98] ss:$0 sps:$4 sm:$0x33]  }
 0x146   :  { %8650 = vmatprep.mubr.msk.bf16.mxu0 %vm313_vm2, %v1613_v35  ;;  %v1683_v35 = vrot.slane %v1681_v8, 2  ;;  %v1687_v36 = vshrl.u32 %v10722_v18, 16  ;;  %v1690_v38 = vshll.u32 %v10722_v18, 16 }
 0x148   :  { %v1684_v47 = vor.u32 %v1683_v35, %v1680_v33  ;;  %v1689_v53 = vrot.slane %v1687_v36, 1  ;;  %v1692_v15 = vrot.slane %v1690_v38, 2  ;;  %v2412_v33 = vrot.slane %v10814_v49, 2  ;;  %v10831_v38 = vld [vmem:[%s12143_s0 + $0x28] sm:$0xff]  }
 0x14a   :  { %v1693_v29 = vor.u32 %v1692_v15, %v1689_v53  ;;  %v10847_v15 = vld [vmem:[%s12143_s0 + $0x38] sm:$0xff]  }
 0x14c   :  { %v1694_v54 = vsel %vm1524_vm4, %v1684_v47, %v1693_v29 }
 0x14d   :  { %8651 = vmatmul.mubr.msk.bf16.gmra.mrb[16].mxu0 %vm313_vm2, %v1622_v48  ;;  %v1685_v48 = vsel %vm1524_vm4, %v1675_v32, %v1684_v47  ;;  %v10825_v32 = vld [vmem:[%s12143_s0 + $0x20] sm:$0xff]   ;;  %v2416_v47 = vrot.slane %v10831_v38, 2 }
 0x14e   :  { %8654 = vmatprep.mubr.msk.bf16.mxu0 %vm313_vm2, %v1631_v50  ;;  %v1972_v50 = vrot.slane %v7594_v9, 2  ;;  %v10856_v9 = vld [vmem:[%s12144_s1 + $0x10] sm:$0x3] }
 0x150   :  { %v1974_v55 = vsel %vm1971_vm5, %v1972_v50, %v1973_v41  ;;  %v2420_v50 = vrot.slane %v10847_v15, 2 }
 0x155   :  { %8655 = vmatmul.mubr.msk.bf16.gmra.mrb[20].mxu0 %vm313_vm2, %v1640_v63  ;;  %v1983_v63 = vrot.slane %v10543_v5, 2  ;;  %v1991_v5 = vrot.slane %v10575_v26, 2  ;;  %v1999_v26 = vrot.slane %v10607_v37, 2  ;;  %v10804_v37 = vld [vmem:[%s12143_s0 + $0x14] sm:$0xf] }
 0x156   :  { %8658 = vmatprep.mubr.msk.bf16.mxu0 %vm313_vm2, %v1649_v11  ;;  %v1989_v11 = vrot.slane %v10565_v24, 2  ;;  %v1997_v24 = vrot.slane %v10597_v34, 2  ;;  %v2005_v34 = vrot.slane %v10628_v52, 2  ;;  %v2007_v52 = vrot.slane %v10722_v18, 2 }
 0x157   :  { %v1984_v0 = vsel %vm1971_vm5, %v1981_v60, %v1983_v63  ;;  %v1986_v10 = vsel %vm1971_vm5, %v1983_v63, %v1985_v1  ;;  %v1994_v21 = vsel %vm1971_vm5, %v1991_v5, %v1993_v16  ;;  %v2002_v8 = vsel %vm1971_vm5, %v1999_v26, %v2001_v28  ;;  %v10891_v60 = vld [vmem:[%s12143_s0 + $0x58] sm:$0xff]   ;;  %v10901_v1 = vld [vmem:[%s12143_s0 + $0x60] sm:$0xff]  }
 0x158   :  { %v1990_v62 = vsel %vm1971_vm5, %v1987_v6, %v1989_v11  ;;  %v1992_v17 = vsel %vm1971_vm5, %v1989_v11, %v1991_v5  ;;  %v1998_v23 = vsel %vm1971_vm5, %v1995_v4, %v1997_v24  ;;  %v2000_v2 = vsel %vm1971_vm5, %v1997_v24, %v1999_v26  ;;  %v10923_v16 = vld [vmem:[%s12143_s0 + $0x78] sm:$0xff]   ;;  %v10933_v24 = vld [vmem:[%s12143_s0 + $0x80] sm:$0xff]  }
 0x159   :  { %v2006_v27 = vsel %vm1971_vm5, %v2003_v20, %v2005_v34  ;;  %v2008_v35 = vsel %vm1971_vm5, %v2005_v34, %v2007_v52  ;;  %v2414_v18 = vrot.slane %v10825_v32, 2  ;;  %v2430_v6 = vrot.slane %v10901_v1, 2  ;;  %v10954_v20 = vld [vmem:[%s12143_s0 + $0x98] sm:$0xff]  }
 0x15a   :  { %v2438_v26 = vrot.slane %v10933_v24, 2 }
 0x15b   :  { %v2415_v39 = vsel %vm1971_vm5, %v2412_v33, %v2414_v18  ;;  %v2417_v53 = vsel %vm1971_vm5, %v2414_v18, %v2416_v47  ;;  %v9996_v18 = vld [vmem:[%s12143_s0 + $0xa0] ss:$0 sps:$4 sm:$0x33]  }
 0x15d   :  { %8659 = vmatmul.mubr.msk.bf16.gmra.mrb[24].mxu0 %vm313_vm2, %v1658_v12  ;;  %v2279_v12 = vld [vmem:[%s12143_s0 + $0x10] sm:$0xc] }
 0x15e   :  { %8662 = vmatprep.mubr.msk.bf16.mxu0 %vm313_vm2, %v1667_v31  ;;  %v10809_v30 = vcombine.low %v2279_v12, %v10804_v37 }
 0x160   :  { %v2411_v31 = vrot.slane %v10809_v30, 2  ;;  %v2729_v52 = vshll.u32 %v10809_v30, 16 }
 0x162   :  { %v2413_v36 = vsel %vm1971_vm5, %v2411_v31, %v2412_v33  ;;  %v2734_v31 = vshrl.u32 %v10814_v49, 16  ;;  %v2737_v33 = vshll.u32 %v10814_v49, 16 }
 0x165   :  { %8663 = vmatmul.mubr.msk.bf16.gmra.mrb[28].mxu0 %vm313_vm2, %v1676_v46  ;;  %v10841_v46 = vld [vmem:[%s12143_s0 + $0x30] sm:$0xff]  }
 0x166   :  { %8666 = vmatprep.mubr.msk.bf16.mxu0 %vm313_vm2, %v1685_v48  ;;  %v10851_v48 = vsel %vm368_vm0, %v10753_v61, 0  ;;  %v2418_v29 = vrot.slane %v10841_v46, 2 }
 0x168   :  { %v2419_v41 = vsel %vm1971_vm5, %v2416_v47, %v2418_v29 }
 0x16d   :  { %8667 = vmatmul.mubr.msk.bf16.gmra.mrb[32].mxu0 %vm313_vm2, %v1694_v54  ;;  %v10869_v54 = vld [vmem:[%s12143_s0 + $0x40] sm:$0xff]  }
 0x16e   :  { %8672 = vmatprep.mubr.msk.bf16.mxu0 %vm313_vm2, %v1974_v55  ;;  %v2421_v55 = vsel %vm1971_vm5, %v2418_v29, %v2420_v50  ;;  %v2422_v19 = vrot.slane %v10869_v54, 2  ;;  %v2739_v29 = vrot.slane %v2737_v33, 3 }
 0x175   :  { %8673 = vmatmul.mubr.msk.bf16.vlgmr.msra.gmra.mrb[0].mxu0 %vm313_vm2, %v1976_v59  ;;  %v2424_v59 = vrot.slane %v10875_v57, 2 }
 0x176   :  { %8676 = vmatprep.mubr.msk.bf16.mxu0 %vm313_vm2, %v1978_v56  ;;  %8709 = vmatpush3.bf16.msra.mxu0 %v10748_v40  ;;  %v2423_v56 = vsel %vm1971_vm5, %v2420_v50, %v2422_v19  ;;  %v2743_v50 = vshrl.u32 %v10825_v32, 16 }
 0x177   :  { %9921 = vmatprep.subr.msk.bf16.mxu0 %vm368_vm0, %v10753_v61  ;;  %v10885_v61 = vld [vmem:[%s12143_s0 + $0x50] sm:$0xff]   ;;  %v2425_v58 = vsel %vm1971_vm5, %v2422_v19, %v2424_v59 }
 0x17d   :  { %8677 = vmatmul.mubr.msk.bf16.gmra.mrb[4].mxu0 %vm313_vm2, %v1980_v43  ;;  %v2426_v43 = vrot.slane %v10885_v61, 2 }
 0x17e   :  { %8680 = vmatprep.mubr.msk.bf16.mxu0 %vm313_vm2, %v1982_v51  ;;  %v2428_v51 = vrot.slane %v10891_v60, 2 }
 0x17f   :  { %v2427_v63 = vsel %vm1971_vm5, %v2424_v59, %v2426_v43  ;;  %v2752_v59 = vshrl.u32 %v10831_v38, 16 }
 0x185   :  { %8681 = vmatmul.mubr.msk.bf16.gmra.mrb[8].mxu0 %vm313_vm2, %v1984_v0  ;;  %v2429_v0 = vsel %vm1971_vm5, %v2426_v43, %v2428_v51  ;;  %v2745_v43 = vrot.slane %v2743_v50, 2  ;;  %v2797_v50 = vshrl.u32 %v10885_v61, 16 }
 0x186   :  { %8684 = vmatprep.mubr.msk.bf16.mxu0 %vm313_vm2, %v1986_v10  ;;  %v10907_v10 = vld [vmem:[%s12143_s0 + $0x68] sm:$0xff]  }
 0x187   :  { %v2432_v11 = vrot.slane %v10907_v10, 2 }
 0x189   :  { %v2433_v5 = vsel %vm1971_vm5, %v2430_v6, %v2432_v11 }
 0x18d   :  { %8685 = vmatmul.mubr.msk.bf16.gmra.mrb[12].mxu0 %vm313_vm2, %v1988_v14  ;;  %v2431_v14 = vsel %vm1971_vm5, %v2428_v51, %v2430_v6 }
 0x18e   :  { %8688 = vmatprep.mubr.msk.bf16.mxu0 %vm313_vm2, %v1990_v62  ;;  %v10917_v62 = vld [vmem:[%s12143_s0 + $0x70] sm:$0xff]  }
 0x195   :  { %8689 = vmatmul.mubr.msk.bf16.gmra.mrb[16].mxu0 %vm313_vm2, %v1992_v17  ;;  %v2434_v17 = vrot.slane %v10917_v62, 2 }
 0x196   :  { %8692 = vmatprep.mubr.msk.bf16.mxu0 %vm313_vm2, %v1994_v21  ;;  %v2436_v21 = vrot.slane %v10923_v16, 2 }
 0x197   :  { %v2435_v4 = vsel %vm1971_vm5, %v2432_v11, %v2434_v17 }
 0x19d   :  { %8693 = vmatmul.mubr.msk.bf16.gmra.mrb[20].mxu0 %vm313_vm2, %v1996_v22  ;;  %v2437_v22 = vsel %vm1971_vm5, %v2434_v17, %v2436_v21 }
 0x19e   :  { %8696 = vmatprep.mubr.msk.bf16.mxu0 %vm313_vm2, %v1998_v23  ;;  %v10939_v23 = vld [vmem:[%s12143_s0 + $0x88] sm:$0xff]  }
 0x19f   :  { %v2440_v28 = vrot.slane %v10939_v23, 2 }
 0x1a1   :  { %v2441_v34 = vsel %vm1971_vm5, %v2438_v26, %v2440_v28 }
 0x1a5   :  { %8697 = vmatmul.mubr.msk.bf16.gmra.mrb[24].mxu0 %vm313_vm2, %v2000_v2  ;;  %v2439_v2 = vsel %vm1971_vm5, %v2436_v21, %v2438_v26  ;;  %v2770_v21 = vshrl.u32 %v10847_v15, 16 }
 0x1a6   :  { %8700 = vmatprep.mubr.msk.bf16.mxu0 %vm313_vm2, %v2002_v8  ;;  %v10949_v8 = vld [vmem:[%s12143_s0 + $0x90] sm:$0xff]  }
 0x1a7   :  { %v2442_v12 = vrot.slane %v10949_v8, 2 }
 0x1ad   :  { %8701 = vmatmul.mubr.msk.bf16.gmra.mrb[28].mxu0 %vm313_vm2, %v2004_v45  ;;  %v2444_v45 = vrot.slane %v10954_v20, 2 }
 0x1ae   :  { %8704 = vmatprep.mubr.msk.bf16.mxu0 %vm313_vm2, %v2006_v27  ;;  %v2726_v27 = vshrl.u32 %v10809_v30, 16  ;;  %v2446_v30 = vrot.slane %v9996_v18, 2 }
 0x1b0   :  { %v2728_v47 = vrot.slane %v2726_v27, 2 }
 0x1b5   :  { %8705 = vmatmul.mubr.msk.bf16.gmra.mrb[32].mxu0 %vm313_vm2, %v2008_v35  ;;  %v2443_v35 = vsel %vm1971_vm5, %v2440_v28, %v2442_v12 }
 0x1b6   :  { %8710 = vmatprep.mubr.msk.bf16.mxu0 %vm313_vm2, %v2413_v36  ;;  %v2445_v36 = vsel %vm1971_vm5, %v2442_v12, %v2444_v45 }
 0x1bd   :  { %8711 = vmatmul.mubr.msk.bf16.vlgmr.msra.gmra.mrb[0].mxu0 %vm313_vm2, %v2415_v39  ;;  %v2731_v39 = vrot.slane %v2729_v52, 3  ;;  %v2779_v52 = vshrl.u32 %v10869_v54, 16 }
 0x1be   :  { %8714 = vmatprep.mubr.msk.bf16.mxu0 %vm313_vm2, %v2417_v53  ;;  %8747 = vmatpush3.bf16.msra.mxu0 %v10851_v48  ;;  %v2736_v53 = vrot.slane %v2734_v31, 2  ;;  %v2782_v31 = vshll.u32 %v10869_v54, 16 }
 0x1bf   :  { %9922 = vmatprep.subr.msk.bf16.mxu0 %vm368_vm0, %v10856_v9 }
 0x1c0   :  { %v2740_v19 = vor.u32 %v2739_v29, %v2736_v53 }
 0x1c5   :  { %8715 = vmatmul.mubr.msk.bf16.gmra.mrb[4].mxu0 %vm313_vm2, %v2419_v41  ;;  %v2746_v41 = vshll.u32 %v10825_v32, 16 }
 0x1c6   :  { %8718 = vmatprep.mubr.msk.bf16.mxu0 %vm313_vm2, %v2421_v55  ;;  %v2732_v55 = vor.u32 %v2731_v39, %v2728_v47  ;;  %v2784_v47 = vrot.slane %v2782_v31, 3 }
 0x1c7   :  { %v2748_v51 = vrot.slane %v2746_v41, 3  ;;  %v2800_v41 = vshll.u32 %v10885_v61, 16 }
 0x1c9   :  { %v2749_v11 = vor.u32 %v2748_v51, %v2745_v43  ;;  %v2802_v43 = vrot.slane %v2800_v41, 3 }
 0x1cd   :  { %8719 = vmatmul.mubr.msk.bf16.gmra.mrb[8].mxu0 %vm313_vm2, %v2423_v56  ;;  %v2755_v56 = vshll.u32 %v10831_v38, 16 }
 0x1ce   :  { %8722 = vmatprep.mubr.msk.bf16.mxu0 %vm313_vm2, %v2425_v58  ;;  %v2447_v58 = vsel %vm1971_vm5, %v2444_v45, %v2446_v30  ;;  %v10988_v45 = vsel %vm368_vm0, %v10856_v9, 0  ;;  %v2781_v9 = vrot.slane %v2779_v52, 2  ;;  %v2836_v52 = vshll.u32 %v10917_v62, 16 }
 0x1cf   :  { %v2757_v6 = vrot.slane %v2755_v56, 3 }
 0x1d0   :  { %v2785_v30 = vor.u32 %v2784_v47, %v2781_v9  ;;  %v2838_v9 = vrot.slane %v2836_v52, 3 }
 0x1d5   :  { %8723 = vmatmul.mubr.msk.bf16.gmra.mrb[12].mxu0 %vm313_vm2, %v2427_v63  ;;  %v2741_v63 = vsel %vm2724_vm6, %v2732_v55, %v2740_v19 }
 0x1d6   :  { %8726 = vmatprep.mubr.msk.bf16.mxu0 %vm313_vm2, %v2429_v0  ;;  %v2754_v0 = vrot.slane %v2752_v59, 2  ;;  %v2809_v59 = vshll.u32 %v10891_v60, 16 }
 0x1d8   :  { %v2758_v17 = vor.u32 %v2757_v6, %v2754_v0  ;;  %v2811_v0 = vrot.slane %v2809_v59, 3 }
 0x1dd   :  { %8727 = vmatmul.mubr.msk.bf16.gmra.mrb[16].mxu0 %vm313_vm2, %v2431_v14  ;;  %v2761_v14 = vshrl.u32 %v10841_v46, 16 }
 0x1de   :  { %8730 = vmatprep.mubr.msk.bf16.mxu0 %vm313_vm2, %v2433_v5  ;;  %v2764_v5 = vshll.u32 %v10841_v46, 16 }
 0x1df   :  { %v2763_v26 = vrot.slane %v2761_v14, 2  ;;  %v2818_v14 = vshll.u32 %v10901_v1, 16 }
 0x1e0   :  { %v2766_v28 = vrot.slane %v2764_v5, 3 }
 0x1e2   :  { %v2767_v27 = vor.u32 %v2766_v28, %v2763_v26  ;;  %v2820_v26 = vrot.slane %v2818_v14, 3 }
 0x1e4   :  { %v2768_v18 = vsel %vm2724_vm6, %v2758_v17, %v2767_v27 }
 0x1e5   :  { %8731 = vmatmul.mubr.msk.bf16.gmra.mrb[20].mxu0 %vm313_vm2, %v2435_v4  ;;  %v2773_v4 = vshll.u32 %v10847_v15, 16 }
 0x1e6   :  { %8734 = vmatprep.mubr.msk.bf16.mxu0 %vm313_vm2, %v2437_v22  ;;  %v2750_v22 = vsel %vm2724_vm6, %v2740_v19, %v2749_v11  ;;  %v2806_v19 = vshrl.u32 %v10891_v60, 16 }
 0x1e7   :  { %v2775_v12 = vrot.slane %v2773_v4, 3 }
 0x1ed   :  { %8735 = vmatmul.mubr.msk.bf16.gmra.mrb[24].mxu0 %vm313_vm2, %v2439_v2  ;;  %v2759_v2 = vsel %vm2724_vm6, %v2749_v11, %v2758_v17  ;;  %v2815_v11 = vshrl.u32 %v10901_v1, 16  ;;  %v2824_v17 = vshrl.u32 %v10907_v10, 16 }
 0x1ee   :  { %8738 = vmatprep.mubr.msk.bf16.mxu0 %vm313_vm2, %v2441_v34  ;;  %v2772_v34 = vrot.slane %v2770_v21, 2  ;;  %v2827_v21 = vshll.u32 %v10907_v10, 16 }
 0x1f0   :  { %v2776_v33 = vor.u32 %v2775_v12, %v2772_v34  ;;  %v2829_v34 = vrot.slane %v2827_v21, 3 }
 0x1f2   :  { %v2777_v39 = vsel %vm2724_vm6, %v2767_v27, %v2776_v33  ;;  %v2786_v56 = vsel %vm2724_vm6, %v2776_v33, %v2785_v30  ;;  %v2833_v27 = vshrl.u32 %v10917_v62, 16  ;;  %v2842_v33 = vshrl.u32 %v10923_v16, 16 }
 0x1f5   :  { %8739 = vmatmul.mubr.msk.bf16.gmra.mrb[28].mxu0 %vm313_vm2, %v2443_v35  ;;  %v2788_v35 = vshrl.u32 %v10875_v57, 16 }
 0x1f6   :  { %8742 = vmatprep.mubr.msk.bf16.mxu0 %vm313_vm2, %v2445_v36  ;;  %v2791_v36 = vshll.u32 %v10875_v57, 16 }
 0x1f7   :  { %v2790_v53 = vrot.slane %v2788_v35, 2  ;;  %v2845_v35 = vshll.u32 %v10923_v16, 16 }
 0x1f8   :  { %v2793_v29 = vrot.slane %v2791_v36, 3 }
 0x1fa   :  { %v2794_v55 = vor.u32 %v2793_v29, %v2790_v53  ;;  %v2847_v53 = vrot.slane %v2845_v35, 3 }
 0x1fc   :  { %v2795_v51 = vsel %vm2724_vm6, %v2785_v30, %v2794_v55  ;;  %v2851_v30 = vshrl.u32 %v10933_v24, 16 }
 0x1fd   :  { %8743 = vmatmul.mubr.msk.bf16.gmra.mrb[32].mxu0 %vm313_vm2, %v2447_v58  ;;  %v2799_v58 = vrot.slane %v2797_v50, 2  ;;  %v2854_v50 = vshll.u32 %v10933_v24, 16 }
 0x1fe   :  { %8748 = vmatprep.mubr.msk.bf16.mxu0 %vm313_vm2, %v2741_v63  ;;  %v2808_v63 = vrot.slane %v2806_v19, 2  ;;  %v2863_v19 = vshll.u32 %v10939_v23, 16 }
 0x1ff   :  { %v2803_v6 = vor.u32 %v2802_v43, %v2799_v58  ;;  %v2856_v58 = vrot.slane %v2854_v50, 3 }
 0x200   :  { %v2812_v5 = vor.u32 %v2811_v0, %v2808_v63  ;;  %v2865_v63 = vrot.slane %v2863_v19, 3 }
 0x201   :  { %v2804_v4 = vsel %vm2724_vm6, %v2794_v55, %v2803_v6  ;;  %v2860_v55 = vshrl.u32 %v10939_v23, 16 }
 0x202   :  { %v2813_v28 = vsel %vm2724_vm6, %v2803_v6, %v2812_v5  ;;  %v2869_v6 = vshrl.u32 %v10949_v8, 16 }
 0x205   :  { %8749 = vmatmul.mubr.msk.bf16.vlgmr.msra.gmra.mrb[0].mxu0 %vm313_vm2, %v2750_v22  ;;  %v2817_v22 = vrot.slane %v2815_v11, 2  ;;  %v2872_v11 = vshll.u32 %v10949_v8, 16 }
 0x206   :  { %8752 = vmatprep.mubr.msk.bf16.mxu0 %vm313_vm2, %v2759_v2  ;;  %8785 = vmatpush3.bf16.msra.mxu0 %v10988_v45  ;;  %v2826_v2 = vrot.slane %v2824_v17, 2  ;;  %v2881_v17 = vshll.u32 %v10954_v20, 16 }
 0x207   :  { %v2821_v12 = vor.u32 %v2820_v26, %v2817_v22  ;;  %v2874_v22 = vrot.slane %v2872_v11, 3  ;;  %v11041_v26 = vld [vmem:[%s12143_s0 + $0xa0] ss:$0 sps:$4 sm:$0x77]  }
 0x208   :  { %v2830_v31 = vor.u32 %v2829_v34, %v2826_v2  ;;  %v2883_v34 = vrot.slane %v2881_v17, 3  ;;  %v2890_v52 = vshll.u32 %v11041_v26, 16 }
 0x209   :  { %v2822_v36 = vsel %vm2724_vm6, %v2812_v5, %v2821_v12  ;;  %v2878_v5 = vshrl.u32 %v10954_v20, 16 }
 0x20a   :  { %v2831_v47 = vsel %vm2724_vm6, %v2821_v12, %v2830_v31 }
 0x20b   :  { %v2880_v2 = vrot.slane %v2878_v5, 2 }
 0x20d   :  { %8753 = vmatmul.mubr.msk.bf16.gmra.mrb[4].mxu0 %vm313_vm2, %v2768_v18  ;;  %v2835_v18 = vrot.slane %v2833_v27, 2  ;;  %v2887_v27 = vshrl.u32 %v11041_v26, 16 }
 0x20e   :  { %8756 = vmatprep.mubr.msk.bf16.mxu0 %vm313_vm2, %v2777_v39  ;;  %v2844_v39 = vrot.slane %v2842_v33, 2  ;;  %v3165_v33 = vld [vmem:[%s12143_s0 + $0x10] sm:$0x8] }
 0x20f   :  { %v2839_v29 = vor.u32 %v2838_v9, %v2835_v18  ;;  %v2892_v18 = vrot.slane %v2890_v52, 3 }
 0x210   :  { %v2848_v41 = vor.u32 %v2847_v53, %v2844_v39 }
 0x211   :  { %v2840_v59 = vsel %vm2724_vm6, %v2830_v31, %v2839_v29  ;;  %v2884_v31 = vor.u32 %v2883_v34, %v2880_v2 }
 0x212   :  { %v2849_v43 = vsel %vm2724_vm6, %v2839_v29, %v2848_v41  ;;  %v3173_v29 = vrot.slane %v10814_v49, 3  ;;  %v3179_v49 = vrot.slane %v10841_v46, 3  ;;  %v3187_v46 = vrot.slane %v10885_v61, 3 }
 0x213   :  { %v3195_v61 = vrot.slane %v10917_v62, 3  ;;  %v3203_v62 = vrot.slane %v10949_v8, 3  ;;  %v3515_v8 = vld [vmem:[%s12145_s2] sm:$0x7] }
 0x215   :  { %8757 = vmatmul.mubr.msk.bf16.gmra.mrb[8].mxu0 %vm313_vm2, %v2786_v56  ;;  %v2853_v56 = vrot.slane %v2851_v30, 2 }
 0x216   :  { %8760 = vmatprep.mubr.msk.bf16.mxu0 %vm313_vm2, %v2795_v51  ;;  %v2862_v51 = vrot.slane %v2860_v55, 2 }
 0x217   :  { %v2857_v0 = vor.u32 %v2856_v58, %v2853_v56 }
 0x218   :  { %v2866_v14 = vor.u32 %v2865_v63, %v2862_v51 }
 0x219   :  { %v2858_v21 = vsel %vm2724_vm6, %v2848_v41, %v2857_v0  ;;  %v3175_v41 = vrot.slane %v10825_v32, 3  ;;  %v3183_v32 = vrot.slane %v10869_v54, 3  ;;  %v3191_v54 = vrot.slane %v10901_v1, 3 }
 0x21a   :  { %v3199_v1 = vrot.slane %v10933_v24, 3  ;;  %v3207_v24 = vrot.slane %v11041_v26, 3 }
 0x21b   :  { %v3176_v55 = vsel %vm3171_vm7, %v3173_v29, %v3175_v41 }
 0x21d   :  { %8761 = vmatmul.mubr.msk.bf16.gmra.mrb[12].mxu0 %vm313_vm2, %v2804_v4  ;;  %v2871_v4 = vrot.slane %v2869_v6, 2 }
 0x21e   :  { %8764 = vmatprep.mubr.msk.bf16.mxu0 %vm313_vm2, %v2813_v28  ;;  %v2867_v28 = vsel %vm2724_vm6, %v2857_v0, %v2866_v14 }
 0x21f   :  { %v2875_v12 = vor.u32 %v2874_v22, %v2871_v4 }
 0x221   :  { %v2876_v35 = vsel %vm2724_vm6, %v2866_v14, %v2875_v12  ;;  %v2885_v9 = vsel %vm2724_vm6, %v2875_v12, %v2884_v31 }
 0x225   :  { %8765 = vmatmul.mubr.msk.bf16.gmra.mrb[16].mxu0 %vm313_vm2, %v2822_v36  ;;  %v2889_v36 = vrot.slane %v2887_v27, 2 }
 0x226   :  { %8768 = vmatprep.mubr.msk.bf16.mxu0 %vm313_vm2, %v2831_v47  ;;  %v7672_v47 = vcombine.low %v3165_v33, %v10804_v37  ;;  %v3177_v37 = vrot.slane %v10831_v38, 3  ;;  %v3185_v38 = vrot.slane %v10875_v57, 3  ;;  %v3193_v57 = vrot.slane %v10907_v10, 3 }
 0x227   :  { %v2893_v39 = vor.u32 %v2892_v18, %v2889_v36  ;;  %v3201_v10 = vrot.slane %v10939_v23, 3 }
 0x228   :  { %v3172_v53 = vrot.slane %v7672_v47, 3  ;;  %v3178_v19 = vsel %vm3171_vm7, %v3175_v41, %v3177_v37  ;;  %v3180_v56 = vsel %vm3171_vm7, %v3177_v37, %v3179_v49  ;;  %v3186_v51 = vsel %vm3171_vm7, %v3183_v32, %v3185_v38 }
 0x229   :  { %v2894_v30 = vsel %vm2724_vm6, %v2884_v31, %v2893_v39  ;;  %v3188_v63 = vsel %vm3171_vm7, %v3185_v38, %v3187_v46  ;;  %v3194_v11 = vsel %vm3171_vm7, %v3191_v54, %v3193_v57  ;;  %v3196_v14 = vsel %vm3171_vm7, %v3193_v57, %v3195_v61 }
 0x22a   :  { %v3174_v50 = vsel %vm3171_vm7, %v3172_v53, %v3173_v29  ;;  %v3204_v4 = vsel %vm3171_vm7, %v3201_v10, %v3203_v62 }
 0x22d   :  { %8769 = vmatmul.mubr.msk.bf16.gmra.mrb[20].mxu0 %vm313_vm2, %v2840_v59  ;;  %v3181_v59 = vrot.slane %v10847_v15, 3  ;;  %v3189_v15 = vrot.slane %v10891_v60, 3  ;;  %v3197_v60 = vrot.slane %v10923_v16, 3  ;;  %v3205_v16 = vrot.slane %v10954_v20, 3 }
 0x22e   :  { %8772 = vmatprep.mubr.msk.bf16.mxu0 %vm313_vm2, %v2849_v43 }
 0x22f   :  { %v3182_v58 = vsel %vm3171_vm7, %v3179_v49, %v3181_v59  ;;  %v3184_v43 = vsel %vm3171_vm7, %v3181_v59, %v3183_v32  ;;  %v3190_v0 = vsel %vm3171_vm7, %v3187_v46, %v3189_v15  ;;  %v3192_v6 = vsel %vm3171_vm7, %v3189_v15, %v3191_v54 }
 0x230   :  { %v3198_v5 = vsel %vm3171_vm7, %v3195_v61, %v3197_v60  ;;  %v3200_v17 = vsel %vm3171_vm7, %v3197_v60, %v3199_v1  ;;  %v3206_v22 = vsel %vm3171_vm7, %v3203_v62, %v3205_v16  ;;  %v3208_v23 = vsel %vm3171_vm7, %v3205_v16, %v3207_v24 }
 0x235   :  { %8773 = vmatmul.mubr.msk.bf16.gmra.mrb[24].mxu0 %vm313_vm2, %v2858_v21  ;;  %v3202_v21 = vsel %vm3171_vm7, %v3199_v1, %v3201_v10 }
 0x236   :  { %8776 = vmatprep.mubr.msk.bf16.mxu0 %vm313_vm2, %v2867_v28  ;;  %v3517_v28 = vlaneseq }
 0x238   :  { %v3518_v2 = vshrl.u32 %v3517_v28, 7 }
 0x23a   :  { %v3523_v34 = vsub.s32 1, %v3518_v2  ;;  %v3519_v20 = vsub.s32 0, %v3518_v2  ;;  %v3527_v27 = vsub.s32 2, %v3518_v2 }
 0x23c   :  { %v3524_v12 = vrot.slane %v3515_v8, %v3523_v34  ;;  %v11115_v52 = vrot.slane %v3515_v8, %v3519_v20  ;;  %v11117_v31 = vrot.slane %v3515_v8, %v3527_v27 }
 0x23d   :  { %8777 = vmatmul.mubr.msk.bf16.gmra.mrb[28].mxu0 %vm313_vm2, %v2876_v35 }
 0x23e   :  { %8780 = vmatprep.mubr.msk.bf16.mxu0 %vm313_vm2, %v2885_v9  ;;  %3598 = vmatprep.mubr.f32.mxu1 %v3524_v12 }
 0x245   :  { %8781 = vmatmul.mubr.msk.bf16.gmra.mrb[32].mxu0 %vm313_vm2, %v2894_v30 }
 0x246   :  { %8786 = vmatprep.mubr.msk.bf16.mxu0 %vm313_vm2, %v3174_v50 }
 0x24d   :  { %8787 = vmatmul.mubr.msk.bf16.vlgmr.msra.gmra.mrb[0].mxu0 %vm313_vm2, %v3176_v55 }
 0x24e   :  { %8790 = vmatprep.mubr.msk.bf16.mxu0 %vm313_vm2, %v3178_v19 }
 0x255   :  { %8791 = vmatmul.mubr.msk.bf16.gmra.mrb[4].mxu0 %vm313_vm2, %v3180_v56 }
 0x256   :  { %8794 = vmatprep.mubr.msk.bf16.mxu0 %vm313_vm2, %v3182_v58 }
 0x25d   :  { %8795 = vmatmul.mubr.msk.bf16.gmra.mrb[8].mxu0 %vm313_vm2, %v3184_v43 }
 0x25e   :  { %8798 = vmatprep.mubr.msk.bf16.mxu0 %vm313_vm2, %v3186_v51 }
 0x265   :  { %8799 = vmatmul.mubr.msk.bf16.gmra.mrb[12].mxu0 %vm313_vm2, %v3188_v63 }
 0x266   :  { %8802 = vmatprep.mubr.msk.bf16.mxu0 %vm313_vm2, %v3190_v0 }
 0x26d   :  { %8803 = vmatmul.mubr.msk.bf16.gmra.mrb[16].mxu0 %vm313_vm2, %v3192_v6 }
 0x26e   :  { %8806 = vmatprep.mubr.msk.bf16.mxu0 %vm313_vm2, %v3194_v11 }
 0x275   :  { %8807 = vmatmul.mubr.msk.bf16.gmra.mrb[20].mxu0 %vm313_vm2, %v3196_v14 }
 0x276   :  { %8810 = vmatprep.mubr.msk.bf16.mxu0 %vm313_vm2, %v3198_v5 }
 0x27d   :  { %8811 = vmatmul.mubr.msk.bf16.gmra.mrb[24].mxu0 %vm313_vm2, %v3200_v17 }
 0x27e   :  { %8814 = vmatprep.mubr.msk.bf16.mxu0 %vm313_vm2, %v3202_v21 }
 0x285   :  { %8815 = vmatmul.mubr.msk.bf16.gmra.mrb[28].mxu0 %vm313_vm2, %v3204_v4 }
 0x286   :  { %8818 = vmatprep.mubr.msk.bf16.mxu0 %vm313_vm2, %v3206_v22 }
 0x28d   :  { %8819 = vmatmul.mubr.msk.bf16.gmra.mrb[32].mxu0 %vm313_vm2, %v3208_v23 }
 0x28e   :  { %7171 = vmatprep.mubr.f32.mxu0 %v3524_v12 }
 0x320   :  { %v8788_v26 = vpop.f32.mrb[0].mxu0 }
 0x321   :  { %v3300_v33 = vpop.f32.mrb[1].mxu0  ;;  %v3481_v36 = vmax.f32 %v8788_v26, 0.0 }
 0x322   :  { %v8789_v35 = vpop.f32.mrb[2].mxu0  ;;  %v3479_v47 = vmax.f32 %v3300_v33, 0.0 }
 0x323   :  { %v3482_v18 = vmax.f32 %v8789_v35, 0.0  ;;  %v3303_v9 = vpop.f32.mrb[3].mxu0 }
 0x324   :  { %v3480_v39 = vmax.f32 %v3303_v9, 0.0 }
 0x325   :  { %v9238_v53 = vpack.c.bf16 %v3482_v18, %v3481_v36 }
 0x326   :  { %v9234_v29 = vpack.c.bf16 %v3480_v39, %v3479_v47 }
 0x328   :  { %v8792_v30 = vpop.f32.mrb[4].mxu0 }
 0x329   :  { %v3316_v50 = vpop.f32.mrb[5].mxu0  ;;  %v3485_v37 = vmax.f32 %v8792_v30, 0.0 }
 0x32a   :  { %v8793_v41 = vpop.f32.mrb[6].mxu0  ;;  %v3483_v49 = vmax.f32 %v3316_v50, 0.0 }
 0x32b   :  { %v3486_v55 = vmax.f32 %v8793_v41, 0.0  ;;  %v3319_v19 = vpop.f32.mrb[7].mxu0 }
 0x32c   :  { %v3484_v59 = vmax.f32 %v3319_v19, 0.0 }
 0x32d   :  { %v9246_v56 = vpack.c.bf16 %v3486_v55, %v3485_v37 }
 0x32e   :  { %v9242_v58 = vpack.c.bf16 %v3484_v59, %v3483_v49 }
 0x330   :  { %v8796_v32 = vpop.f32.mrb[8].mxu0 }
 0x331   :  { %v3332_v38 = vpop.f32.mrb[9].mxu0  ;;  %v3489_v51 = vmax.f32 %v8796_v32, 0.0 }
 0x332   :  { %v8797_v43 = vpop.f32.mrb[10].mxu0  ;;  %v3487_v63 = vmax.f32 %v3332_v38, 0.0 }
 0x333   :  { %v3490_v46 = vmax.f32 %v8797_v43, 0.0  ;;  %v3335_v15 = vpop.f32.mrb[11].mxu0 }
 0x334   :  { %v3488_v0 = vmax.f32 %v3335_v15, 0.0  ;;  %v11129_v15 = vld [vmem:[%s12143_s0 + $0xa8] sm:$0xf] }
 0x335   :  { %v11119_v54 = vpack.c.bf16 %v3490_v46, %v3489_v51 }
 0x336   :  { %v9250_v57 = vpack.c.bf16 %v3488_v0, %v3487_v63 }
 0x338   :  { %v8800_v6 = vpop.f32.mrb[12].mxu0 }
 0x339   :  { %v3348_v11 = vpop.f32.mrb[13].mxu0  ;;  %v3493_v60 = vmax.f32 %v8800_v6, 0.0 }
 0x33a   :  { %v8801_v61 = vpop.f32.mrb[14].mxu0  ;;  %v3491_v1 = vmax.f32 %v3348_v11, 0.0 }
 0x33b   :  { %v3494_v14 = vmax.f32 %v8801_v61, 0.0  ;;  %v3351_v5 = vpop.f32.mrb[15].mxu0 }
 0x33c   :  { %v3492_v10 = vmax.f32 %v3351_v5, 0.0 }
 0x33d   :  { %v11121_v17 = vpack.c.bf16 %v3494_v14, %v3493_v60  ;;  %v11138_v60 = vld [vmem:[%s12143_s0 + $0xac] sm:$0xff]  }
 0x33e   :  { %v9258_v21 = vpack.c.bf16 %v3492_v10, %v3491_v1 }
 0x340   :  { %v8804_v62 = vpop.f32.mrb[16].mxu0 }
 0x341   :  { %v3364_v16 = vpop.f32.mrb[17].mxu0  ;;  %v3497_v22 = vmax.f32 %v8804_v62, 0.0 }
 0x342   :  { %v8805_v4 = vpop.f32.mrb[18].mxu0  ;;  %v3495_v28 = vmax.f32 %v3364_v16, 0.0 }
 0x343   :  { %v3498_v24 = vmax.f32 %v8805_v4, 0.0  ;;  %v3367_v23 = vpop.f32.mrb[19].mxu0  ;;  %v11144_v4 = vld [vmem:[%s12143_s0 + $0xb4] sm:$0xff]  }
 0x344   :  { %v3496_v2 = vmax.f32 %v3367_v23, 0.0  ;;  %v10118_v23 = vmov 0.0|0.0  }
 0x345   :  { %v9236_v34 = vpack.c.bf16 %v3498_v24, %v3497_v22  ;;  %v3813_v22 = vshll.u32 %v11138_v60, 16 }
 0x346   :  { %v9232_v8 = vpack.c.bf16 %v3496_v2, %v3495_v28 }
 0x348   :  { %v8808_v20 = vpop.f32.mrb[20].mxu0  ;;  %9233 = vmatprep.subr.bf16.mxu1 %v9232_v8  ;;  %v3821_v8 = vshll.u32 %v11144_v4, 16 }
 0x349   :  { %v3380_v12 = vpop.f32.mrb[21].mxu0  ;;  %9235 = vmatpush3.bf16.msra.mxu1 %v9234_v29  ;;  %v3501_v26 = vmax.f32 %v8808_v20, 0.0  ;;  %v3815_v20 = vrot.slane %v3813_v22, 1 }
 0x34a   :  { %v8809_v27 = vpop.f32.mrb[22].mxu0  ;;  %9237 = vmatprep.subr.bf16.mxu1 %v9236_v34  ;;  %v3499_v36 = vmax.f32 %v3380_v12, 0.0  ;;  %v11153_v34 = vld [vmem:[%s12143_s0 + $0xbc] sm:$0xff]   ;;  %v3817_v12 = vshrl.u32 %v11138_v60, 16 }
 0x34b   :  { %v3502_v33 = vmax.f32 %v8809_v27, 0.0  ;;  %v3383_v35 = vpop.f32.mrb[23].mxu0 }
 0x34c   :  { %v3500_v18 = vmax.f32 %v3383_v35, 0.0  ;;  %v3823_v35 = vrot.slane %v3821_v8, 1 }
 0x34d   :  { %v9244_v9 = vpack.c.bf16 %v3502_v33, %v3501_v26  ;;  %9239 = vmatpush3.bf16.msra.mxu1 %v9238_v53  ;;  %v3825_v26 = vshrl.u32 %v11144_v4, 16  ;;  %v3829_v33 = vshll.u32 %v11153_v34, 16 }
 0x34e   :  { %v9240_v47 = vpack.c.bf16 %v3500_v18, %v3499_v36  ;;  %v11166_v36 = vld [vmem:[%s12143_s0 + $0xc4] sm:$0xff]   ;;  %v3819_v18 = vor.u32 %v3817_v12, %v3815_v20 }
 0x350   :  { %v8812_v39 = vpop.f32.mrb[24].mxu0  ;;  %9241 = vmatprep.subr.bf16.mxu1 %v9240_v47 }
 0x351   :  { %v3396_v30 = vpop.f32.mrb[25].mxu0  ;;  %9243 = vmatpush3.bf16.msra.mxu1 %v9242_v58  ;;  %v3505_v41 = vmax.f32 %v8812_v39, 0.0  ;;  %v7692_v58 = vld [vmem:[%s12143_s0 + $0xa4] sm:$0xf]  ;;  %v3827_v39 = vor.u32 %v3825_v26, %v3823_v35 }
 0x352   :  { %v8813_v50 = vpop.f32.mrb[26].mxu0  ;;  %9245 = vmatprep.subr.bf16.mxu1 %v9244_v9  ;;  %v3503_v29 = vmax.f32 %v3396_v30, 0.0  ;;  %v11133_v6 = vcombine.low %v7692_v58, %v11129_v15  ;;  %v10061_v9 = vld [vmem:[%s12144_s1 + $0x2] sm:$0x3]  ;;  %v3831_v30 = vrot.slane %v3829_v33, 1 }
 0x353   :  { %v3506_v37 = vmax.f32 %v8813_v50, 0.0  ;;  %v3399_v55 = vpop.f32.mrb[27].mxu0  ;;  %v11176_v50 = vld [vmem:[%s12143_s0 + $0xcc] sm:$0xff]  }
 0x354   :  { %v3504_v19 = vmax.f32 %v3399_v55, 0.0  ;;  %v3808_v5 = vshll.u32 %v11133_v6, 16  ;;  %v3806_v28 = vshrl.u32 %v11133_v6, 16  ;;  %v3833_v55 = vshrl.u32 %v11153_v34, 16 }
 0x355   :  { %v9252_v49 = vpack.c.bf16 %v3506_v37, %v3505_v41  ;;  %9247 = vmatpush3.bf16.msra.mxu1 %v9246_v56  ;;  %v3837_v41 = vshll.u32 %v11166_v36, 16  ;;  %v3824_v37 = vsel %vm164_vm1, %v3819_v18, %v3823_v35 }
 0x356   :  { %v9248_v59 = vpack.c.bf16 %v3504_v19, %v3503_v29  ;;  %v3810_v2 = vrot.slane %v3808_v5, 1  ;;  %v3832_v29 = vsel %vm164_vm1, %v3827_v39, %v3831_v30  ;;  %v3841_v19 = vshrl.u32 %v11166_v36, 16 }
 0x358   :  { %v8816_v32 = vpop.f32.mrb[28].mxu0  ;;  %9249 = vmatprep.subr.bf16.mxu1 %v9248_v59  ;;  %v3811_v27 = vor.u32 %v3810_v2, %v3806_v28  ;;  %v10062_v59 = vld [vmem:[%s12144_s1] sm:$0x3]  ;;  %v11237_v2 = vld [vmem:[%s12143_s0 + $0xf4] sm:$0xff]  }
 0x359   :  { %v3412_v38 = vpop.f32.mrb[29].mxu0  ;;  %9251 = vmatpush3.bf16.msra.mxu1 %v9250_v57  ;;  %v3509_v43 = vmax.f32 %v8816_v32, 0.0  ;;  %v11196_v32 = vld [vmem:[%s12143_s0 + $0xd4] sm:$0xff]   ;;  %v3885_v26 = vshll.u32 %v11237_v2, 16 }
 0x35a   :  { %v8817_v53 = vpop.f32.mrb[30].mxu0  ;;  %9253 = vmatprep.subr.bf16.mxu1 %v9252_v49  ;;  %v3507_v56 = vmax.f32 %v3412_v38, 0.0  ;;  %v3816_v47 = vsel %vm164_vm1, %v3811_v27, %v3815_v20  ;;  %v3845_v49 = vshll.u32 %v11176_v50, 16  ;;  %v3835_v38 = vor.u32 %v3833_v55, %v3831_v30  ;;  %v11243_v27 = vld [vmem:[%s12143_s0 + $0xfc] sm:$0xff]   ;;  %v11255_v30 = vld [vmem:[%s12143_s0 + $0x104] sm:$0xff]  }
 0x35b   :  { %v3510_v51 = vmax.f32 %v8817_v53, 0.0  ;;  %v3415_v46 = vpop.f32.mrb[31].mxu0  ;;  %v3887_v39 = vrot.slane %v3885_v26, 1 }
 0x35c   :  { %v3508_v63 = vmax.f32 %v3415_v46, 0.0  ;;  %v3847_v58 = vrot.slane %v3845_v49, 1  ;;  %v3853_v46 = vshll.u32 %v11196_v32, 16 }
 0x35d   :  { %v9260_v0 = vpack.c.bf16 %v3510_v51, %v3509_v43  ;;  %9255 = vmatpush3.bf16.msra.mxu1 %v11119_v54  ;;  %v11203_v43 = vld [vmem:[%s12143_s0 + $0xdc] sm:$0xff]   ;;  %v10063_v51 = vld [vmem:[%s12144_s1 + $0x4] sm:$0x3] }
 0x35e   :  { %v9256_v57 = vpack.c.bf16 %v3508_v63, %v3507_v56  ;;  %v3849_v63 = vshrl.u32 %v11176_v50, 16 }
 0x360   :  { %v8820_v11 = vpop.f32.mrb[32].mxu0  ;;  %9257 = vmatprep.subr.bf16.mxu1 %v9256_v57  ;;  %v3861_v57 = vshll.u32 %v11203_v43, 16 }
 0x361   :  { %v3428_v61 = vpop.f32.mrb[33].mxu0  ;;  %9259 = vmatpush3.bf16.msra.mxu1 %v9258_v21  ;;  %v3513_v1 = vmax.f32 %v8820_v11, 0.0  ;;  %v3855_v11 = vrot.slane %v3853_v46, 1 }
 0x362   :  { %v8821_v14 = vpop.f32.mrb[34].mxu0  ;;  %9261 = vmatprep.subr.bf16.mxu1 %v9260_v0  ;;  %v3511_v62 = vmax.f32 %v3428_v61, 0.0  ;;  %v3857_v0 = vshrl.u32 %v11196_v32, 16  ;;  %v11219_v61 = vld [vmem:[%s12143_s0 + $0xe4] sm:$0xff]  }
 0x363   :  { %v3514_v10 = vmax.f32 %v8821_v14, 0.0  ;;  %v3431_v54 = vpop.f32.mrb[35].mxu0  ;;  %v3851_v14 = vor.u32 %v3849_v63, %v3847_v58  ;;  %v3873_v22 = vshrl.u32 %v11219_v61, 16 }
 0x364   :  { %v3512_v16 = vmax.f32 %v3431_v54, 0.0  ;;  %v3859_v5 = vor.u32 %v3857_v0, %v3855_v11  ;;  %v3869_v54 = vshll.u32 %v11219_v61, 16 }
 0x365   :  { %v9268_v21 = vpack.c.bf16 %v3514_v10, %v3513_v1  ;;  %9263 = vmatpush3.bf16.msra.mxu1 %v11121_v17  ;;  %v10120_v17 = vmov 0.0   ;;  %v3863_v1 = vrot.slane %v3861_v57, 1  ;;  %v11225_v10 = vld [vmem:[%s12143_s0 + $0xec] sm:$0xff]  }
 0x366   :  { %v9265_v24 = vpack.c.bf16 %v3512_v16, %v3511_v62  ;;  %9264 = vmatprep.subr.bf16.mxu1 %v10118_v23  ;;  %v3856_v62 = vsel %vm164_vm1, %v3851_v14, %v3855_v11  ;;  %v3865_v16 = vshrl.u32 %v11203_v43, 16  ;;  %v3871_v28 = vrot.slane %v3869_v54, 1 }
 0x367   :  { %v3881_v35 = vshrl.u32 %v11225_v10, 16 }
 0x368   :  { %3599 = vmatmul.mubr.f32.vlgmr.msra.gmra.mrb[0].mxu1 %v11115_v52  ;;  %v3867_v8 = vor.u32 %v3865_v16, %v3863_v1  ;;  %v3875_v20 = vor.u32 %v3873_v22, %v3871_v28 }
 0x369   :  { %9266 = vmatpush3.bf16.msra.mxu1 %v9265_v24  ;;  %8830 = vmatprep.mubr.msk.f32.mxu1 %vm10119_vm8, %v10120_v17  ;;  %v3877_v24 = vshll.u32 %v11225_v10, 16 }
 0x36a   :  { %9267 = vmatprep.subr.bf16.mxu1 %v10118_v23  ;;  %v3872_v33 = vsel %vm164_vm1, %v3867_v8, %v3871_v28 }
 0x36b   :  { %v3879_v12 = vrot.slane %v3877_v24, 1  ;;  %v11297_v24 = vld [vmem:[%s12143_s0 + $0x12c] sm:$0xff]  }
 0x36d   :  { %9269 = vmatpush3.bf16.msra.mxu1 %v9268_v21  ;;  %v3864_v21 = vsel %vm164_vm1, %v3859_v5, %v3863_v1  ;;  %v3880_v18 = vsel %vm164_vm1, %v3875_v20, %v3879_v12 }
 0x36e   :  { %9923 = vmatprep.subr.msk.bf16.mxu1 %vm368_vm0, %v10061_v9  ;;  %v3889_v9 = vshrl.u32 %v11237_v2, 16 }
 0x370   :  { %8831 = vmatmul.mubr.msk.f32.vlgmr.msra.gmra.mrb[2].mxu1 %vm3531_vm9, %v11117_v31 }
 0x371   :  { %8834 = vmatpush3.bf16.msra.mxu1 %v10181_v3  ;;  %8835 = vmatprep.mubr.msk.bf16.mxu1 %vm313_vm2, %v3816_v47  ;;  %v3839_v3 = vrot.slane %v3837_v41, 1  ;;  %v3893_v47 = vshll.u32 %v11243_v27, 16  ;;  %v3883_v41 = vor.u32 %v3881_v35, %v3879_v12 }
 0x372   :  { %9924 = vmatprep.subr.msk.bf16.mxu1 %vm368_vm0, %v10062_v59  ;;  %v3897_v59 = vshrl.u32 %v11243_v27, 16 }
 0x373   :  { %v3843_v53 = vor.u32 %v3841_v19, %v3839_v3  ;;  %v3840_v56 = vsel %vm164_vm1, %v3835_v38, %v3839_v3  ;;  %v3895_v55 = vrot.slane %v3893_v47, 1  ;;  %v3901_v19 = vshll.u32 %v11255_v30, 16 }
 0x374   :  { %8836 = vmatmul.mubr.msk.bf16.vlgmr.msra.gmra.mrb[4].mxu1 %vm313_vm2, %v3824_v37  ;;  %v3891_v37 = vor.u32 %v3889_v9, %v3887_v39  ;;  %v3888_v49 = vsel %vm164_vm1, %v3883_v41, %v3887_v39  ;;  %v3905_v38 = vshrl.u32 %v11255_v30, 16  ;;  %v11310_v9 = vld [vmem:[%s12143_s0 + $0x134] ss:$0 sps:$4 sm:$0x11]  }
 0x375   :  { %8839 = vmatprep.mubr.msk.bf16.mxu1 %vm313_vm2, %v3832_v29  ;;  %8872 = vmatpush3.bf16.msra.mxu1 %v10250_v44  ;;  %v3848_v44 = vsel %vm164_vm1, %v3843_v53, %v3847_v58  ;;  %v11261_v29 = vld [vmem:[%s12143_s0 + $0x10c] sm:$0xff]   ;;  %v3903_v58 = vrot.slane %v3901_v19, 1  ;;  %v3899_v46 = vor.u32 %v3897_v59, %v3895_v55 }
 0x376   :  { %9925 = vmatprep.subr.msk.bf16.mxu1 %vm368_vm0, %v10063_v51  ;;  %v3896_v3 = vsel %vm164_vm1, %v3891_v37, %v3895_v55  ;;  %v3909_v53 = vshll.u32 %v11261_v29, 16  ;;  %v11273_v51 = vld [vmem:[%s12143_s0 + $0x114] sm:$0xff]   ;;  %v3913_v11 = vshrl.u32 %v11261_v29, 16  ;;  %v3945_v37 = vshrl.u32 %v11297_v24, 16 }
 0x377   :  { %v3917_v0 = vshll.u32 %v11273_v51, 16  ;;  %v3904_v57 = vsel %vm164_vm1, %v3899_v46, %v3903_v58  ;;  %v3921_v5 = vshrl.u32 %v11273_v51, 16  ;;  %v3949_v55 = vshll.u32 %v11310_v9, 16 }
 0x378   :  { %v3911_v63 = vrot.slane %v3909_v53, 1 }
 0x379   :  { %v3919_v54 = vrot.slane %v3917_v0, 1  ;;  %v3951_v59 = vrot.slane %v3949_v55, 1 }
 0x37a   :  { %v3915_v16 = vor.u32 %v3913_v11, %v3911_v63 }
 0x37c   :  { %8840 = vmatmul.mubr.msk.bf16.gmra.mrb[8].mxu1 %vm313_vm2, %v3840_v56  ;;  %v3907_v56 = vor.u32 %v3905_v38, %v3903_v58  ;;  %v3920_v8 = vsel %vm164_vm1, %v3915_v16, %v3919_v54  ;;  %v10064_v38 = vld [vmem:[%s12144_s1 + $0x6] sm:$0x3]  ;;  %v4402_v58 = vrot.slane %v11138_v60, 1 }
 0x37d   :  { %8843 = vmatprep.mubr.msk.bf16.mxu1 %vm313_vm2, %v3848_v44  ;;  %v11279_v44 = vld [vmem:[%s12143_s0 + $0x11c] sm:$0xff]  }
 0x37e   :  { %v3912_v14 = vsel %vm164_vm1, %v3907_v56, %v3911_v63  ;;  %v3925_v1 = vshll.u32 %v11279_v44, 16  ;;  %v3929_v20 = vshrl.u32 %v11279_v44, 16  ;;  %v4404_v56 = vrot.slane %v11144_v4, 1 }
 0x380   :  { %v3927_v22 = vrot.slane %v3925_v1, 1  ;;  %v4405_v63 = vsel %vm771_vm3, %v4402_v58, %v4404_v56  ;;  %v4418_v1 = vrot.slane %v11225_v10, 1 }
 0x384   :  { %8844 = vmatmul.mubr.msk.bf16.gmra.mrb[12].mxu1 %vm313_vm2, %v3856_v62  ;;  %v11291_v62 = vld [vmem:[%s12143_s0 + $0x124] sm:$0xff]  }
 0x385   :  { %8847 = vmatprep.mubr.msk.bf16.mxu1 %vm313_vm2, %v3864_v21  ;;  %v3923_v21 = vor.u32 %v3921_v5, %v3919_v54  ;;  %v3933_v28 = vshll.u32 %v11291_v62, 16  ;;  %v3937_v26 = vshrl.u32 %v11291_v62, 16  ;;  %v4416_v5 = vrot.slane %v11219_v61, 1 }
 0x387   :  { %v3928_v12 = vsel %vm164_vm1, %v3923_v21, %v3927_v22  ;;  %v3935_v35 = vrot.slane %v3933_v28, 1  ;;  %v4419_v16 = vsel %vm771_vm3, %v4416_v5, %v4418_v1 }
 0x389   :  { %v3939_v47 = vor.u32 %v3937_v26, %v3935_v35  ;;  %v7804_v26 = vld [vmem:[%s12143_s0 + $0xac] sm:$0xe] }
 0x38c   :  { %8848 = vmatmul.mubr.msk.bf16.gmra.mrb[16].mxu1 %vm313_vm2, %v3872_v33  ;;  %v3941_v33 = vshll.u32 %v11297_v24, 16 }
 0x38d   :  { %8851 = vmatprep.mubr.msk.bf16.mxu1 %vm313_vm2, %v3880_v18  ;;  %v3931_v18 = vor.u32 %v3929_v20, %v3927_v22 }
 0x38e   :  { %v3943_v39 = vrot.slane %v3941_v33, 1 }
 0x38f   :  { %v3936_v41 = vsel %vm164_vm1, %v3931_v18, %v3935_v35 }
 0x390   :  { %v3944_v19 = vsel %vm164_vm1, %v3939_v47, %v3943_v39 }
 0x394   :  { %8852 = vmatmul.mubr.msk.bf16.gmra.mrb[20].mxu1 %vm313_vm2, %v3888_v49  ;;  %v3947_v49 = vor.u32 %v3945_v37, %v3943_v39  ;;  %v4436_v39 = vrot.slane %v11310_v9, 1 }
 0x395   :  { %8855 = vmatprep.mubr.msk.bf16.mxu1 %vm313_vm2, %v3896_v3 }
 0x396   :  { %v3952_v3 = vsel %vm164_vm1, %v3947_v49, %v3951_v59  ;;  %v11450_v59 = vld [vmem:[%s12143_s0 + $0xc4] sm:$0xff]  }
 0x39c   :  { %8856 = vmatmul.mubr.msk.bf16.gmra.mrb[24].mxu1 %vm313_vm2, %v3904_v57  ;;  %v4410_v57 = vrot.slane %v11176_v50, 1 }
 0x39d   :  { %8859 = vmatprep.mubr.msk.bf16.mxu1 %vm313_vm2, %v3912_v14 }
 0x3a4   :  { %8860 = vmatmul.mubr.msk.bf16.gmra.mrb[28].mxu1 %vm313_vm2, %v3920_v8 }
 0x3a5   :  { %8863 = vmatprep.mubr.msk.bf16.mxu1 %vm313_vm2, %v3928_v12 }
 0x3ac   :  { %8864 = vmatmul.mubr.msk.bf16.gmra.mrb[32].mxu1 %vm313_vm2, %v3936_v41 }
 0x3ad   :  { %8867 = vmatprep.mubr.msk.bf16.mxu1 %vm313_vm2, %v3944_v19  ;;  %v11444_v19 = vld [vmem:[%s12143_s0 + $0xbc] sm:$0xff]  }
 0x3b4   :  { %8868 = vmatmul.mubr.msk.bf16.gmra.mrb[36].mxu1 %vm313_vm2, %v3952_v3 }
 0x3b5   :  { %8873 = vmatprep.mubr.msk.bf16.mxu1 %vm313_vm2, %v11133_v6 }
 0x3bc   :  { %8874 = vmatmul.mubr.msk.bf16.vlgmr.msra.gmra.mrb[4].mxu1 %vm313_vm2, %v11138_v60  ;;  %v4408_v60 = vrot.slane %v11166_v36, 1 }
 0x3bd   :  { %8877 = vmatprep.mubr.msk.bf16.mxu1 %vm313_vm2, %v11144_v4  ;;  %8910 = vmatpush3.bf16.msra.mxu1 %v10369_v13  ;;  %v7784_v13 = vld [vmem:[%s12143_s0 + $0xa4] sm:$0xe]  ;;  %v10065_v4 = vld [vmem:[%s12144_s1 + $0x8] sm:$0x3] }
 0x3be   :  { %9926 = vmatprep.subr.msk.bf16.mxu1 %vm368_vm0, %v10064_v38  ;;  %v7785_v6 = vcombine.low %v7784_v13, %v11129_v15  ;;  %v4406_v15 = vrot.slane %v11153_v34, 1  ;;  %v4411_v11 = vsel %vm771_vm3, %v4408_v60, %v4410_v57  ;;  %v4838_v13 = vrot.slane %v11444_v19, 1 }
 0x3c0   :  { %v4401_v53 = vrot.slane %v7785_v6, 1  ;;  %v4407_v0 = vsel %vm771_vm3, %v4404_v56, %v4406_v15  ;;  %v4840_v6 = vrot.slane %v11450_v59, 1  ;;  %v11468_v56 = vld [vmem:[%s12143_s0 + $0xd4] sm:$0xff]  }
 0x3c2   :  { %v4403_v46 = vsel %vm771_vm3, %v4401_v53, %v4402_v58  ;;  %v11462_v58 = vld [vmem:[%s12143_s0 + $0xcc] sm:$0xff]  }
 0x3c4   :  { %8878 = vmatmul.mubr.msk.bf16.gmra.mrb[8].mxu1 %vm313_vm2, %v11153_v34  ;;  %v4409_v34 = vsel %vm771_vm3, %v4406_v15, %v4408_v60  ;;  %v4842_v15 = vrot.slane %v11462_v58, 1 }
 0x3c5   :  { %8881 = vmatprep.mubr.msk.bf16.mxu1 %vm313_vm2, %v11166_v36  ;;  %v4412_v36 = vrot.slane %v11196_v32, 1 }
 0x3c6   :  { %v4843_v60 = vsel %vm771_vm3, %v4840_v6, %v4842_v15 }
 0x3cc   :  { %8882 = vmatmul.mubr.msk.bf16.gmra.mrb[12].mxu1 %vm313_vm2, %v11176_v50  ;;  %v4413_v50 = vsel %vm771_vm3, %v4410_v57, %v4412_v36  ;;  %v11483_v57 = vld [vmem:[%s12143_s0 + $0xdc] sm:$0xff]  }
 0x3cd   :  { %8885 = vmatprep.mubr.msk.bf16.mxu1 %vm313_vm2, %v11196_v32  ;;  %v4420_v32 = vrot.slane %v11237_v2, 1 }
 0x3cf   :  { %v4421_v21 = vsel %vm771_vm3, %v4418_v1, %v4420_v32 }
 0x3d4   :  { %8886 = vmatmul.mubr.msk.bf16.gmra.mrb[16].mxu1 %vm313_vm2, %v11203_v43 }
 0x3d5   :  { %8889 = vmatprep.mubr.msk.bf16.mxu1 %vm313_vm2, %v11219_v61  ;;  %v4424_v61 = vrot.slane %v11255_v30, 1 }
 0x3dc   :  { %8890 = vmatmul.mubr.msk.bf16.gmra.mrb[20].mxu1 %vm313_vm2, %v11225_v10  ;;  %v4426_v10 = vrot.slane %v11261_v29, 1 }
 0x3dd   :  { %8893 = vmatprep.mubr.msk.bf16.mxu1 %vm313_vm2, %v11237_v2  ;;  %v4428_v2 = vrot.slane %v11273_v51, 1 }
 0x3de   :  { %v4427_v8 = vsel %vm771_vm3, %v4424_v61, %v4426_v10 }
 0x3df   :  { %v4429_v20 = vsel %vm771_vm3, %v4426_v10, %v4428_v2  ;;  %v11531_v10 = vld [vmem:[%s12143_s0 + $0x10c] sm:$0xff]  }
 0x3e4   :  { %8894 = vmatmul.mubr.msk.bf16.gmra.mrb[24].mxu1 %vm313_vm2, %v11243_v27 }
 0x3e5   :  { %8897 = vmatprep.mubr.msk.bf16.mxu1 %vm313_vm2, %v11255_v30  ;;  %v4432_v30 = vrot.slane %v11291_v62, 1 }
 0x3ec   :  { %8898 = vmatmul.mubr.msk.bf16.gmra.mrb[28].mxu1 %vm313_vm2, %v11261_v29  ;;  %v4434_v29 = vrot.slane %v11297_v24, 1 }
 0x3ed   :  { %8901 = vmatprep.mubr.msk.bf16.mxu1 %vm313_vm2, %v11273_v51  ;;  %v11423_v51 = vld [vmem:[%s12143_s0 + $0xb0] sm:$0xf] }
 0x3ee   :  { %v4435_v33 = vsel %vm771_vm3, %v4432_v30, %v4434_v29  ;;  %v11428_v35 = vcombine.low %v7804_v26, %v11423_v51  ;;  %v4437_v55 = vsel %vm771_vm3, %v4434_v29, %v4436_v39  ;;  %v11553_v29 = vld [vmem:[%s12143_s0 + $0x124] sm:$0xff]  }
 0x3f0   :  { %v4835_v41 = vrot.slane %v11428_v35, 1 }
 0x3f4   :  { %8902 = vmatmul.mubr.msk.bf16.gmra.mrb[32].mxu1 %vm313_vm2, %v11279_v44 }
 0x3f5   :  { %8905 = vmatprep.mubr.msk.bf16.mxu1 %vm313_vm2, %v11291_v62  ;;  %v11433_v62 = vld [vmem:[%s12143_s0 + $0xb4] sm:$0xff]  }
 0x3f6   :  { %v4836_v37 = vrot.slane %v11433_v62, 1 }
 0x3f8   :  { %v4837_v49 = vsel %vm771_vm3, %v4835_v41, %v4836_v37  ;;  %v4839_v53 = vsel %vm771_vm3, %v4836_v37, %v4838_v13  ;;  %v5144_v37 = vshrl.u32 %v11428_v35, 16 }
 0x3fc   :  { %8906 = vmatmul.mubr.msk.bf16.gmra.mrb[36].mxu1 %vm313_vm2, %v11297_v24 }
 0x3fd   :  { %8911 = vmatprep.mubr.msk.bf16.mxu1 %vm313_vm2, %v4403_v46  ;;  %v4841_v46 = vsel %vm771_vm3, %v4838_v13, %v4840_v6  ;;  %v10037_v6 = vld [vmem:[%s12143_s0 + $0x13c] ss:$0 sps:$4 sm:$0x11]  }
 0x404   :  { %8912 = vmatmul.mubr.msk.bf16.vlgmr.msra.gmra.mrb[4].mxu1 %vm313_vm2, %v4405_v63  ;;  %v4844_v63 = vrot.slane %v11468_v56, 1 }
 0x405   :  { %8915 = vmatprep.mubr.msk.bf16.mxu1 %vm313_vm2, %v4407_v0  ;;  %8948 = vmatpush3.bf16.msra.mxu1 %v10422_v25  ;;  %v4414_v25 = vrot.slane %v11203_v43, 1  ;;  %v4422_v43 = vrot.slane %v11243_v27, 1  ;;  %v4430_v27 = vrot.slane %v11279_v44, 1  ;;  %v10066_v0 = vld [vmem:[%s12144_s1 + $0xa] sm:$0x3] }
 0x406   :  { %9927 = vmatprep.subr.msk.bf16.mxu1 %vm368_vm0, %v10065_v4  ;;  %v4845_v4 = vsel %vm771_vm3, %v4842_v15, %v4844_v63 }
 0x407   :  { %v4415_v14 = vsel %vm771_vm3, %v4412_v36, %v4414_v25  ;;  %v4417_v54 = vsel %vm771_vm3, %v4414_v25, %v4416_v5  ;;  %v4423_v22 = vsel %vm771_vm3, %v4420_v32, %v4422_v43  ;;  %v4425_v28 = vsel %vm771_vm3, %v4422_v43, %v4424_v61  ;;  %v11499_v25 = vld [vmem:[%s12143_s0 + $0xec] sm:$0xff]   ;;  %v11521_v43 = vld [vmem:[%s12143_s0 + $0x104] sm:$0xff]  }
 0x408   :  { %v4431_v12 = vsel %vm771_vm3, %v4428_v2, %v4430_v27  ;;  %v4433_v44 = vsel %vm771_vm3, %v4430_v27, %v4432_v30  ;;  %v4850_v5 = vrot.slane %v11499_v25, 1  ;;  %v4858_v2 = vrot.slane %v11531_v10, 1 }
 0x40c   :  { %8916 = vmatmul.mubr.msk.bf16.gmra.mrb[8].mxu1 %vm313_vm2, %v4409_v34  ;;  %v4846_v34 = vrot.slane %v11483_v57, 1 }
 0x40d   :  { %8919 = vmatprep.mubr.msk.bf16.mxu1 %vm313_vm2, %v4411_v11 }
 0x40e   :  { %v4847_v36 = vsel %vm771_vm3, %v4844_v63, %v4846_v34 }
 0x414   :  { %8920 = vmatmul.mubr.msk.bf16.gmra.mrb[12].mxu1 %vm313_vm2, %v4413_v50 }
 0x415   :  { %8923 = vmatprep.mubr.msk.bf16.mxu1 %vm313_vm2, %v4415_v14  ;;  %v11505_v14 = vld [vmem:[%s12143_s0 + $0xf4] sm:$0xff]  }
 0x416   :  { %v4852_v1 = vrot.slane %v11505_v14, 1 }
 0x418   :  { %v4853_v32 = vsel %vm771_vm3, %v4850_v5, %v4852_v1 }
 0x41c   :  { %8924 = vmatmul.mubr.msk.bf16.gmra.mrb[16].mxu1 %vm313_vm2, %v4417_v54 }
 0x41d   :  { %8927 = vmatprep.mubr.msk.bf16.mxu1 %vm313_vm2, %v4419_v16  ;;  %v11515_v16 = vld [vmem:[%s12143_s0 + $0xfc] sm:$0xff]  }
 0x424   :  { %8928 = vmatmul.mubr.msk.bf16.gmra.mrb[20].mxu1 %vm313_vm2, %v4421_v21  ;;  %v4854_v21 = vrot.slane %v11515_v16, 1 }
 0x425   :  { %8931 = vmatprep.mubr.msk.bf16.mxu1 %vm313_vm2, %v4423_v22  ;;  %v4856_v22 = vrot.slane %v11521_v43, 1 }
 0x426   :  { %v4855_v61 = vsel %vm771_vm3, %v4852_v1, %v4854_v21 }
 0x42c   :  { %8932 = vmatmul.mubr.msk.bf16.gmra.mrb[24].mxu1 %vm313_vm2, %v4425_v28  ;;  %v4857_v28 = vsel %vm771_vm3, %v4854_v21, %v4856_v22 }
 0x42d   :  { %8935 = vmatprep.mubr.msk.bf16.mxu1 %vm313_vm2, %v4427_v8  ;;  %v11537_v8 = vld [vmem:[%s12143_s0 + $0x114] sm:$0xff]  }
 0x42e   :  { %v4860_v27 = vrot.slane %v11537_v8, 1 }
 0x430   :  { %v4861_v30 = vsel %vm771_vm3, %v4858_v2, %v4860_v27 }
 0x434   :  { %8936 = vmatmul.mubr.msk.bf16.gmra.mrb[28].mxu1 %vm313_vm2, %v4429_v20  ;;  %v4859_v20 = vsel %vm771_vm3, %v4856_v22, %v4858_v2 }
 0x435   :  { %8939 = vmatprep.mubr.msk.bf16.mxu1 %vm313_vm2, %v4431_v12  ;;  %v11547_v12 = vld [vmem:[%s12143_s0 + $0x11c] sm:$0xff]  }
 0x436   :  { %v4862_v26 = vrot.slane %v11547_v12, 1 }
 0x43b   :  { %v8239_v24 = vpop.f32.mrb[0].mxu1 }
 0x43c   :  { %v8240_v18 = vpop.f32.mrb[1].mxu1  ;;  %8940 = vmatmul.mubr.msk.bf16.gmra.mrb[32].mxu1 %vm313_vm2, %v4433_v44  ;;  %v4864_v44 = vrot.slane %v11553_v29, 1 }
 0x43d   :  { %v8241_v47 = vadd.f32 %v8240_v18, %v8239_v24  ;;  %8943 = vmatprep.mubr.msk.bf16.mxu1 %vm313_vm2, %v4435_v33  ;;  %v4863_v33 = vsel %vm771_vm3, %v4860_v27, %v4862_v26  ;;  %v11563_v24 = vld [vmem:[%s12143_s0 + $0x12c] sm:$0xff]   ;;  %v11568_v18 = vld [vmem:[%s12143_s0 + $0x134] sm:$0xff]   ;;  %v5188_v27 = vshrl.u32 %v11468_v56, 16 }
 0x43e   :  { %v4866_v39 = vrot.slane %v11563_v24, 1  ;;  %v4868_v41 = vrot.slane %v11568_v18, 1 }
 0x440   :  { %v4869_v13 = vsel %vm771_vm3, %v4866_v39, %v4868_v41 }
 0x443   :  { %v3670_v3 = vpop.f32.mrb[2].mxu1 }
 0x444   :  { %v11452_v9 = vadd.f32 %v8241_v47, %v3670_v3  ;;  %v8832_v38 = vpop.f32.mrb[3].mxu1  ;;  %8944 = vmatmul.mubr.msk.bf16.gmra.mrb[36].mxu1 %vm313_vm2, %v4437_v55  ;;  %v4865_v47 = vsel %vm771_vm3, %v4862_v26, %v4864_v44  ;;  %v5147_v55 = vshll.u32 %v11428_v35, 16  ;;  %v5155_v3 = vshll.u32 %v11433_v62, 16 }
 0x445   :  { %8949 = vmatprep.mubr.msk.bf16.mxu1 %vm313_vm2, %v4837_v49  ;;  %v5152_v49 = vshrl.u32 %v11433_v62, 16  ;;  %v4867_v38 = vsel %vm771_vm3, %v4864_v44, %v4866_v39  ;;  %v4870_v35 = vrot.slane %v10037_v6, 1 }
 0x446   :  { %v5157_v63 = vrot.slane %v5155_v3, 2 }
 0x447   :  { %v5154_v15 = vrot.slane %v5152_v49, 1 }
 0x44c   :  { %8950 = vmatmul.mubr.msk.bf16.vlgmr.msra.gmra.mrb[4].mxu1 %vm313_vm2, %v4839_v53  ;;  %v5146_v53 = vrot.slane %v5144_v37, 1  ;;  %v5197_v37 = vshrl.u32 %v11483_v57, 16 }
 0x44d   :  { %8953 = vmatprep.mubr.msk.bf16.mxu1 %vm313_vm2, %v4841_v46  ;;  %8986 = vmatpush3.bf16.msra.mxu1 %v10525_v7  ;;  %v11489_v7 = vld [vmem:[%s12143_s0 + $0xe4] sm:$0xff]   ;;  %v5149_v46 = vrot.slane %v5147_v55, 2  ;;  %v5200_v55 = vshll.u32 %v11483_v57, 16 }
 0x44e   :  { %9928 = vmatprep.subr.msk.bf16.mxu1 %vm368_vm0, %v10066_v0  ;;  %v4848_v11 = vrot.slane %v11489_v7, 1  ;;  %v5161_v0 = vshrl.u32 %v11444_v19, 16  ;;  %v5206_v3 = vshrl.u32 %v11489_v7, 16 }
 0x450   :  { %v4849_v50 = vsel %vm771_vm3, %v4846_v34, %v4848_v11  ;;  %v4851_v54 = vsel %vm771_vm3, %v4848_v11, %v4850_v5  ;;  %v5158_v34 = vor.u32 %v5157_v63, %v5154_v15  ;;  %v5170_v11 = vshrl.u32 %v11450_v59, 16 }
 0x451   :  { %v5163_v5 = vrot.slane %v5161_v0, 1  ;;  %v5208_v63 = vrot.slane %v5206_v3, 1  ;;  %v5215_v0 = vshrl.u32 %v11499_v25, 16  ;;  %v5263_v3 = vshll.u32 %v11537_v8, 16 }
 0x454   :  { %8954 = vmatmul.mubr.msk.bf16.gmra.mrb[8].mxu1 %vm313_vm2, %v4843_v60  ;;  %v5164_v60 = vshll.u32 %v11444_v19, 16 }
 0x455   :  { %8957 = vmatprep.mubr.msk.bf16.mxu1 %vm313_vm2, %v4845_v4  ;;  %v5150_v4 = vor.u32 %v5149_v46, %v5146_v53  ;;  %v5199_v53 = vrot.slane %v5197_v37, 1  ;;  %v5202_v46 = vrot.slane %v5200_v55, 2  ;;  %v5254_v37 = vshll.u32 %v11531_v10, 16 }
 0x456   :  { %v5166_v1 = vrot.slane %v5164_v60, 2  ;;  %v5218_v60 = vshll.u32 %v11499_v25, 16 }
 0x458   :  { %v5167_v22 = vor.u32 %v5166_v1, %v5163_v5  ;;  %v5220_v5 = vrot.slane %v5218_v60, 2  ;;  %v5278_v60 = vshrl.u32 %v11553_v29, 16 }
 0x45c   :  { %8958 = vmatmul.mubr.msk.bf16.gmra.mrb[12].mxu1 %vm313_vm2, %v4847_v36  ;;  %v5173_v36 = vshll.u32 %v11450_v59, 16 }
 0x45d   :  { %8961 = vmatprep.mubr.msk.bf16.mxu1 %vm313_vm2, %v4849_v50  ;;  %v4871_v50 = vsel %vm771_vm3, %v4868_v41, %v4870_v35 }
 0x45e   :  { %v5175_v21 = vrot.slane %v5173_v36, 2 }
 0x464   :  { %8962 = vmatmul.mubr.msk.bf16.gmra.mrb[16].mxu1 %vm313_vm2, %v4851_v54  ;;  %v5159_v54 = vsel %vm1524_vm4, %v5150_v4, %v5158_v34 }
 0x465   :  { %8965 = vmatprep.mubr.msk.bf16.mxu1 %vm313_vm2, %v4853_v32  ;;  %v5172_v32 = vrot.slane %v5170_v11, 1  ;;  %v5227_v11 = vshll.u32 %v11505_v14, 16 }
 0x467   :  { %v5176_v2 = vor.u32 %v5175_v21, %v5172_v32  ;;  %v5229_v32 = vrot.slane %v5227_v11, 2 }
 0x46c   :  { %8966 = vmatmul.mubr.msk.bf16.gmra.mrb[20].mxu1 %vm313_vm2, %v4855_v61  ;;  %v5179_v61 = vshrl.u32 %v11462_v58, 16 }
 0x46d   :  { %8969 = vmatprep.mubr.msk.bf16.mxu1 %vm313_vm2, %v4857_v28  ;;  %v5182_v28 = vshll.u32 %v11462_v58, 16 }
 0x46e   :  { %v5181_v26 = vrot.slane %v5179_v61, 1  ;;  %v5236_v61 = vshll.u32 %v11515_v16, 16 }
 0x46f   :  { %v5184_v44 = vrot.slane %v5182_v28, 2 }
 0x471   :  { %v5185_v41 = vor.u32 %v5184_v44, %v5181_v26  ;;  %v5238_v26 = vrot.slane %v5236_v61, 2  ;;  %v5296_v61 = vshrl.u32 %v11568_v18, 16 }
 0x473   :  { %v5186_v6 = vsel %vm1524_vm4, %v5176_v2, %v5185_v41 }
 0x474   :  { %8970 = vmatmul.mubr.msk.bf16.gmra.mrb[24].mxu1 %vm313_vm2, %v4859_v20  ;;  %v5191_v20 = vshll.u32 %v11468_v56, 16 }
 0x475   :  { %8973 = vmatprep.mubr.msk.bf16.mxu1 %vm313_vm2, %v4861_v30  ;;  %v5168_v30 = vsel %vm1524_vm4, %v5158_v34, %v5167_v22  ;;  %v5224_v34 = vshrl.u32 %v11505_v14, 16 }
 0x476   :  { %v5193_v39 = vrot.slane %v5191_v20, 2 }
 0x47c   :  { %8974 = vmatmul.mubr.msk.bf16.gmra.mrb[28].mxu1 %vm313_vm2, %v4863_v33  ;;  %v5177_v33 = vsel %vm1524_vm4, %v5167_v22, %v5176_v2  ;;  %v5233_v22 = vshrl.u32 %v11515_v16, 16  ;;  %v5242_v2 = vshrl.u32 %v11521_v43, 16 }
 0x47d   :  { %8977 = vmatprep.mubr.msk.bf16.mxu1 %vm313_vm2, %v4865_v47  ;;  %v5190_v47 = vrot.slane %v5188_v27, 1  ;;  %v5245_v27 = vshll.u32 %v11521_v43, 16 }
 0x47f   :  { %v5194_v49 = vor.u32 %v5193_v39, %v5190_v47  ;;  %v5247_v47 = vrot.slane %v5245_v27, 2 }
 0x481   :  { %v5195_v15 = vsel %vm1524_vm4, %v5185_v41, %v5194_v49  ;;  %v5251_v41 = vshrl.u32 %v11531_v10, 16 }
 0x484   :  { %8978 = vmatmul.mubr.msk.bf16.gmra.mrb[32].mxu1 %vm313_vm2, %v4867_v38  ;;  %v5209_v38 = vshll.u32 %v11489_v7, 16 }
 0x485   :  { %8981 = vmatprep.mubr.msk.bf16.mxu1 %vm313_vm2, %v4869_v13  ;;  %v10067_v13 = vld [vmem:[%s12144_s1 + $0xc] sm:$0x3] }
 0x486   :  { %v5211_v35 = vrot.slane %v5209_v38, 2 }
 0x488   :  { %v5212_v4 = vor.u32 %v5211_v35, %v5208_v63  ;;  %v5269_v35 = vshrl.u32 %v11547_v12, 16 }
 0x48a   :  { %v5271_v11 = vrot.slane %v5269_v35, 1 }
 0x48c   :  { %8982 = vmatmul.mubr.msk.bf16.gmra.mrb[36].mxu1 %vm313_vm2, %v4871_v50  ;;  %v5217_v50 = vrot.slane %v5215_v0, 1 }
 0x48d   :  { %8987 = vmatprep.mubr.msk.bf16.mxu1 %vm313_vm2, %v5159_v54  ;;  %v5226_v54 = vrot.slane %v5224_v34, 1 }
 0x48e   :  { %v5221_v21 = vor.u32 %v5220_v5, %v5217_v50  ;;  %v5280_v5 = vrot.slane %v5278_v60, 1 }
 0x48f   :  { %v5230_v28 = vor.u32 %v5229_v32, %v5226_v54  ;;  %v5287_v32 = vshrl.u32 %v11563_v24, 16 }
 0x490   :  { %v5222_v20 = vsel %vm1524_vm4, %v5212_v4, %v5221_v21 }
 0x491   :  { %v5231_v44 = vsel %vm1524_vm4, %v5221_v21, %v5230_v28  ;;  %v5290_v21 = vshll.u32 %v11563_v24, 16  ;;  %v5289_v27 = vrot.slane %v5287_v32, 1 }
 0x494   :  { %8988 = vmatmul.mubr.msk.bf16.vlgmr.msra.gmra.mrb[4].mxu1 %vm313_vm2, %v5168_v30  ;;  %v5235_v30 = vrot.slane %v5233_v22, 1 }
 0x495   :  { %8991 = vmatprep.mubr.msk.bf16.mxu1 %vm313_vm2, %v5177_v33  ;;  %9024 = vmatpush3.bf16.msra.mxu1 %v10662_v42  ;;  %v5203_v42 = vor.u32 %v5202_v46, %v5199_v53  ;;  %v5244_v33 = vrot.slane %v5242_v2, 1 }
 0x496   :  { %9929 = vmatprep.subr.msk.bf16.mxu1 %vm368_vm0, %v10067_v13  ;;  %v5239_v39 = vor.u32 %v5238_v26, %v5235_v30  ;;  %v5253_v13 = vrot.slane %v5251_v41, 1  ;;  %v11655_v30 = vld [vmem:[%s12143_s0 + $0x13c] ss:$0 sps:$4 sm:$0x33]  }
 0x497   :  { %v5204_v36 = vsel %vm1524_vm4, %v5194_v49, %v5203_v42  ;;  %v5213_v1 = vsel %vm1524_vm4, %v5203_v42, %v5212_v4  ;;  %v5248_v55 = vor.u32 %v5247_v47, %v5244_v33  ;;  %v5260_v49 = vshrl.u32 %v11537_v8, 16 }
 0x498   :  { %v5240_v38 = vsel %vm1524_vm4, %v5230_v28, %v5239_v39  ;;  %v5272_v42 = vshll.u32 %v11547_v12, 16  ;;  %v5281_v4 = vshll.u32 %v11553_v29, 16  ;;  %v5299_v28 = vshll.u32 %v11568_v18, 16 }
 0x499   :  { %v5249_v53 = vsel %vm1524_vm4, %v5239_v39, %v5248_v55  ;;  %v5262_v46 = vrot.slane %v5260_v49, 1  ;;  %v5305_v39 = vshrl.u32 %v11655_v30, 16  ;;  %v5308_v41 = vshll.u32 %v11655_v30, 16 }
 0x49a   :  { %v5301_v33 = vrot.slane %v5299_v28, 2 }
 0x49c   :  { %8992 = vmatmul.mubr.msk.bf16.gmra.mrb[8].mxu1 %vm313_vm2, %v5186_v6  ;;  %v5256_v6 = vrot.slane %v5254_v37, 2 }
 0x49d   :  { %8995 = vmatprep.mubr.msk.bf16.mxu1 %vm313_vm2, %v5195_v15  ;;  %v5265_v15 = vrot.slane %v5263_v3, 2  ;;  %v5307_v3 = vrot.slane %v5305_v39, 1 }
 0x49e   :  { %v5257_v63 = vor.u32 %v5256_v6, %v5253_v13 }
 0x49f   :  { %v5266_v0 = vor.u32 %v5265_v15, %v5262_v46  ;;  %v5585_v15 = vrot.slane %v11433_v62, 2  ;;  %v5591_v62 = vrot.slane %v11462_v58, 2  ;;  %v5595_v58 = vrot.slane %v11483_v57, 2 }
 0x4a0   :  { %v5258_v34 = vsel %vm1524_vm4, %v5248_v55, %v5257_v63  ;;  %v7898_v55 = vld [vmem:[%s12143_s0 + $0xac] sm:$0xc]  ;;  %v5603_v57 = vrot.slane %v11515_v16, 2  ;;  %v5611_v16 = vrot.slane %v11547_v12, 2  ;;  %v11730_v12 = vld [vmem:[%s12143_s0 + $0xb8] sm:$0xf] }
 0x4a1   :  { %v5267_v50 = vsel %vm1524_vm4, %v5257_v63, %v5266_v0  ;;  %v7899_v6 = vcombine.low %v7898_v55, %v11423_v51  ;;  %v5589_v51 = vrot.slane %v11450_v59, 2 }
 0x4a3   :  { %v5584_v46 = vrot.slane %v7899_v6, 2  ;;  %v5592_v59 = vsel %vm1971_vm5, %v5589_v51, %v5591_v62 }
 0x4a4   :  { %8996 = vmatmul.mubr.msk.bf16.gmra.mrb[12].mxu1 %vm313_vm2, %v5204_v36  ;;  %v5274_v36 = vrot.slane %v5272_v42, 2  ;;  %v5587_v42 = vrot.slane %v11444_v19, 2  ;;  %v10068_v19 = vld [vmem:[%s12144_s1 + $0xe] sm:$0x3] }
 0x4a5   :  { %8999 = vmatprep.mubr.msk.bf16.mxu1 %vm313_vm2, %v5213_v1  ;;  %v5283_v1 = vrot.slane %v5281_v4, 2  ;;  %v5586_v35 = vsel %vm1971_vm5, %v5584_v46, %v5585_v15  ;;  %v5593_v4 = vrot.slane %v11468_v56, 2 }
 0x4a6   :  { %v5275_v54 = vor.u32 %v5274_v36, %v5271_v11  ;;  %v5590_v60 = vsel %vm1971_vm5, %v5587_v42, %v5589_v51  ;;  %v5599_v36 = vrot.slane %v11499_v25, 2  ;;  %v5607_v25 = vrot.slane %v11531_v10, 2 }
 0x4a7   :  { %v5284_v22 = vor.u32 %v5283_v1, %v5280_v5  ;;  %v5596_v56 = vsel %vm1971_vm5, %v5593_v4, %v5595_v58  ;;  %v5615_v10 = vrot.slane %v11563_v24, 2  ;;  %v11740_v24 = vld [vmem:[%s12143_s0 + $0xbc] sm:$0xff]  }
 0x4a8   :  { %v5276_v2 = vsel %vm1524_vm4, %v5266_v0, %v5275_v54  ;;  %v5588_v0 = vsel %vm1971_vm5, %v5585_v15, %v5587_v42  ;;  %v11788_v15 = vld [vmem:[%s12143_s0 + $0xe4] sm:$0xff]  }
 0x4a9   :  { %v5285_v26 = vsel %vm1524_vm4, %v5275_v54, %v5284_v22 }
 0x4ac   :  { %9000 = vmatmul.mubr.msk.bf16.gmra.mrb[16].mxu1 %vm313_vm2, %v5222_v20  ;;  %v5292_v20 = vrot.slane %v5290_v21, 2 }
 0x4ad   :  { %9003 = vmatprep.mubr.msk.bf16.mxu1 %vm313_vm2, %v5231_v44  ;;  %v5298_v44 = vrot.slane %v5296_v61, 1 }
 0x4ae   :  { %v5293_v47 = vor.u32 %v5292_v20, %v5289_v27 }
 0x4af   :  { %v5302_v37 = vor.u32 %v5301_v33, %v5298_v44  ;;  %v6019_v44 = vrot.slane %v11740_v24, 2 }
 0x4b0   :  { %v5294_v49 = vsel %vm1524_vm4, %v5284_v22, %v5293_v47 }
 0x4b1   :  { %v5303_v13 = vsel %vm1524_vm4, %v5293_v47, %v5302_v37  ;;  %v11751_v47 = vld [vmem:[%s12143_s0 + $0xc4] sm:$0xff]  }
 0x4b4   :  { %9004 = vmatmul.mubr.msk.bf16.gmra.mrb[20].mxu1 %vm313_vm2, %v5240_v38  ;;  %v5310_v38 = vrot.slane %v5308_v41, 2  ;;  %v11757_v41 = vld [vmem:[%s12143_s0 + $0xcc] sm:$0xff]  }
 0x4b5   :  { %9007 = vmatprep.mubr.msk.bf16.mxu1 %vm313_vm2, %v5249_v53 }
 0x4b6   :  { %v5311_v53 = vor.u32 %v5310_v38, %v5307_v3  ;;  %v11773_v38 = vld [vmem:[%s12143_s0 + $0xdc] sm:$0xff]  }
 0x4b7   :  { %v6027_v6 = vrot.slane %v11773_v38, 2 }
 0x4b8   :  { %v5312_v63 = vsel %vm1524_vm4, %v5302_v37, %v5311_v53  ;;  %v6023_v37 = vrot.slane %v11757_v41, 2  ;;  %v10069_v53 = vld [vmem:[%s12144_s1 + $0x10] sm:$0x3] }
 0x4bc   :  { %9008 = vmatmul.mubr.msk.bf16.gmra.mrb[24].mxu1 %vm313_vm2, %v5258_v34  ;;  %v5594_v34 = vsel %vm1971_vm5, %v5591_v62, %v5593_v4  ;;  %v11810_v62 = vld [vmem:[%s12143_s0 + $0xfc] sm:$0xff]  }
 0x4bd   :  { %9011 = vmatprep.mubr.msk.bf16.mxu1 %vm313_vm2, %v5267_v50  ;;  %v5601_v50 = vrot.slane %v11505_v14, 2  ;;  %v5609_v14 = vrot.slane %v11537_v8, 2  ;;  %v5617_v8 = vrot.slane %v11568_v18, 2  ;;  %v5619_v18 = vrot.slane %v11655_v30, 2 }
 0x4be   :  { %v6021_v30 = vrot.slane %v11751_v47, 2 }
 0x4bf   :  { %v5602_v1 = vsel %vm1971_vm5, %v5599_v36, %v5601_v50  ;;  %v5604_v54 = vsel %vm1971_vm5, %v5601_v50, %v5603_v57  ;;  %v5610_v22 = vsel %vm1971_vm5, %v5607_v25, %v5609_v14  ;;  %v5612_v61 = vsel %vm1971_vm5, %v5609_v14, %v5611_v16  ;;  %v11836_v50 = vld [vmem:[%s12143_s0 + $0x114] sm:$0xff]   ;;  %v11858_v14 = vld [vmem:[%s12143_s0 + $0x12c] sm:$0xff]  }
 0x4c0   :  { %v5618_v27 = vsel %vm1971_vm5, %v5615_v10, %v5617_v8  ;;  %v5620_v33 = vsel %vm1971_vm5, %v5617_v8, %v5619_v18  ;;  %v6022_v55 = vsel %vm1971_vm5, %v6019_v44, %v6021_v30  ;;  %v6024_v3 = vsel %vm1971_vm5, %v6021_v30, %v6023_v37 }
 0x4c1   :  { %v6338_v18 = vshll.u32 %v11740_v24, 16 }
 0x4c4   :  { %9012 = vmatmul.mubr.msk.bf16.gmra.mrb[28].mxu1 %vm313_vm2, %v5276_v2  ;;  %v7918_v2 = vld [vmem:[%s12143_s0 + $0xb4] sm:$0xc] }
 0x4c5   :  { %9015 = vmatprep.mubr.msk.bf16.mxu1 %vm313_vm2, %v5285_v26  ;;  %v11735_v20 = vcombine.low %v7918_v2, %v11730_v12 }
 0x4c7   :  { %v6018_v26 = vrot.slane %v11735_v20, 2  ;;  %v6327_v2 = vshrl.u32 %v11735_v20, 16 }
 0x4c9   :  { %v6020_v39 = vsel %vm1971_vm5, %v6018_v26, %v6019_v44 }
 0x4cc   :  { %9016 = vmatmul.mubr.msk.bf16.gmra.mrb[32].mxu1 %vm313_vm2, %v5294_v49  ;;  %v11767_v49 = vld [vmem:[%s12143_s0 + $0xd4] sm:$0xff]  }
 0x4cd   :  { %9019 = vmatprep.mubr.msk.bf16.mxu1 %vm313_vm2, %v5303_v13  ;;  %v6025_v13 = vrot.slane %v11767_v49, 2 }
 0x4cf   :  { %v6026_v46 = vsel %vm1971_vm5, %v6023_v37, %v6025_v13 }
 0x4d4   :  { %9020 = vmatmul.mubr.msk.bf16.gmra.mrb[36].mxu1 %vm313_vm2, %v5312_v63  ;;  %v6028_v63 = vsel %vm1971_vm5, %v6025_v13, %v6027_v6  ;;  %v6347_v13 = vshll.u32 %v11751_v47, 16 }
 0x4d5   :  { %9025 = vmatprep.mubr.msk.bf16.mxu1 %vm313_vm2, %v5586_v35  ;;  %v6029_v35 = vrot.slane %v11788_v15, 2 }
 0x4d7   :  { %v6030_v51 = vsel %vm1971_vm5, %v6027_v6, %v6029_v35 }
 0x4dc   :  { %9026 = vmatmul.mubr.msk.bf16.vlgmr.msra.gmra.mrb[4].mxu1 %vm313_vm2, %v5588_v0  ;;  %v11804_v0 = vld [vmem:[%s12143_s0 + $0xf4] sm:$0xff]  }
 0x4dd   :  { %9029 = vmatprep.mubr.msk.bf16.mxu1 %vm313_vm2, %v5590_v60  ;;  %9062 = vmatpush3.bf16.msra.mxu1 %v10748_v40  ;;  %v5597_v40 = vrot.slane %v11489_v7, 2  ;;  %v5605_v7 = vrot.slane %v11521_v43, 2  ;;  %v5613_v43 = vrot.slane %v11553_v29, 2  ;;  %v6033_v4 = vrot.slane %v11804_v0, 2 }
 0x4de   :  { %9930 = vmatprep.subr.msk.bf16.mxu1 %vm368_vm0, %v10068_v19  ;;  %v6035_v19 = vrot.slane %v11810_v62, 2 }
 0x4df   :  { %v5598_v11 = vsel %vm1971_vm5, %v5595_v58, %v5597_v40  ;;  %v5600_v5 = vsel %vm1971_vm5, %v5597_v40, %v5599_v36  ;;  %v5606_v32 = vsel %vm1971_vm5, %v5603_v57, %v5605_v7  ;;  %v5608_v21 = vsel %vm1971_vm5, %v5605_v7, %v5607_v25  ;;  %v11826_v40 = vld [vmem:[%s12143_s0 + $0x10c] sm:$0xff]  }
 0x4e0   :  { %v5614_v28 = vsel %vm1971_vm5, %v5611_v16, %v5613_v43  ;;  %v5616_v29 = vsel %vm1971_vm5, %v5613_v43, %v5615_v10  ;;  %v6036_v58 = vsel %vm1971_vm5, %v6033_v4, %v6035_v19  ;;  %v6041_v57 = vrot.slane %v11836_v50, 2  ;;  %v11868_v43 = vld [vmem:[%s12143_s0 + $0x134] sm:$0xff]  }
 0x4e1   :  { %v6049_v10 = vrot.slane %v11868_v43, 2 }
 0x4e4   :  { %9030 = vmatmul.mubr.msk.bf16.gmra.mrb[8].mxu1 %vm313_vm2, %v5592_v59 }
 0x4e5   :  { %9033 = vmatprep.mubr.msk.bf16.mxu1 %vm313_vm2, %v5594_v34  ;;  %v11820_v34 = vld [vmem:[%s12143_s0 + $0x104] sm:$0xff]  }
 0x4ec   :  { %9034 = vmatmul.mubr.msk.bf16.gmra.mrb[12].mxu1 %vm313_vm2, %v5596_v56  ;;  %v6037_v56 = vrot.slane %v11820_v34, 2 }
 0x4ed   :  { %9037 = vmatprep.mubr.msk.bf16.mxu1 %vm313_vm2, %v5598_v11  ;;  %v6039_v11 = vrot.slane %v11826_v40, 2 }
 0x4ee   :  { %v6038_v36 = vsel %vm1971_vm5, %v6035_v19, %v6037_v56 }
 0x4f4   :  { %9038 = vmatmul.mubr.msk.bf16.gmra.mrb[16].mxu1 %vm313_vm2, %v5600_v5  ;;  %v6040_v5 = vsel %vm1971_vm5, %v6037_v56, %v6039_v11  ;;  %v6365_v56 = vshll.u32 %v11767_v49, 16 }
 0x4f5   :  { %9041 = vmatprep.mubr.msk.bf16.mxu1 %vm313_vm2, %v5602_v1  ;;  %v11842_v1 = vld [vmem:[%s12143_s0 + $0x11c] sm:$0xff]  }
 0x4f6   :  { %v6043_v7 = vrot.slane %v11842_v1, 2 }
 0x4f8   :  { %v6044_v25 = vsel %vm1971_vm5, %v6041_v57, %v6043_v7 }
 0x4fc   :  { %9042 = vmatmul.mubr.msk.bf16.gmra.mrb[20].mxu1 %vm313_vm2, %v5604_v54  ;;  %v6042_v54 = vsel %vm1971_vm5, %v6039_v11, %v6041_v57 }
 0x4fd   :  { %9045 = vmatprep.mubr.msk.bf16.mxu1 %vm313_vm2, %v5606_v32  ;;  %v11852_v32 = vld [vmem:[%s12143_s0 + $0x124] sm:$0xff]  }
 0x504   :  { %9046 = vmatmul.mubr.msk.bf16.gmra.mrb[24].mxu1 %vm313_vm2, %v5608_v21  ;;  %v6045_v21 = vrot.slane %v11852_v32, 2 }
 0x505   :  { %9049 = vmatprep.mubr.msk.bf16.mxu1 %vm313_vm2, %v5610_v22  ;;  %v6047_v22 = vrot.slane %v11858_v14, 2 }
 0x506   :  { %v6046_v16 = vsel %vm1971_vm5, %v6043_v7, %v6045_v21 }
 0x507   :  { %v6050_v26 = vsel %vm1971_vm5, %v6047_v22, %v6049_v10 }
 0x50c   :  { %9050 = vmatmul.mubr.msk.bf16.gmra.mrb[28].mxu1 %vm313_vm2, %v5612_v61  ;;  %v11873_v61 = vld [vmem:[%s12143_s0 + $0x13c] sm:$0xff]  }
 0x50d   :  { %9053 = vmatprep.mubr.msk.bf16.mxu1 %vm313_vm2, %v5614_v28  ;;  %v6048_v28 = vsel %vm1971_vm5, %v6045_v21, %v6047_v22  ;;  %v6051_v8 = vrot.slane %v11873_v61, 2 }
 0x50f   :  { %v6052_v44 = vsel %vm1971_vm5, %v6049_v10, %v6051_v8  ;;  %v6383_v10 = vshll.u32 %v11788_v15, 16 }
 0x514   :  { %9054 = vmatmul.mubr.msk.bf16.gmra.mrb[32].mxu1 %vm313_vm2, %v5616_v29  ;;  %v6330_v29 = vshll.u32 %v11735_v20, 16 }
 0x515   :  { %9057 = vmatprep.mubr.msk.bf16.mxu1 %vm313_vm2, %v5618_v27  ;;  %v6335_v27 = vshrl.u32 %v11740_v24, 16 }
 0x516   :  { %v6332_v30 = vrot.slane %v6330_v29, 3 }
 0x517   :  { %v6337_v37 = vrot.slane %v6335_v27, 2 }
 0x51c   :  { %9058 = vmatmul.mubr.msk.bf16.gmra.mrb[36].mxu1 %vm313_vm2, %v5620_v33  ;;  %v10058_v33 = vld [vmem:[%s12143_s0 + $0x144] ss:$0 sps:$4 sm:$0x33]  }
 0x51d   :  { %9063 = vmatprep.mubr.msk.bf16.mxu1 %vm313_vm2, %v6020_v39  ;;  %v6329_v39 = vrot.slane %v6327_v2, 2  ;;  %v6053_v20 = vrot.slane %v10058_v33, 2 }
 0x51f   :  { %v6333_v6 = vor.u32 %v6332_v30, %v6329_v39  ;;  %v6398_v30 = vshrl.u32 %v11804_v0, 16 }
 0x524   :  { %9064 = vmatmul.mubr.msk.bf16.vlgmr.msra.gmra.mrb[4].mxu1 %vm313_vm2, %v6022_v55  ;;  %v6340_v55 = vrot.slane %v6338_v18, 3 }
 0x525   :  { %9067 = vmatprep.mubr.msk.bf16.mxu1 %vm313_vm2, %v6024_v3  ;;  %9100 = vmatpush3.bf16.msra.mxu1 %v10851_v48  ;;  %v11794_v48 = vld [vmem:[%s12143_s0 + $0xec] sm:$0xff]   ;;  %v6344_v3 = vshrl.u32 %v11751_v47, 16 }
 0x526   :  { %9931 = vmatprep.subr.msk.bf16.mxu1 %vm368_vm0, %v10069_v53  ;;  %v6031_v42 = vrot.slane %v11794_v48, 2  ;;  %v6341_v53 = vor.u32 %v6340_v55, %v6337_v37  ;;  %v6389_v2 = vshrl.u32 %v11794_v48, 16  ;;  %v6392_v29 = vshll.u32 %v11794_v48, 16 }
 0x527   :  { %v6401_v37 = vshll.u32 %v11804_v0, 16 }
 0x528   :  { %v6032_v60 = vsel %vm1971_vm5, %v6029_v35, %v6031_v42  ;;  %v6034_v59 = vsel %vm1971_vm5, %v6031_v42, %v6033_v4  ;;  %v6054_v35 = vsel %vm1971_vm5, %v6051_v8, %v6053_v20  ;;  %v6346_v42 = vrot.slane %v6344_v3, 2 }
 0x529   :  { %v6391_v33 = vrot.slane %v6389_v2, 2  ;;  %v6394_v39 = vrot.slane %v6392_v29, 3  ;;  %v6407_v20 = vshrl.u32 %v11810_v62, 16  ;;  %v6410_v3 = vshll.u32 %v11810_v62, 16 }
 0x52b   :  { %v6395_v55 = vor.u32 %v6394_v39, %v6391_v33  ;;  %v6461_v39 = vshrl.u32 %v11858_v14, 16 }
 0x52c   :  { %9068 = vmatmul.mubr.msk.bf16.gmra.mrb[8].mxu1 %vm313_vm2, %v6026_v46  ;;  %v6353_v46 = vshrl.u32 %v11757_v41, 16 }
 0x52d   :  { %9071 = vmatprep.mubr.msk.bf16.mxu1 %vm313_vm2, %v6028_v63  ;;  %v6356_v63 = vshll.u32 %v11757_v41, 16 }
 0x52e   :  { %v6355_v4 = vrot.slane %v6353_v46, 2 }
 0x52f   :  { %v6358_v19 = vrot.slane %v6356_v63, 3  ;;  %v6409_v63 = vrot.slane %v6407_v20, 2 }
 0x531   :  { %v6359_v11 = vor.u32 %v6358_v19, %v6355_v4  ;;  %v6425_v19 = vshrl.u32 %v11826_v40, 16 }
 0x534   :  { %9072 = vmatmul.mubr.msk.bf16.gmra.mrb[12].mxu1 %vm313_vm2, %v6030_v51  ;;  %v6349_v51 = vrot.slane %v6347_v13, 3 }
 0x535   :  { %9075 = vmatprep.mubr.msk.bf16.mxu1 %vm313_vm2, %v6032_v60  ;;  %v6342_v60 = vsel %vm2724_vm6, %v6333_v6, %v6341_v53  ;;  %v6400_v6 = vrot.slane %v6398_v30, 2 }
 0x53c   :  { %9076 = vmatmul.mubr.msk.bf16.gmra.mrb[16].mxu1 %vm313_vm2, %v6034_v59  ;;  %v6350_v59 = vor.u32 %v6349_v51, %v6346_v42  ;;  %v6416_v51 = vshrl.u32 %v11820_v34, 16 }
 0x53d   :  { %9079 = vmatprep.mubr.msk.bf16.mxu1 %vm313_vm2, %v6036_v58  ;;  %v6362_v58 = vshrl.u32 %v11767_v49, 16 }
 0x53e   :  { %v6351_v57 = vsel %vm2724_vm6, %v6341_v53, %v6350_v59  ;;  %v6403_v53 = vrot.slane %v6401_v37, 3 }
 0x53f   :  { %v6364_v7 = vrot.slane %v6362_v58, 2 }
 0x540   :  { %v6404_v42 = vor.u32 %v6403_v53, %v6400_v6  ;;  %v6470_v53 = vshrl.u32 %v11868_v43, 16 }
 0x542   :  { %v6405_v58 = vsel %vm2724_vm6, %v6395_v55, %v6404_v42 }
 0x544   :  { %9080 = vmatmul.mubr.msk.bf16.gmra.mrb[20].mxu1 %vm313_vm2, %v6038_v36  ;;  %v6371_v36 = vshrl.u32 %v11773_v38, 16 }
 0x545   :  { %9083 = vmatprep.mubr.msk.bf16.mxu1 %vm313_vm2, %v6040_v5  ;;  %v6374_v5 = vshll.u32 %v11773_v38, 16 }
 0x546   :  { %v6373_v21 = vrot.slane %v6371_v36, 2 }
 0x547   :  { %v6376_v22 = vrot.slane %v6374_v5, 3  ;;  %v6427_v5 = vrot.slane %v6425_v19, 2  ;;  %v11957_v19 = vld [vmem:[%s12143_s0 + $0x144] ss:$0 sps:$4 sm:$0x77]  }
 0x549   :  { %v6377_v8 = vor.u32 %v6376_v22, %v6373_v21  ;;  %v6443_v22 = vshrl.u32 %v11842_v1, 16 }
 0x54b   :  { %v6445_v29 = vrot.slane %v6443_v22, 2 }
 0x54c   :  { %9084 = vmatmul.mubr.msk.bf16.gmra.mrb[24].mxu1 %vm313_vm2, %v6042_v54  ;;  %v6367_v54 = vrot.slane %v6365_v56, 3  ;;  %v6418_v56 = vrot.slane %v6416_v51, 2 }
 0x54d   :  { %9087 = vmatprep.mubr.msk.bf16.mxu1 %vm313_vm2, %v6044_v25  ;;  %v6360_v25 = vsel %vm2724_vm6, %v6350_v59, %v6359_v11  ;;  %v6428_v59 = vshll.u32 %v11826_v40, 16 }
 0x554   :  { %9088 = vmatmul.mubr.msk.bf16.gmra.mrb[28].mxu1 %vm313_vm2, %v6046_v16  ;;  %v6368_v16 = vor.u32 %v6367_v54, %v6364_v7  ;;  %v6434_v54 = vshrl.u32 %v11836_v50, 16 }
 0x555   :  { %9091 = vmatprep.mubr.msk.bf16.mxu1 %vm313_vm2, %v6048_v28  ;;  %v6380_v28 = vshrl.u32 %v11788_v15, 16 }
 0x556   :  { %v6369_v27 = vsel %vm2724_vm6, %v6359_v11, %v6368_v16 }
 0x557   :  { %v6382_v18 = vrot.slane %v6380_v28, 2 }
 0x55c   :  { %9092 = vmatmul.mubr.msk.bf16.gmra.mrb[32].mxu1 %vm313_vm2, %v6050_v26  ;;  %v6385_v26 = vrot.slane %v6383_v10, 3  ;;  %v6436_v10 = vrot.slane %v6434_v54, 2 }
 0x55d   :  { %9095 = vmatprep.mubr.msk.bf16.mxu1 %vm313_vm2, %v6052_v44  ;;  %v6378_v44 = vsel %vm2724_vm6, %v6368_v16, %v6377_v8  ;;  %v6446_v16 = vshll.u32 %v11842_v1, 16 }
 0x564   :  { %9096 = vmatmul.mubr.msk.bf16.gmra.mrb[36].mxu1 %vm313_vm2, %v6054_v35  ;;  %v6412_v35 = vrot.slane %v6410_v3, 3  ;;  %v6463_v3 = vrot.slane %v6461_v39, 2 }
 0x565   :  { %9101 = vmatprep.mubr.msk.bf16.mxu1 %vm313_vm2, %v6342_v60  ;;  %v6419_v60 = vshll.u32 %v11820_v34, 16 }
 0x566   :  { %v6413_v4 = vor.u32 %v6412_v35, %v6409_v63  ;;  %v6479_v35 = vshrl.u32 %v11873_v61, 16 }
 0x567   :  { %v6421_v11 = vrot.slane %v6419_v60, 3  ;;  %v6472_v60 = vrot.slane %v6470_v53, 2 }
 0x568   :  { %v6414_v36 = vsel %vm2724_vm6, %v6404_v42, %v6413_v4  ;;  %v6482_v42 = vshll.u32 %v11873_v61, 16 }
 0x569   :  { %v6422_v7 = vor.u32 %v6421_v11, %v6418_v56 }
 0x56a   :  { %v6484_v56 = vrot.slane %v6482_v42, 3 }
 0x56b   :  { %v6423_v28 = vsel %vm2724_vm6, %v6413_v4, %v6422_v7 }
 0x56c   :  { %9102 = vmatmul.mubr.msk.bf16.vlgmr.msra.gmra.mrb[4].mxu1 %vm313_vm2, %v6351_v57  ;;  %v6430_v57 = vrot.slane %v6428_v59, 3 }
 0x56d   :  { %9105 = vmatprep.mubr.msk.bf16.mxu1 %vm313_vm2, %v6360_v25  ;;  %9138 = vmatpush3.bf16.msra.mxu1 %v10988_v45  ;;  %v6386_v45 = vor.u32 %v6385_v26, %v6382_v18  ;;  %v6437_v25 = vshll.u32 %v11836_v50, 16  ;;  %v6452_v26 = vshrl.u32 %v11852_v32, 16 }
 0x56e   :  { %9314 = vmatprep.subr.bf16.mxu1 %v10118_v23  ;;  %v6431_v21 = vor.u32 %v6430_v57, %v6427_v5  ;;  %v6491_v5 = vshll.u32 %v11957_v19, 16 }
 0x56f   :  { %v6387_v13 = vsel %vm2724_vm6, %v6377_v8, %v6386_v45  ;;  %v6396_v46 = vsel %vm2724_vm6, %v6386_v45, %v6395_v55  ;;  %v6439_v8 = vrot.slane %v6437_v25, 3  ;;  %v6464_v45 = vshll.u32 %v11858_v14, 16 }
 0x570   :  { %v6432_v2 = vsel %vm2724_vm6, %v6422_v7, %v6431_v21  ;;  %v6454_v37 = vrot.slane %v6452_v26, 2  ;;  %v8012_v7 = vld [vmem:[%s12143_s0 + $0xb4] sm:$0x8] }
 0x571   :  { %v6440_v18 = vor.u32 %v6439_v8, %v6436_v10  ;;  %v6768_v8 = vrot.slane %v11740_v24, 3  ;;  %v6774_v24 = vrot.slane %v11767_v49, 3  ;;  %v6782_v49 = vrot.slane %v11804_v0, 3 }
 0x572   :  { %v6790_v0 = vrot.slane %v11836_v50, 3  ;;  %v6798_v50 = vrot.slane %v11868_v43, 3 }
 0x573   :  { %v6441_v30 = vsel %vm2724_vm6, %v6431_v21, %v6440_v18  ;;  %v6493_v21 = vrot.slane %v6491_v5, 3 }
 0x574   :  { %9106 = vmatmul.mubr.msk.bf16.gmra.mrb[8].mxu1 %vm313_vm2, %v6369_v27  ;;  %v6448_v27 = vrot.slane %v6446_v16, 3  ;;  %v8013_v16 = vcombine.low %v8012_v7, %v11730_v12  ;;  %v6772_v12 = vrot.slane %v11757_v41, 3  ;;  %v6780_v41 = vrot.slane %v11794_v48, 3 }
 0x575   :  { %9109 = vmatprep.mubr.msk.bf16.mxu1 %vm313_vm2, %v6378_v44  ;;  %v6455_v44 = vshll.u32 %v11852_v32, 16  ;;  %v6788_v48 = vrot.slane %v11826_v40, 3  ;;  %v6796_v40 = vrot.slane %v11858_v14, 3 }
 0x576   :  { %v6449_v33 = vor.u32 %v6448_v27, %v6445_v29  ;;  %v6767_v10 = vrot.slane %v8013_v16, 3  ;;  %v6770_v27 = vrot.slane %v11751_v47, 3  ;;  %v6778_v47 = vrot.slane %v11788_v15, 3 }
 0x577   :  { %v6457_v55 = vrot.slane %v6455_v44, 3  ;;  %v6776_v44 = vrot.slane %v11773_v38, 3  ;;  %v6784_v38 = vrot.slane %v11810_v62, 3  ;;  %v6786_v15 = vrot.slane %v11820_v34, 3 }
 0x578   :  { %v6450_v20 = vsel %vm2724_vm6, %v6440_v18, %v6449_v33  ;;  %v6769_v29 = vsel %vm3171_vm7, %v6767_v10, %v6768_v8  ;;  %v6771_v18 = vsel %vm3171_vm7, %v6768_v8, %v6770_v27  ;;  %v6773_v26 = vsel %vm3171_vm7, %v6770_v27, %v6772_v12 }
 0x579   :  { %v6458_v6 = vor.u32 %v6457_v55, %v6454_v37  ;;  %v6777_v39 = vsel %vm3171_vm7, %v6774_v24, %v6776_v44  ;;  %v6783_v37 = vsel %vm3171_vm7, %v6780_v41, %v6782_v49  ;;  %v6785_v55 = vsel %vm3171_vm7, %v6782_v49, %v6784_v38 }
 0x57a   :  { %v6792_v62 = vrot.slane %v11842_v1, 3  ;;  %v6794_v34 = vrot.slane %v11852_v32, 3  ;;  %v6800_v1 = vrot.slane %v11873_v61, 3  ;;  %v6802_v32 = vrot.slane %v11957_v19, 3 }
 0x57b   :  { %v6459_v51 = vsel %vm2724_vm6, %v6449_v33, %v6458_v6  ;;  %v6775_v33 = vsel %vm3171_vm7, %v6772_v12, %v6774_v24 }
 0x57c   :  { %9110 = vmatmul.mubr.msk.bf16.gmra.mrb[12].mxu1 %vm313_vm2, %v6387_v13  ;;  %v6466_v13 = vrot.slane %v6464_v45, 3  ;;  %v6779_v45 = vsel %vm3171_vm7, %v6776_v44, %v6778_v47  ;;  %v6795_v53 = vsel %vm3171_vm7, %v6792_v62, %v6794_v34  ;;  %v6803_v14 = vsel %vm3171_vm7, %v6800_v1, %v6802_v32 }
 0x57d   :  { %9113 = vmatprep.mubr.msk.bf16.mxu1 %vm313_vm2, %v6396_v46  ;;  %v6473_v46 = vshll.u32 %v11868_v43, 16 }
 0x57e   :  { %v6467_v63 = vor.u32 %v6466_v13, %v6463_v3  ;;  %v6789_v3 = vsel %vm3171_vm7, %v6786_v15, %v6788_v48  ;;  %v6791_v13 = vsel %vm3171_vm7, %v6788_v48, %v6790_v0 }
 0x57f   :  { %v6475_v4 = vrot.slane %v6473_v46, 3  ;;  %v6797_v46 = vsel %vm3171_vm7, %v6794_v34, %v6796_v40 }
 0x580   :  { %v6468_v59 = vsel %vm2724_vm6, %v6458_v6, %v6467_v63  ;;  %v6793_v6 = vsel %vm3171_vm7, %v6790_v0, %v6792_v62 }
 0x581   :  { %v6476_v11 = vor.u32 %v6475_v4, %v6472_v60 }
 0x583   :  { %v6477_v54 = vsel %vm2724_vm6, %v6467_v63, %v6476_v11  ;;  %v6799_v63 = vsel %vm3171_vm7, %v6796_v40, %v6798_v50 }
 0x584   :  { %9114 = vmatmul.mubr.msk.bf16.gmra.mrb[16].mxu1 %vm313_vm2, %v6405_v58  ;;  %v6481_v58 = vrot.slane %v6479_v35, 2  ;;  %v6801_v35 = vsel %vm3171_vm7, %v6798_v50, %v6800_v1 }
 0x585   :  { %9117 = vmatprep.mubr.msk.bf16.mxu1 %vm313_vm2, %v6414_v36  ;;  %v6488_v36 = vshrl.u32 %v11957_v19, 16 }
 0x586   :  { %v6485_v57 = vor.u32 %v6484_v56, %v6481_v58 }
 0x587   :  { %v6490_v25 = vrot.slane %v6488_v36, 2 }
 0x588   :  { %v6486_v22 = vsel %vm2724_vm6, %v6476_v11, %v6485_v57 }
 0x58c   :  { %9118 = vmatmul.mubr.msk.bf16.gmra.mrb[20].mxu1 %vm313_vm2, %v6423_v28  ;;  %v6494_v28 = vor.u32 %v6493_v21, %v6490_v25 }
 0x58d   :  { %9121 = vmatprep.mubr.msk.bf16.mxu1 %vm313_vm2, %v6432_v2 }
 0x58e   :  { %v6495_v2 = vsel %vm2724_vm6, %v6485_v57, %v6494_v28 }
 0x594   :  { %9122 = vmatmul.mubr.msk.bf16.gmra.mrb[24].mxu1 %vm313_vm2, %v6441_v30  ;;  %v6781_v30 = vsel %vm3171_vm7, %v6778_v47, %v6780_v41 }
 0x595   :  { %9125 = vmatprep.mubr.msk.bf16.mxu1 %vm313_vm2, %v6450_v20  ;;  %v6787_v20 = vsel %vm3171_vm7, %v6784_v38, %v6786_v15 }
 0x59c   :  { %9126 = vmatmul.mubr.msk.bf16.gmra.mrb[28].mxu1 %vm313_vm2, %v6459_v51 }
 0x59d   :  { %9129 = vmatprep.mubr.msk.bf16.mxu1 %vm313_vm2, %v6468_v59 }
 0x5a4   :  { %9130 = vmatmul.mubr.msk.bf16.gmra.mrb[32].mxu1 %vm313_vm2, %v6477_v54 }
 0x5a5   :  { %9133 = vmatprep.mubr.msk.bf16.mxu1 %vm313_vm2, %v6486_v22 }
 0x5ac   :  { %9134 = vmatmul.mubr.msk.bf16.gmra.mrb[36].mxu1 %vm313_vm2, %v6495_v2 }
 0x5ad   :  { %9139 = vmatprep.mubr.msk.bf16.mxu1 %vm313_vm2, %v6769_v29 }
 0x5b4   :  { %9140 = vmatmul.mubr.msk.bf16.vlgmr.msra.gmra.mrb[4].mxu1 %vm313_vm2, %v6771_v18 }
 0x5b5   :  { %9143 = vmatprep.mubr.msk.bf16.mxu1 %vm313_vm2, %v6773_v26 }
 0x5bc   :  { %9144 = vmatmul.mubr.msk.bf16.gmra.mrb[8].mxu1 %vm313_vm2, %v6775_v33 }
 0x5bd   :  { %9147 = vmatprep.mubr.msk.bf16.mxu1 %vm313_vm2, %v6777_v39 }
 0x5c4   :  { %9148 = vmatmul.mubr.msk.bf16.gmra.mrb[12].mxu1 %vm313_vm2, %v6779_v45 }
 0x5c5   :  { %9151 = vmatprep.mubr.msk.bf16.mxu1 %vm313_vm2, %v6781_v30 }
 0x5cc   :  { %9152 = vmatmul.mubr.msk.bf16.gmra.mrb[16].mxu1 %vm313_vm2, %v6783_v37 }
 0x5cd   :  { %9155 = vmatprep.mubr.msk.bf16.mxu1 %vm313_vm2, %v6785_v55 }
 0x5d4   :  { %9156 = vmatmul.mubr.msk.bf16.gmra.mrb[20].mxu1 %vm313_vm2, %v6787_v20 }
 0x5d5   :  { %9159 = vmatprep.mubr.msk.bf16.mxu1 %vm313_vm2, %v6789_v3 }
 0x5dc   :  { %9160 = vmatmul.mubr.msk.bf16.gmra.mrb[24].mxu1 %vm313_vm2, %v6791_v13 }
 0x5dd   :  { %9163 = vmatprep.mubr.msk.bf16.mxu1 %vm313_vm2, %v6793_v6 }
 0x5e4   :  { %9164 = vmatmul.mubr.msk.bf16.gmra.mrb[28].mxu1 %vm313_vm2, %v6795_v53 }
 0x5e5   :  { %9167 = vmatprep.mubr.msk.bf16.mxu1 %vm313_vm2, %v6797_v46 }
 0x5ec   :  { %9168 = vmatmul.mubr.msk.bf16.gmra.mrb[32].mxu1 %vm313_vm2, %v6799_v63 }
 0x5ed   :  { %9171 = vmatprep.mubr.msk.bf16.mxu1 %vm313_vm2, %v6801_v35 }
 0x5f4   :  { %9172 = vmatmul.mubr.msk.bf16.gmra.mrb[36].mxu1 %vm313_vm2, %v6803_v14 }
 0x5f5   :  { %9229 = vmatprep.mubr.msk.f32.mxu1 %vm10119_vm8, %v10120_v17 }
 0x687   :  { %v9141_v43 = vpop.f32.mrb[4].mxu1 }
 0x688   :  { %v6892_v42 = vpop.f32.mrb[5].mxu1  ;;  %v7073_v51 = vmax.f32 %v9141_v43, 0.0 }
 0x689   :  { %v9142_v61 = vpop.f32.mrb[6].mxu1  ;;  %v7071_v59 = vmax.f32 %v6892_v42, 0.0 }
 0x68a   :  { %v7074_v60 = vmax.f32 %v9142_v61, 0.0  ;;  %v6895_v4 = vpop.f32.mrb[7].mxu1 }
 0x68b   :  { %v7072_v58 = vmax.f32 %v6895_v4, 0.0 }
 0x68c   :  { %v9276_v56 = vpack.c.bf16 %v7074_v60, %v7073_v51 }
 0x68d   :  { %v9272_v11 = vpack.c.bf16 %v7072_v58, %v7071_v59 }
 0x68f   :  { %v9145_v36 = vpop.f32.mrb[8].mxu1 }
 0x690   :  { %v6908_v5 = vpop.f32.mrb[9].mxu1  ;;  %v7077_v57 = vmax.f32 %v9145_v36, 0.0 }
 0x691   :  { %v9146_v19 = vpop.f32.mrb[10].mxu1  ;;  %v7075_v25 = vmax.f32 %v6908_v5, 0.0 }
 0x692   :  { %v7078_v7 = vmax.f32 %v9146_v19, 0.0  ;;  %v6911_v54 = vpop.f32.mrb[11].mxu1 }
 0x693   :  { %v7076_v21 = vmax.f32 %v6911_v54, 0.0 }
 0x694   :  { %v9284_v22 = vpack.c.bf16 %v7078_v7, %v7077_v57 }
 0x695   :  { %v9280_v16 = vpack.c.bf16 %v7076_v21, %v7075_v25 }
 0x697   :  { %v9149_v28 = vpop.f32.mrb[12].mxu1 }
 0x698   :  { %v6924_v10 = vpop.f32.mrb[13].mxu1  ;;  %v7081_v2 = vmax.f32 %v9149_v28, 0.0 }
 0x699   :  { %v9150_v8 = vpop.f32.mrb[14].mxu1  ;;  %v7079_v12 = vmax.f32 %v6924_v10, 0.0 }
 0x69a   :  { %v7082_v29 = vmax.f32 %v9150_v8, 0.0  ;;  %v6927_v27 = vpop.f32.mrb[15].mxu1 }
 0x69b   :  { %v7080_v18 = vmax.f32 %v6927_v27, 0.0 }
 0x69c   :  { %v9292_v26 = vpack.c.bf16 %v7082_v29, %v7081_v2 }
 0x69d   :  { %v9288_v24 = vpack.c.bf16 %v7080_v18, %v7079_v12 }
 0x69f   :  { %v9153_v44 = vpop.f32.mrb[16].mxu1 }
 0x6a0   :  { %v6940_v33 = vpop.f32.mrb[17].mxu1  ;;  %v7085_v47 = vmax.f32 %v9153_v44, 0.0 }
 0x6a1   :  { %v9154_v39 = vpop.f32.mrb[18].mxu1  ;;  %v7083_v30 = vmax.f32 %v6940_v33, 0.0 }
 0x6a2   :  { %v7086_v41 = vmax.f32 %v9154_v39, 0.0  ;;  %v6943_v45 = vpop.f32.mrb[19].mxu1 }
 0x6a3   :  { %v7084_v49 = vmax.f32 %v6943_v45, 0.0  ;;  %v7338_v45 = vld [vmem:[%s12148_s5 + $0x8] sm:$0xff] }
 0x6a4   :  { %v12030_v38 = vpack.c.bf16 %v7086_v41, %v7085_v47  ;;  %v7254_v47 = vld [vmem:[%s12146_s3 + $0x10] sm:$0xff]  ;;  %v7337_v41 = vld [vmem:[%s12148_s5] sm:$0xff] }
 0x6a5   :  { %v9296_v37 = vpack.c.bf16 %v7084_v49, %v7083_v30  ;;  %v7339_v30 = vld [vmem:[%s12148_s5 + $0x10] sm:$0xff]  ;;  %v9315_v49 = vpack.c.bf16 %v7338_v45, %v7337_v41 }
 0x6a7   :  { %v9157_v55 = vpop.f32.mrb[20].mxu1  ;;  %9316 = vmatpush3.bf16.msra.mxu1 %v9315_v49 }
 0x6a8   :  { %v6956_v15 = vpop.f32.mrb[21].mxu1  ;;  %v7089_v20 = vmax.f32 %v9157_v55, 0.0  ;;  %9317 = vmatprep.subr.bf16.mxu1 %v10118_v23  ;;  %v7341_v55 = vld [vmem:[%s12148_s5 + $0x20] sm:$0xff] }
 0x6a9   :  { %v9158_v48 = vpop.f32.mrb[22].mxu1  ;;  %v7087_v62 = vmax.f32 %v6956_v15, 0.0  ;;  %v7342_v15 = vld [vmem:[%s12148_s5 + $0x28] sm:$0xff] }
 0x6aa   :  { %v7090_v3 = vmax.f32 %v9158_v48, 0.0  ;;  %v6959_v0 = vpop.f32.mrb[23].mxu1  ;;  %v9321_v48 = vpack.c.bf16 %v7342_v15, %v7341_v55 }
 0x6ab   :  { %v7088_v13 = vmax.f32 %v6959_v0, 0.0 }
 0x6ac   :  { %v9274_v6 = vpack.c.bf16 %v7090_v3, %v7089_v20  ;;  %v7343_v20 = vld [vmem:[%s12148_s5 + $0x30] sm:$0xff]  ;;  %v7344_v3 = vld [vmem:[%s12148_s5 + $0x38] sm:$0xff] }
 0x6ad   :  { %v9270_v34 = vpack.c.bf16 %v7088_v13, %v7087_v62  ;;  %v9324_v0 = vpack.c.bf16 %v7344_v3, %v7343_v20  ;;  %v7345_v62 = vld [vmem:[%s12148_s5 + $0x40] sm:$0xff]  ;;  %v7346_v13 = vld [vmem:[%s12148_s5 + $0x48] sm:$0xff] }
 0x6af   :  { %v9161_v40 = vpop.f32.mrb[24].mxu1  ;;  %9271 = vmatprep.subr.bf16.mxu0 %v9270_v34  ;;  %v7347_v34 = vld [vmem:[%s12148_s5 + $0x50] sm:$0xff] }
 0x6b0   :  { %v6972_v53 = vpop.f32.mrb[25].mxu1  ;;  %9273 = vmatpush3.bf16.msra.mxu0 %v9272_v11  ;;  %v7093_v50 = vmax.f32 %v9161_v40, 0.0  ;;  %v7348_v40 = vld [vmem:[%s12148_s5 + $0x58] sm:$0xff] }
 0x6b1   :  { %v9162_v46 = vpop.f32.mrb[26].mxu1  ;;  %9275 = vmatprep.subr.bf16.mxu0 %v9274_v6  ;;  %v7091_v35 = vmax.f32 %v6972_v53, 0.0  ;;  %v9327_v6 = vpack.c.bf16 %v7346_v13, %v7345_v62  ;;  %v9330_v53 = vpack.c.bf16 %v7348_v40, %v7347_v34 }
 0x6b2   :  { %v7094_v1 = vmax.f32 %v9162_v46, 0.0  ;;  %v6975_v63 = vpop.f32.mrb[27].mxu1  ;;  %v7349_v46 = vld [vmem:[%s12148_s5 + $0x60] sm:$0xff] }
 0x6b3   :  { %v7092_v32 = vmax.f32 %v6975_v63, 0.0 }
 0x6b4   :  { %v9282_v14 = vpack.c.bf16 %v7094_v1, %v7093_v50  ;;  %9277 = vmatpush3.bf16.msra.mxu0 %v9276_v56  ;;  %v7350_v50 = vld [vmem:[%s12148_s5 + $0x68] sm:$0xff] }
 0x6b5   :  { %v9278_v43 = vpack.c.bf16 %v7092_v32, %v7091_v35  ;;  %v9333_v1 = vpack.c.bf16 %v7350_v50, %v7349_v46 }
 0x6b7   :  { %v9165_v42 = vpop.f32.mrb[28].mxu1  ;;  %9279 = vmatprep.subr.bf16.mxu0 %v9278_v43 }
 0x6b8   :  { %v6988_v61 = vpop.f32.mrb[29].mxu1  ;;  %9281 = vmatpush3.bf16.msra.mxu0 %v9280_v16  ;;  %v7097_v60 = vmax.f32 %v9165_v42, 0.0 }
 0x6b9   :  { %v9166_v51 = vpop.f32.mrb[30].mxu1  ;;  %9283 = vmatprep.subr.bf16.mxu0 %v9282_v14  ;;  %v7095_v58 = vmax.f32 %v6988_v61, 0.0 }
 0x6ba   :  { %v7098_v4 = vmax.f32 %v9166_v51, 0.0  ;;  %v6991_v59 = vpop.f32.mrb[31].mxu1 }
 0x6bb   :  { %v7096_v11 = vmax.f32 %v6991_v59, 0.0  ;;  %v8033_v59 = vld [vmem:[%s12147_s4] ss:$0 sm:$0xff] }
 0x6bc   :  { %v9290_v36 = vpack.c.bf16 %v7098_v4, %v7097_v60  ;;  %9285 = vmatpush3.bf16.msra.mxu0 %v9284_v22  ;;  %v7351_v60 = vld [vmem:[%s12148_s5 + $0x70] sm:$0xff] }
 0x6bd   :  { %v9286_v5 = vpack.c.bf16 %v7096_v11, %v7095_v58 }
 0x6bf   :  { %v9169_v19 = vpop.f32.mrb[32].mxu1  ;;  %9287 = vmatprep.subr.bf16.mxu0 %v9286_v5 }
 0x6c0   :  { %v7004_v57 = vpop.f32.mrb[33].mxu1  ;;  %9289 = vmatpush3.bf16.msra.mxu0 %v9288_v24  ;;  %v7101_v7 = vmax.f32 %v9169_v19, 0.0 }
 0x6c1   :  { %v9170_v56 = vpop.f32.mrb[34].mxu1  ;;  %9291 = vmatprep.subr.bf16.mxu0 %v9290_v36  ;;  %v7099_v21 = vmax.f32 %v7004_v57, 0.0 }
 0x6c2   :  { %v7102_v54 = vmax.f32 %v9170_v56, 0.0  ;;  %v7007_v25 = vpop.f32.mrb[35].mxu1 }
 0x6c3   :  { %v7100_v16 = vmax.f32 %v7007_v25, 0.0 }
 0x6c4   :  { %v9298_v28 = vpack.c.bf16 %v7102_v54, %v7101_v7  ;;  %9293 = vmatpush3.bf16.msra.mxu0 %v9292_v26  ;;  %v7252_v26 = vld [vmem:[%s12146_s3] sm:$0xff] }
 0x6c5   :  { %v9294_v10 = vpack.c.bf16 %v7100_v16, %v7099_v21 }
 0x6c7   :  { %v9173_v8 = vpop.f32.mrb[36].mxu1  ;;  %9295 = vmatprep.subr.bf16.mxu0 %v9294_v10 }
 0x6c8   :  { %v7020_v2 = vpop.f32.mrb[37].mxu1  ;;  %9297 = vmatpush3.bf16.msra.mxu0 %v9296_v37  ;;  %v7105_v29 = vmax.f32 %v9173_v8, 0.0 }
 0x6c9   :  { %v9174_v22 = vpop.f32.mrb[38].mxu1  ;;  %9299 = vmatprep.subr.bf16.mxu0 %v9298_v28  ;;  %v7103_v18 = vmax.f32 %v7020_v2, 0.0 }
 0x6ca   :  { %v7106_v27 = vmax.f32 %v9174_v22, 0.0  ;;  %v7023_v12 = vpop.f32.mrb[39].mxu1 }
 0x6cb   :  { %v7104_v24 = vmax.f32 %v7023_v12, 0.0 }
 0x6cc   :  { %v9306_v44 = vpack.c.bf16 %v7106_v27, %v7105_v29  ;;  %9301 = vmatpush3.bf16.msra.mxu0 %v12030_v38  ;;  %v7340_v38 = vld [vmem:[%s12148_s5 + $0x18] sm:$0xff] }
 0x6cd   :  { %v9303_v33 = vpack.c.bf16 %v7104_v24, %v7103_v18  ;;  %9302 = vmatprep.subr.bf16.mxu0 %v10118_v23  ;;  %v9318_v37 = vpack.c.bf16 %v7340_v38, %v7339_v30 }
 0x6cf   :  { %7172 = vmatmul.mubr.f32.vlgmr.msra.gmra.mrb[36].mxu0 %v11115_v52  ;;  %v7253_v52 = vld [vmem:[%s12146_s3 + $0x8] sm:$0xff]  ;;  %9319 = vmatpush3.bf16.msra.mxu1 %v9318_v37 }
 0x6d0   :  { %9304 = vmatpush3.bf16.msra.mxu0 %v9303_v33  ;;  %9183 = vmatprep.mubr.msk.f32.mxu0 %vm10119_vm8, %v10120_v17  ;;  %v9309_v39 = vpack.c.bf16 %v7253_v52, %v7252_v26 }
 0x6d1   :  { %9305 = vmatprep.subr.bf16.mxu0 %v10118_v23  ;;  %9320 = vmatprep.subr.bf16.mxu1 %v10118_v23 }
 0x6d3   :  { %9322 = vmatpush3.bf16.msra.mxu1 %v9321_v48 }
 0x6d4   :  { %9307 = vmatpush3.bf16.msra.mxu0 %v9306_v44  ;;  %9323 = vmatprep.subr.bf16.mxu1 %v10118_v23 }
 0x6d5   :  { %9308 = vmatprep.subr.bf16.mxu0 %v10118_v23 }
 0x6d7   :  { %9184 = vmatmul.mubr.msk.f32.vlgmr.msra.gmra.mrb[38].mxu0 %vm3531_vm9, %v11117_v31  ;;  %v7255_v31 = vld [vmem:[%s12146_s3 + $0x18] sm:$0xff]  ;;  %9325 = vmatpush3.bf16.msra.mxu1 %v9324_v0  ;;  %s10121_s3 = smov [#allocation2]  }
 0x6d8   :  { %9194 = vmatprep.mubr.msk.f32.mxu0 %vm10119_vm8, %v10120_v17  ;;  %9310 = vmatpush3.bf16.msra.mxu0 %v9309_v39  ;;  %v9312_v17 = vpack.c.bf16 %v7255_v31, %v7254_v47  ;;  %s7437_s2 = sshll.u32 %s10121_s3, 4  ;;  %s7438_s2 = int_to_ptr.vmem [resolvable:$true] %s7437_s2 }
 0x6d9   :  { %9311 = vmatprep.subr.bf16.mxu0 %v10118_v23  ;;  %9326 = vmatprep.subr.bf16.mxu1 %v10118_v23  ;;  %s10070_s23 = scalar_lea.vmem %s7438_s2, 32  ;;  %p10075_p1 = scmp.lt.s32.totalorder %s7438_s2, %s7438_s2 }
 0x6da   :  { %p10071_p0 = scmp.ne.s32.totalorder %s7438_s2, %s10070_s23  ;;  %p10076_p2 = scmp.lt.s32.totalorder %s10070_s23, %s10070_s23 }
 0x6db   :  { %9328 = vmatpush3.bf16.msra.mxu1 %v9327_v6 }
 0x6dc   :  { %9313 = vmatpush3.bf16.msra.mxu0 %v9312_v17  ;;  %9329 = vmatprep.subr.bf16.mxu1 %v10118_v23  ;;  %p10077_p3 = por %p10076_p2, %p10075_p1 }
 0x6de   :  { %p10078_p4 = pnand %p10077_p3, %p10071_p0 }
 0x6df   :  { %9331 = vmatpush3.bf16.msra.mxu1 %v9330_v53 }
 0x6e0   :  { %9332 = vmatprep.subr.bf16.mxu1 %v10118_v23 }
 0x6e3   :  { %9334 = vmatpush3.bf16.msra.mxu1 %v9333_v1 }
 0x6e4   :  { %9335 = vmatprep.subr.bf16.mxu1 %v10118_v23  ;;  %v7352_v23 = vld [vmem:[%s12148_s5 + $0x78] sm:$0xff] }
 0x6e5   :  { %v9336_v4 = vpack.c.bf16 %v7352_v23, %v7351_v60 }
 0x6e7   :  { %9337 = vmatpush3.bf16.msra.mxu1 %v9336_v4 }
 0x7a2   :  { %v8450_v63 = vpop.f32.mrb[36].mxu0 }
 0x7a3   :  { %v8451_v35 = vpop.f32.mrb[37].mxu0 }
 0x7a4   :  { %v8452_v32 = vadd.f32 %v8451_v35, %v8450_v63 }
 0x7aa   :  { %v7243_v14 = vpop.f32.mrb[38].mxu0 }
 0x7ab   :  { %v7244_v43 = vadd.f32 %v8452_v32, %v7243_v14  ;;  %v9185_v42 = vpop.f32.mrb[39].mxu0 }
 0x7ad   :  { %v7248_v61 = vrot.slane %v7244_v43, 7 }
 0x7af   :  { %v7251_v51 = vsel %vm7250_vm10, %v11452_v9, %v7248_v61 }
 0x7b0   :  { %9195 = vmatmul.mubr.msk.f32.vlgmr.msra.gmra.mrb[40].mxu0 %vm3531_vm9, %v7251_v51 }
 0x883   :  { %v7332_v58 = vpop.f32.mrb[40].mxu0 }
 0x884   :  { %v7333_v11 = vadd.f32 %v8033_v59, %v7332_v58  ;;  %v9196_v36 = vpop.f32.mrb[41].mxu0 }
 0x886   :  { %7336 = vst [vmem:[#allocation2] sm:$0x3] %v7333_v11  ;;  %9230 = vmatmul.mubr.f32.vlgmr.msra.gmra.mrb[40].mxu1 %v7333_v11 }
 0x887   :  { %10081 = shalt.err (!%p10078_p4)
}
 0x888   :  { %s10082_s25 = scalar_lea.hbm %s12150_s7, 32 }
 0x889   :  { %p10083_p5 = scmp.ne.s32.totalorder %s12150_s7, %s10082_s25  ;;  %p10086_p6 = scmp.lt.u32.totalorder %s10082_s25, %s12150_s7 }
 0x88b   :  { %p10088_p7 = pnand %p10086_p6, %p10083_p5 }
 0x88d   :  { %10091 = shalt.err (!%p10088_p7)
}
 0x88e   :  { %7440 = dma.vmem_to_hbm [thread:$0]  %s7438_s2, 32, %s12150_s7, [#allocation3]   ;;  %v8035_v9 = vld [vmem:[%s12149_s6] ss:$0 sm:$0xff] }
 0x88f   :  { %s10122_s9 = smov [#allocation4]  }
 0x890   :  { %s7447_s10 = sshll.u32 %s10122_s9, 4  ;;  %s7448_s10 = int_to_ptr.vmem [resolvable:$true] %s7447_s10 }
 0x891   :  { %s10092_s11 = scalar_lea.vmem %s7448_s10, 32  ;;  %p10097_p9 = scmp.lt.s32.totalorder %s7448_s10, %s7448_s10 }
 0x892   :  { %p10093_p8 = scmp.ne.s32.totalorder %s7448_s10, %s10092_s11  ;;  %p10098_p10 = scmp.lt.s32.totalorder %s10092_s11, %s10092_s11 }
 0x894   :  { %p10099_p11 = por %p10098_p10, %p10097_p9 }
 0x896   :  { %p10100_p12 = pnand %p10099_p11, %p10093_p8 }
 0x959   :  { %v7426_v5 = vpop.f32.mrb[40].mxu1 }
 0x95a   :  { %v7427_v19 = vadd.f32 %v8035_v9, %v7426_v5  ;;  %v9231_v57 = vpop.f32.mrb[41].mxu1 }
 0x95c   :  { %7430 = vst [vmem:[#allocation4] sm:$0x3] %v7427_v19 }
 0x95d   :  { %10103 = shalt.err (!%p10100_p12)
}
 0x95e   :  { %s10104_s13 = scalar_lea.hbm %s12151_s8, 32 }
 0x95f   :  { %p10105_p13 = scmp.ne.s32.totalorder %s12151_s8, %s10104_s13  ;;  %p10108_p0 = scmp.lt.u32.totalorder %s10104_s13, %s12151_s8 }
 0x961   :  { %p10110_p1 = pnand %p10108_p0, %p10105_p13 }
 0x963   :  { %10113 = shalt.err (!%p10110_p1)
}
 0x964   :  { %7450 = dma.vmem_to_hbm [thread:$0]  %s7448_s10, 32, %s12151_s8, [#allocation5]  }
 0x965   :  { %10114 = dma.done.wait [#allocation3], 32  }
 0x966   :  { %10115 = vsyncadd [#allocation3], 4294967264 }
 0x967   :  { %10116 = dma.done.wait [#allocation5], 32  }
 0x968   :  { %10117 = vsyncadd [#allocation5], 4294967264 }
 0x969   :  { %7457 = vsyncpa [#allocation3], 1 }
 0x96a   :  { %7458 = vsyncpa [#allocation5], 1 }

</bundles_post_ra>
